<compile_context>
chip_gen: v7x
topology: tpu7x:2x2x1
jax: 0.10.0
libtpu: 0.0.40
codegen_flags: <defaults>
</compile_context>

<pallas_src>
import jax
import jax.numpy as jnp
import numpy as np
from jax import lax
from jax.experimental import pallas as pl
from jax.experimental.pallas import tpu as pltpu


_FIX = 65536.0  # fixed-point scale for interpolation weights carried as int32


def _round_up(x, m):
    return ((x + m - 1) // m) * m


def _largest_divisor_leq(n, cap):
    cap = max(1, min(n, cap))
    for d in range(cap, 0, -1):
        if n % d == 0:
            return d
    return 1


def _tpu_vmem_capacity():
    try:
        return int(pltpu.get_tpu_info().vmem_capacity_bytes)
    except Exception:
        return 64 * 1024 * 1024      # conservative (v7x-sized) fallback


def _align_corners_taps(out_size, in_size):
    """Per-output-position (i0, w0, w1) for 1-D align_corners=True interp."""
    if out_size == 1 or in_size == 1:
        pos = np.zeros((out_size,), np.float64)
    else:
        pos = np.arange(out_size, dtype=np.float64) * (in_size - 1) / (out_size - 1)
    pos = np.clip(pos, 0.0, in_size - 1)
    i0 = np.floor(pos).astype(np.int32)
    frac = pos - i0
    return i0, 1.0 - frac, frac


def _interp_matrix(out_size, in_size):
    """Dense (out_size, in_size) align_corners interpolation matrix."""
    i0, w0, w1 = _align_corners_taps(out_size, in_size)
    m = np.zeros((out_size, in_size), np.float32)
    m[np.arange(out_size), i0] += w0
    m[np.arange(out_size), np.minimum(i0 + 1, in_size - 1)] += w1
    return jnp.asarray(m)


def _row_tap_tables(H, h_low, TH):
    """Per-(tile, padded-row) interp taps; zero weights emit conv-padding rows."""
    nT = H // TH
    TH4 = TH + 4
    i0_img, w0_img, w1_img = _align_corners_taps(H, h_low)
    rows0 = np.zeros((nT, TH4), np.int32)
    w0q = np.zeros((nT, TH4), np.int32)
    w1q = np.zeros((nT, TH4), np.int32)
    for t in range(nT):
        for p in range(TH4):
            r = t * TH - 2 + p                      # image row of padded row p
            if 0 <= r < H:
                rows0[t, p] = i0_img[r]
                w0q[t, p] = int(round(w0_img[r] * _FIX))
                w1q[t, p] = int(round(w1_img[r] * _FIX))
            # else: all-zero taps -> a zero (conv padding) row
    return jnp.asarray(rows0), jnp.asarray(w0q), jnp.asarray(w1q)


# ----------------------------------------------------------------------------
# Fused kernel: one (batch, H-tile) block per grid step.
#   in-kernel H-interp of up_x -> [concat -> conv3x3 -> BN -> LeakyReLU
#                                  -> conv3x3 -> BN -> LeakyReLU]
# ----------------------------------------------------------------------------
def _fused_upsample_bn_kernel(rows0_ref, w0q_ref, w1q_ref,        # SMEM prefetch
                              xw_ref, cwb_ref, cwh_ref,           # activations
                              w1a_ref, w1b_ref, w2_ref,           # stacked-K weights
                              s1_ref, b1_ref, s2_ref, b2_ref,     # folded BN affine
                              o_ref,                              # (1, TH, W, Co) bf16
                              pad_a_ref):                         # VMEM (TH+4, W+2, C1)
    h_idx = pl.program_id(1)
    n_tiles = pl.num_programs(1)

    TH4 = pad_a_ref.shape[0]
    TH = o_ref.shape[1]
    W = o_ref.shape[2]
    Co = o_ref.shape[3]
    Cm = w1a_ref.shape[2]
    M1 = TH + 2                                     # mid rows (1-row halo each side)

    # ---- fused align_corners bilinear H-interp (2 taps / row, VPU) ---------
    # xw_ref: (1, h_low+1, W+2, C1) bf16; already W-interpolated, W-zero-padded,
    # with one trailing zero row so i0+1 is always in range.  Rows outside the
    # image get zero weights -> zero (conv padding) rows, no scratch zeroing.
    for p in range(TH4):
        i0 = rows0_ref[h_idx, p]
        a = w0q_ref[h_idx, p].astype(jnp.float32) * (1.0 / _FIX)
        b = w1q_ref[h_idx, p].astype(jnp.float32) * (1.0 / _FIX)
        row = (a * xw_ref[0, i0].astype(jnp.float32)
               + b * xw_ref[0, i0 + 1].astype(jnp.float32))
        pad_a_ref[p] = row.astype(pad_a_ref.dtype)

    # ---- skip-connection tile with 2-row halo (pre-padded, no zero fill) ---
    halo = cwh_ref[0]                                             # (4, W+2, C2)
    pad_b = jnp.concatenate([halo[0:2], cwb_ref[0], halo[2:4]], axis=0)

    def conv3x3(src, w_ref, out_rows):
        # src: (rows, W+2, C) bf16 ; w_ref: (3, 3*C, Cout) bf16, kw-major K.
        # 3 W-shifted copies stacked along channels -> ONE matmul per kh with
        # K = 3*C (instead of 9 unaligned per-tap matmuls).
        C = src.shape[-1]
        cols = jnp.concatenate(
            [src[:, 0:W, :], src[:, 1:W + 1, :], src[:, 2:W + 2, :]], axis=-1)
        acc = jnp.zeros((out_rows * W, w_ref.shape[2]), jnp.float32)
        for kh in range(3):
            tap = cols[kh:kh + out_rows].reshape(out_rows * W, 3 * C)
            acc = acc + jnp.dot(tap, w_ref[kh],
                                preferred_element_type=jnp.float32)
        return acc

    # ---- stage 1: conv1 (concat fused by linearity) + BN + LeakyReLU -------
    acc1 = conv3x3(pad_a_ref[...], w1a_ref, M1) + conv3x3(pad_b, w1b_ref, M1)
    mid = acc1 * s1_ref[...] + b1_ref[...]
    mid = jnp.where(mid >= 0, mid, 0.01 * mid)                    # LeakyReLU(0.01)
    mid = mid.astype(jnp.bfloat16).reshape(M1, W, Cm)

    # conv2's zero-padding rows exist only at the image top/bottom boundary;
    # interior tile-boundary halo rows keep their recomputed values.
    row_id = lax.broadcasted_iota(jnp.int32, (M1, 1, 1), 0)
    kill = ((h_idx == 0) & (row_id == 0)) | \
           ((h_idx == n_tiles - 1) & (row_id == M1 - 1))
    mid = jnp.where(kill, jnp.zeros_like(mid), mid)

    zcol = jnp.zeros((M1, 1, Cm), mid.dtype)
    pad_m = jnp.concatenate([zcol, mid, zcol], axis=1)            # (M1, W+2, Cm)

    # ---- stage 2: conv2 + BN + LeakyReLU, bf16 writeback -------------------
    acc2 = conv3x3(pad_m, w2_ref, TH)
    y = acc2 * s2_ref[...] + b2_ref[...]
    y = jnp.where(y >= 0, y, 0.01 * y)                            # LeakyReLU(0.01)
    o_ref[...] = y.reshape(1, TH, W, Co).astype(o_ref.dtype)


def fused_upsample_block(xw, rows0, w0q, w1q, cw_body, cw_halo,
                         w1a, w1b, w2, s1, b1, s2, b2, *, tile_rows):
    """xw:(N,h_low+1,W+2,C1) bf16, cw_body:(N,H,W+2,C2) bf16 -> (N,H,W,Co) bf16."""
    N, h_low1, Wp2, C1 = xw.shape
    _, H, _, C2 = cw_body.shape
    W = Wp2 - 2
    TH = tile_rows
    nT = H // TH
    TH4 = TH + 4
    Cm = w1a.shape[2]
    Co = w2.shape[2]

    vmem_limit = int(min(100 * 2 ** 20, (_tpu_vmem_capacity() * 3) // 4))

    flops = N * nT * (2 * (TH + 2) * W * 9 * (C1 + C2) * Cm     # conv1
                      + 2 * TH * W * 9 * Cm * Co                # conv2
                      + 2 * TH4 * Wp2 * C1 * 2)                 # in-kernel H-interp
    bytes_accessed = (xw.size * 2 * nT + cw_body.size * 2 + cw_halo.size * 2
                      + (w1a.size + w1b.size + w2.size) * 2
                      + (s1.size + b1.size + s2.size + b2.size) * 4
                      + N * H * W * Co * 2)

    return pl.pallas_call(
        _fused_upsample_bn_kernel,
        out_shape=jax.ShapeDtypeStruct((N, H, W, Co), jnp.bfloat16),
        grid_spec=pltpu.PrefetchScalarGridSpec(
            num_scalar_prefetch=3,
            grid=(N, nT),
            in_specs=[
                pl.BlockSpec((1, h_low1, Wp2, C1), lambda n, h, *_: (n, 0, 0, 0)),
                pl.BlockSpec((1, TH, Wp2, C2), lambda n, h, *_: (n, h, 0, 0)),
                pl.BlockSpec((1, 4, Wp2, C2), lambda n, h, *_: (n, h, 0, 0)),
                pl.BlockSpec((3, 3 * C1, Cm), lambda n, h, *_: (0, 0, 0)),
                pl.BlockSpec((3, 3 * C2, Cm), lambda n, h, *_: (0, 0, 0)),
                pl.BlockSpec((3, 3 * Cm, Co), lambda n, h, *_: (0, 0, 0)),
                pl.BlockSpec((1, Cm), lambda n, h, *_: (0, 0)),
                pl.BlockSpec((1, Cm), lambda n, h, *_: (0, 0)),
                pl.BlockSpec((1, Co), lambda n, h, *_: (0, 0)),
                pl.BlockSpec((1, Co), lambda n, h, *_: (0, 0)),
            ],
            out_specs=pl.BlockSpec((1, TH, W, Co), lambda n, h, *_: (n, h, 0, 0)),
            scratch_shapes=[pltpu.VMEM((TH4, Wp2, C1), jnp.bfloat16)],
        ),
        compiler_params=pltpu.CompilerParams(
            dimension_semantics=("parallel", "parallel"),
            vmem_limit_bytes=vmem_limit),
        cost_estimate=pl.CostEstimate(flops=int(flops), transcendentals=0,
                                      bytes_accessed=int(bytes_accessed)),
    )(rows0, w0q, w1q, xw, cw_body, cw_halo, w1a, w1b, w2, s1, b1, s2, b2)


# ----------------------------------------------------------------------------
# Module with deterministic parameter init (shapes from the PyTorch __init__).
# ----------------------------------------------------------------------------
class UpSampleBN:
    def __init__(self, skip_input, output_features, key, tile_rows=None):
        k1, k2 = jax.random.split(key, 2)
        self.cin = skip_input
        self.cout = output_features
        self.cmid_p = _round_up(output_features, 128)    # lane-dense mid chans
        self.cout_p = _round_up(output_features, 128)    # lane-dense out chans
        self.tile_rows = tile_rows                       # None -> per-generation

        def conv_init(k, cin, cout):
            kw_, kb_ = jax.random.split(k)
            bound = 1.0 / ((cin * 9) ** 0.5)
            w = jax.random.uniform(kw_, (cout, cin, 3, 3), jnp.float32,
                                   -bound, bound)        # PyTorch OIHW layout
            b = jax.random.uniform(kb_, (cout,), jnp.float32, -bound, bound)
            return w, b

        w1_oihw, b1 = conv_init(k1, skip_input, output_features)
        w2_oihw, b2 = conv_init(k2, output_features, output_features)

        # BatchNorm2d (eval) defaults: gamma=1, beta=0, mean=0, var=1, eps=1e-5.
        eps = 1e-5
        bn_scale = jnp.ones((output_features,), jnp.float32) / jnp.sqrt(1.0 + eps)
        s1, bia1 = bn_scale, b1 * bn_scale
        s2, bia2 = bn_scale, b2 * bn_scale

        pad_m = self.cmid_p - output_features
        pad_o = self.cout_p - output_features

        # conv1: OIHW -> (kh, kw, Cin, Cm_pad); per-operand split + kw-major
        # stacked-K reshape happen at call time (needs x's channel count).
        w1 = jnp.transpose(w1_oihw, (2, 3, 1, 0))
        w1 = jnp.pad(w1, ((0, 0), (0, 0), (0, 0), (0, pad_m)))
        self.w1 = w1.astype(jnp.bfloat16)                        # (3,3,Cin,Cm)

        # conv2: OIHW -> (3, 3*Cm_pad, Co_pad) stacked-K, bf16.
        w2 = jnp.transpose(w2_oihw, (2, 3, 1, 0))
        w2 = jnp.pad(w2, ((0, 0), (0, 0), (0, pad_m), (0, pad_o)))
        self.w2 = w2.reshape(3, 3 * self.cmid_p, self.cout_p).astype(jnp.bfloat16)

        self.s1 = jnp.pad(s1, (0, pad_m), constant_values=1.0).reshape(1, -1)
        self.b1 = jnp.pad(bia1, (0, pad_m)).reshape(1, -1)
        self.s2 = jnp.pad(s2, (0, pad_o), constant_values=1.0).reshape(1, -1)
        self.b2 = jnp.pad(bia2, (0, pad_o)).reshape(1, -1)

    def __call__(self, x, concat_with):
        # x: (N, C1, h_low, w_low) f32, concat_with: (N, C2, H, W) f32.
        N, C1, h_low, w_low = x.shape
        _, C2, H, W = concat_with.shape

        # ---- per-generation H tile (divisor of H) --------------------------
        if self.tile_rows is None:
            target = 32 if _tpu_vmem_capacity() <= 64 * 2 ** 20 else 64
        else:
            target = self.tile_rows
        TH = _largest_divisor_leq(H, target)

        # ---- W-direction align_corners interp in XLA (still low-res in H) --
        mx = _interp_matrix(W, w_low)                    # (W, w_low)
        x_nhwc = jnp.transpose(x, (0, 2, 3, 1))
        xw = jnp.einsum('qw,nhwc->nhqc', mx, x_nhwc,
                        precision=jax.lax.Precision.HIGHEST)
        xw = jnp.pad(xw, ((0, 0), (0, 1), (1, 1), (0, 0)))   # +1 zero row, W halo
        xw = xw.astype(jnp.bfloat16)                     # (N, h_low+1, W+2, C1)

        # ---- per-tile H-interp taps (prefetched to SMEM) -------------------
        rows0, w0q, w1q = _row_tap_tables(H, h_low, TH)

        # ---- skip connection: body blocks + per-tile 2-row halos -----------
        cw = jnp.transpose(concat_with, (0, 2, 3, 1)).astype(jnp.bfloat16)
        cw = jnp.pad(cw, ((0, 0), (0, 0), (1, 1), (0, 0)))    # (N, H, W+2, C2)
        cw_hp = jnp.pad(cw, ((0, 0), (2, 2), (0, 0), (0, 0)))
        halos = []
        for t in range(H // TH):
            halos.append(cw_hp[:, t * TH:t * TH + 2])
            halos.append(cw_hp[:, t * TH + TH + 2:t * TH + TH + 4])
        cw_halo = jnp.concatenate(halos, axis=1)              # (N, nT*4, W+2, C2)

        # ---- conv1 weights: split per concat operand, kw-major stacked K ---
        w1a = self.w1[:, :, :C1, :].reshape(3, 3 * C1, self.cmid_p)
        w1b = self.w1[:, :, C1:, :].reshape(3, 3 * C2, self.cmid_p)

        out = fused_upsample_block(xw, rows0, w0q, w1q, cw, cw_halo,
                                   w1a, w1b, self.w2,
                                   self.s1, self.b1, self.s2, self.b2,
                                   tile_rows=TH)
        out = out[..., :self.cout]                       # drop lane padding
        return jnp.transpose(out, (0, 3, 1, 2))          # NCHW, bf16


if __name__ == "__main__":
    key = jax.random.PRNGKey(0)
    kx, kc, kp = jax.random.split(key, 3)

    # x upsampled 8x8 -> 16x16 (concat_with's size); channels 4 + 4 = skip_input 8.
    x = jax.random.normal(kx, (2, 4, 8, 8), jnp.float32)
    concat_with = jax.random.normal(kc, (2, 4, 16, 16), jnp.float32)

    # tile_rows=8 -> 2 H-tiles so the halo/tiling path is actually exercised.
    mod = UpSampleBN(skip_input=8, output_features=8, key=kp, tile_rows=8)
    fwd = jax.jit(mod.__call__)
    out = jax.block_until_ready(fwd(x, concat_with))
    assert out.shape == (2, 8, 16, 16) and out.dtype == jnp.bfloat16
    print("KERNEL_OK")
</pallas_src>

<mosaic_0001>
module attributes {stable_mosaic.version = 11 : i64} {
  func.func @_fused_upsample_bn_kernel(%arg0: i32, %arg1: i32, %arg2: memref<2x12xi32, #tpu.memory_space<smem>>, %arg3: memref<2x12xi32, #tpu.memory_space<smem>>, %arg4: memref<2x12xi32, #tpu.memory_space<smem>>, %arg5: memref<1x9x18x4xbf16, #tpu.memory_space<vmem>>, %arg6: memref<1x8x18x4xbf16, #tpu.memory_space<vmem>>, %arg7: memref<1x4x18x4xbf16, #tpu.memory_space<vmem>>, %arg8: memref<3x12x128xbf16, #tpu.memory_space<vmem>>, %arg9: memref<3x12x128xbf16, #tpu.memory_space<vmem>>, %arg10: memref<3x384x128xbf16, #tpu.memory_space<vmem>>, %arg11: memref<1x128xf32, #tpu.memory_space<vmem>>, %arg12: memref<1x128xf32, #tpu.memory_space<vmem>>, %arg13: memref<1x128xf32, #tpu.memory_space<vmem>>, %arg14: memref<1x128xf32, #tpu.memory_space<vmem>>, %arg15: memref<1x8x16x128xbf16, #tpu.memory_space<vmem>>, %arg16: memref<12x18x4xbf16, #tpu.memory_space<vmem>>) attributes {dimension_semantics = [#tpu.dimension_semantics<parallel>, #tpu.dimension_semantics<parallel>], iteration_bounds = array<i64: 2, 2>, scalar_prefetch = 3 : i64, scratch_operands = 1 : i64, tpu.core_type = #tpu.core_type<tc>, window_params = [{transform_indices = @transform_0, window_bounds = array<i64: 1, 9, 18, 4>}, {transform_indices = @transform_1, window_bounds = array<i64: 1, 8, 18, 4>}, {transform_indices = @transform_2, window_bounds = array<i64: 1, 4, 18, 4>}, {pipeline_mode = #tpu.pipeline_mode<synchronous>, transform_indices = @transform_3, window_bounds = array<i64: 3, 12, 128>}, {pipeline_mode = #tpu.pipeline_mode<synchronous>, transform_indices = @transform_4, window_bounds = array<i64: 3, 12, 128>}, {pipeline_mode = #tpu.pipeline_mode<synchronous>, transform_indices = @transform_5, window_bounds = array<i64: 3, 384, 128>}, {pipeline_mode = #tpu.pipeline_mode<synchronous>, transform_indices = @transform_6, window_bounds = array<i64: 1, 128>}, {pipeline_mode = #tpu.pipeline_mode<synchronous>, transform_indices = @transform_7, window_bounds = array<i64: 1, 128>}, {pipeline_mode = #tpu.pipeline_mode<synchronous>, transform_indices = @transform_8, window_bounds = array<i64: 1, 128>}, {pipeline_mode = #tpu.pipeline_mode<synchronous>, transform_indices = @transform_9, window_bounds = array<i64: 1, 128>}, {transform_indices = @transform_10, window_bounds = array<i64: 1, 8, 16, 128>}]} {
    %0 = arith.index_cast %arg1 : i32 to index
    %c0 = arith.constant 0 : index
    %1 = memref.load %arg2[%0, %c0] : memref<2x12xi32, #tpu.memory_space<smem>>
    %2 = arith.index_cast %arg1 : i32 to index
    %c0_0 = arith.constant 0 : index
    %3 = memref.load %arg3[%2, %c0_0] : memref<2x12xi32, #tpu.memory_space<smem>>
    %4 = arith.sitofp %3 : i32 to f32
    %cst = arith.constant 1.52587891E-5 : f32
    %5 = arith.mulf %4, %cst : f32
    %6 = arith.index_cast %arg1 : i32 to index
    %c0_1 = arith.constant 0 : index
    %7 = memref.load %arg4[%6, %c0_1] : memref<2x12xi32, #tpu.memory_space<smem>>
    %8 = arith.sitofp %7 : i32 to f32
    %cst_2 = arith.constant 1.52587891E-5 : f32
    %9 = arith.mulf %8, %cst_2 : f32
    %c0_3 = arith.constant 0 : index
    %10 = arith.index_cast %1 : i32 to index
    %c0_4 = arith.constant 0 : index
    %c0_5 = arith.constant 0 : index
    %11 = vector.load %arg5[%c0_3, %10, %c0_4, %c0_5] : memref<1x9x18x4xbf16, #tpu.memory_space<vmem>>, vector<1x1x18x4xbf16>
    %12 = vector.shape_cast %11 : vector<1x1x18x4xbf16> to vector<18x4xbf16>
    %13 = arith.extf %12 : vector<18x4xbf16> to vector<18x4xf32>
    %14 = vector.broadcast %5 : f32 to vector<18x4xf32>
    %15 = arith.mulf %14, %13 : vector<18x4xf32>
    %c1_i32 = arith.constant 1 : i32
    %16 = arith.addi %1, %c1_i32 : i32
    %c0_6 = arith.constant 0 : index
    %17 = arith.index_cast %16 : i32 to index
    %c0_7 = arith.constant 0 : index
    %c0_8 = arith.constant 0 : index
    %18 = vector.load %arg5[%c0_6, %17, %c0_7, %c0_8] : memref<1x9x18x4xbf16, #tpu.memory_space<vmem>>, vector<1x1x18x4xbf16>
    %19 = vector.shape_cast %18 : vector<1x1x18x4xbf16> to vector<18x4xbf16>
    %20 = arith.extf %19 : vector<18x4xbf16> to vector<18x4xf32>
    %21 = vector.broadcast %9 : f32 to vector<18x4xf32>
    %22 = arith.mulf %21, %20 : vector<18x4xf32>
    %23 = arith.addf %15, %22 : vector<18x4xf32>
    %24 = arith.truncf %23 : vector<18x4xf32> to vector<18x4xbf16>
    %c0_9 = arith.constant 0 : index
    %c0_10 = arith.constant 0 : index
    %c0_11 = arith.constant 0 : index
    %25 = vector.load %arg16[%c0_9, %c0_10, %c0_11] : memref<12x18x4xbf16, #tpu.memory_space<vmem>>, vector<1x18x4xbf16>
    %26 = vector.shape_cast %25 : vector<1x18x4xbf16> to vector<18x4xbf16>
    %27 = vector.shape_cast %24 : vector<18x4xbf16> to vector<1x18x4xbf16>
    tpu.vector_store %arg16[%c0_9, %c0_10, %c0_11], %27 {strides = array<i32>} : memref<12x18x4xbf16, #tpu.memory_space<vmem>>, vector<1x18x4xbf16>,
    %28 = arith.index_cast %arg1 : i32 to index
    %c1 = arith.constant 1 : index
    %29 = memref.load %arg2[%28, %c1] : memref<2x12xi32, #tpu.memory_space<smem>>
    %30 = arith.index_cast %arg1 : i32 to index
    %c1_12 = arith.constant 1 : index
    %31 = memref.load %arg3[%30, %c1_12] : memref<2x12xi32, #tpu.memory_space<smem>>
    %32 = arith.sitofp %31 : i32 to f32
    %cst_13 = arith.constant 1.52587891E-5 : f32
    %33 = arith.mulf %32, %cst_13 : f32
    %34 = arith.index_cast %arg1 : i32 to index
    %c1_14 = arith.constant 1 : index
    %35 = memref.load %arg4[%34, %c1_14] : memref<2x12xi32, #tpu.memory_space<smem>>
    %36 = arith.sitofp %35 : i32 to f32
    %cst_15 = arith.constant 1.52587891E-5 : f32
    %37 = arith.mulf %36, %cst_15 : f32
    %c0_16 = arith.constant 0 : index
    %38 = arith.index_cast %29 : i32 to index
    %c0_17 = arith.constant 0 : index
    %c0_18 = arith.constant 0 : index
    %39 = vector.load %arg5[%c0_16, %38, %c0_17, %c0_18] : memref<1x9x18x4xbf16, #tpu.memory_space<vmem>>, vector<1x1x18x4xbf16>
    %40 = vector.shape_cast %39 : vector<1x1x18x4xbf16> to vector<18x4xbf16>
    %41 = arith.extf %40 : vector<18x4xbf16> to vector<18x4xf32>
    %42 = vector.broadcast %33 : f32 to vector<18x4xf32>
    %43 = arith.mulf %42, %41 : vector<18x4xf32>
    %c1_i32_19 = arith.constant 1 : i32
    %44 = arith.addi %29, %c1_i32_19 : i32
    %c0_20 = arith.constant 0 : index
    %45 = arith.index_cast %44 : i32 to index
    %c0_21 = arith.constant 0 : index
    %c0_22 = arith.constant 0 : index
    %46 = vector.load %arg5[%c0_20, %45, %c0_21, %c0_22] : memref<1x9x18x4xbf16, #tpu.memory_space<vmem>>, vector<1x1x18x4xbf16>
    %47 = vector.shape_cast %46 : vector<1x1x18x4xbf16> to vector<18x4xbf16>
    %48 = arith.extf %47 : vector<18x4xbf16> to vector<18x4xf32>
    %49 = vector.broadcast %37 : f32 to vector<18x4xf32>
    %50 = arith.mulf %49, %48 : vector<18x4xf32>
    %51 = arith.addf %43, %50 : vector<18x4xf32>
    %52 = arith.truncf %51 : vector<18x4xf32> to vector<18x4xbf16>
    %c1_23 = arith.constant 1 : index
    %c0_24 = arith.constant 0 : index
    %c0_25 = arith.constant 0 : index
    %53 = vector.load %arg16[%c1_23, %c0_24, %c0_25] : memref<12x18x4xbf16, #tpu.memory_space<vmem>>, vector<1x18x4xbf16>
    %54 = vector.shape_cast %53 : vector<1x18x4xbf16> to vector<18x4xbf16>
    %55 = vector.shape_cast %52 : vector<18x4xbf16> to vector<1x18x4xbf16>
    tpu.vector_store %arg16[%c1_23, %c0_24, %c0_25], %55 {strides = array<i32>} : memref<12x18x4xbf16, #tpu.memory_space<vmem>>, vector<1x18x4xbf16>,
    %56 = arith.index_cast %arg1 : i32 to index
    %c2 = arith.constant 2 : index
    %57 = memref.load %arg2[%56, %c2] : memref<2x12xi32, #tpu.memory_space<smem>>
    %58 = arith.index_cast %arg1 : i32 to index
    %c2_26 = arith.constant 2 : index
    %59 = memref.load %arg3[%58, %c2_26] : memref<2x12xi32, #tpu.memory_space<smem>>
    %60 = arith.sitofp %59 : i32 to f32
    %cst_27 = arith.constant 1.52587891E-5 : f32
    %61 = arith.mulf %60, %cst_27 : f32
    %62 = arith.index_cast %arg1 : i32 to index
    %c2_28 = arith.constant 2 : index
    %63 = memref.load %arg4[%62, %c2_28] : memref<2x12xi32, #tpu.memory_space<smem>>
    %64 = arith.sitofp %63 : i32 to f32
    %cst_29 = arith.constant 1.52587891E-5 : f32
    %65 = arith.mulf %64, %cst_29 : f32
    %c0_30 = arith.constant 0 : index
    %66 = arith.index_cast %57 : i32 to index
    %c0_31 = arith.constant 0 : index
    %c0_32 = arith.constant 0 : index
    %67 = vector.load %arg5[%c0_30, %66, %c0_31, %c0_32] : memref<1x9x18x4xbf16, #tpu.memory_space<vmem>>, vector<1x1x18x4xbf16>
    %68 = vector.shape_cast %67 : vector<1x1x18x4xbf16> to vector<18x4xbf16>
    %69 = arith.extf %68 : vector<18x4xbf16> to vector<18x4xf32>
    %70 = vector.broadcast %61 : f32 to vector<18x4xf32>
    %71 = arith.mulf %70, %69 : vector<18x4xf32>
    %c1_i32_33 = arith.constant 1 : i32
    %72 = arith.addi %57, %c1_i32_33 : i32
    %c0_34 = arith.constant 0 : index
    %73 = arith.index_cast %72 : i32 to index
    %c0_35 = arith.constant 0 : index
    %c0_36 = arith.constant 0 : index
    %74 = vector.load %arg5[%c0_34, %73, %c0_35, %c0_36] : memref<1x9x18x4xbf16, #tpu.memory_space<vmem>>, vector<1x1x18x4xbf16>
    %75 = vector.shape_cast %74 : vector<1x1x18x4xbf16> to vector<18x4xbf16>
    %76 = arith.extf %75 : vector<18x4xbf16> to vector<18x4xf32>
    %77 = vector.broadcast %65 : f32 to vector<18x4xf32>
    %78 = arith.mulf %77, %76 : vector<18x4xf32>
    %79 = arith.addf %71, %78 : vector<18x4xf32>
    %80 = arith.truncf %79 : vector<18x4xf32> to vector<18x4xbf16>
    %c2_37 = arith.constant 2 : index
    %c0_38 = arith.constant 0 : index
    %c0_39 = arith.constant 0 : index
    %81 = vector.load %arg16[%c2_37, %c0_38, %c0_39] : memref<12x18x4xbf16, #tpu.memory_space<vmem>>, vector<1x18x4xbf16>
    %82 = vector.shape_cast %81 : vector<1x18x4xbf16> to vector<18x4xbf16>
    %83 = vector.shape_cast %80 : vector<18x4xbf16> to vector<1x18x4xbf16>
    tpu.vector_store %arg16[%c2_37, %c0_38, %c0_39], %83 {strides = array<i32>} : memref<12x18x4xbf16, #tpu.memory_space<vmem>>, vector<1x18x4xbf16>,
    %84 = arith.index_cast %arg1 : i32 to index
    %c3 = arith.constant 3 : index
    %85 = memref.load %arg2[%84, %c3] : memref<2x12xi32, #tpu.memory_space<smem>>
    %86 = arith.index_cast %arg1 : i32 to index
    %c3_40 = arith.constant 3 : index
    %87 = memref.load %arg3[%86, %c3_40] : memref<2x12xi32, #tpu.memory_space<smem>>
    %88 = arith.sitofp %87 : i32 to f32
    %cst_41 = arith.constant 1.52587891E-5 : f32
    %89 = arith.mulf %88, %cst_41 : f32
    %90 = arith.index_cast %arg1 : i32 to index
    %c3_42 = arith.constant 3 : index
    %91 = memref.load %arg4[%90, %c3_42] : memref<2x12xi32, #tpu.memory_space<smem>>
    %92 = arith.sitofp %91 : i32 to f32
    %cst_43 = arith.constant 1.52587891E-5 : f32
    %93 = arith.mulf %92, %cst_43 : f32
    %c0_44 = arith.constant 0 : index
    %94 = arith.index_cast %85 : i32 to index
    %c0_45 = arith.constant 0 : index
    %c0_46 = arith.constant 0 : index
    %95 = vector.load %arg5[%c0_44, %94, %c0_45, %c0_46] : memref<1x9x18x4xbf16, #tpu.memory_space<vmem>>, vector<1x1x18x4xbf16>
    %96 = vector.shape_cast %95 : vector<1x1x18x4xbf16> to vector<18x4xbf16>
    %97 = arith.extf %96 : vector<18x4xbf16> to vector<18x4xf32>
    %98 = vector.broadcast %89 : f32 to vector<18x4xf32>
    %99 = arith.mulf %98, %97 : vector<18x4xf32>
    %c1_i32_47 = arith.constant 1 : i32
    %100 = arith.addi %85, %c1_i32_47 : i32
    %c0_48 = arith.constant 0 : index
    %101 = arith.index_cast %100 : i32 to index
    %c0_49 = arith.constant 0 : index
    %c0_50 = arith.constant 0 : index
    %102 = vector.load %arg5[%c0_48, %101, %c0_49, %c0_50] : memref<1x9x18x4xbf16, #tpu.memory_space<vmem>>, vector<1x1x18x4xbf16>
    %103 = vector.shape_cast %102 : vector<1x1x18x4xbf16> to vector<18x4xbf16>
    %104 = arith.extf %103 : vector<18x4xbf16> to vector<18x4xf32>
    %105 = vector.broadcast %93 : f32 to vector<18x4xf32>
    %106 = arith.mulf %105, %104 : vector<18x4xf32>
    %107 = arith.addf %99, %106 : vector<18x4xf32>
    %108 = arith.truncf %107 : vector<18x4xf32> to vector<18x4xbf16>
    %c3_51 = arith.constant 3 : index
    %c0_52 = arith.constant 0 : index
    %c0_53 = arith.constant 0 : index
    %109 = vector.load %arg16[%c3_51, %c0_52, %c0_53] : memref<12x18x4xbf16, #tpu.memory_space<vmem>>, vector<1x18x4xbf16>
    %110 = vector.shape_cast %109 : vector<1x18x4xbf16> to vector<18x4xbf16>
    %111 = vector.shape_cast %108 : vector<18x4xbf16> to vector<1x18x4xbf16>
    tpu.vector_store %arg16[%c3_51, %c0_52, %c0_53], %111 {strides = array<i32>} : memref<12x18x4xbf16, #tpu.memory_space<vmem>>, vector<1x18x4xbf16>,
    %112 = arith.index_cast %arg1 : i32 to index
    %c4 = arith.constant 4 : index
    %113 = memref.load %arg2[%112, %c4] : memref<2x12xi32, #tpu.memory_space<smem>>
    %114 = arith.index_cast %arg1 : i32 to index
    %c4_54 = arith.constant 4 : index
    %115 = memref.load %arg3[%114, %c4_54] : memref<2x12xi32, #tpu.memory_space<smem>>
    %116 = arith.sitofp %115 : i32 to f32
    %cst_55 = arith.constant 1.52587891E-5 : f32
    %117 = arith.mulf %116, %cst_55 : f32
    %118 = arith.index_cast %arg1 : i32 to index
    %c4_56 = arith.constant 4 : index
    %119 = memref.load %arg4[%118, %c4_56] : memref<2x12xi32, #tpu.memory_space<smem>>
    %120 = arith.sitofp %119 : i32 to f32
    %cst_57 = arith.constant 1.52587891E-5 : f32
    %121 = arith.mulf %120, %cst_57 : f32
    %c0_58 = arith.constant 0 : index
    %122 = arith.index_cast %113 : i32 to index
    %c0_59 = arith.constant 0 : index
    %c0_60 = arith.constant 0 : index
    %123 = vector.load %arg5[%c0_58, %122, %c0_59, %c0_60] : memref<1x9x18x4xbf16, #tpu.memory_space<vmem>>, vector<1x1x18x4xbf16>
    %124 = vector.shape_cast %123 : vector<1x1x18x4xbf16> to vector<18x4xbf16>
    %125 = arith.extf %124 : vector<18x4xbf16> to vector<18x4xf32>
    %126 = vector.broadcast %117 : f32 to vector<18x4xf32>
    %127 = arith.mulf %126, %125 : vector<18x4xf32>
    %c1_i32_61 = arith.constant 1 : i32
    %128 = arith.addi %113, %c1_i32_61 : i32
    %c0_62 = arith.constant 0 : index
    %129 = arith.index_cast %128 : i32 to index
    %c0_63 = arith.constant 0 : index
    %c0_64 = arith.constant 0 : index
    %130 = vector.load %arg5[%c0_62, %129, %c0_63, %c0_64] : memref<1x9x18x4xbf16, #tpu.memory_space<vmem>>, vector<1x1x18x4xbf16>
    %131 = vector.shape_cast %130 : vector<1x1x18x4xbf16> to vector<18x4xbf16>
    %132 = arith.extf %131 : vector<18x4xbf16> to vector<18x4xf32>
    %133 = vector.broadcast %121 : f32 to vector<18x4xf32>
    %134 = arith.mulf %133, %132 : vector<18x4xf32>
    %135 = arith.addf %127, %134 : vector<18x4xf32>
    %136 = arith.truncf %135 : vector<18x4xf32> to vector<18x4xbf16>
    %c4_65 = arith.constant 4 : index
    %c0_66 = arith.constant 0 : index
    %c0_67 = arith.constant 0 : index
    %137 = vector.load %arg16[%c4_65, %c0_66, %c0_67] : memref<12x18x4xbf16, #tpu.memory_space<vmem>>, vector<1x18x4xbf16>
    %138 = vector.shape_cast %137 : vector<1x18x4xbf16> to vector<18x4xbf16>
    %139 = vector.shape_cast %136 : vector<18x4xbf16> to vector<1x18x4xbf16>
    tpu.vector_store %arg16[%c4_65, %c0_66, %c0_67], %139 {strides = array<i32>} : memref<12x18x4xbf16, #tpu.memory_space<vmem>>, vector<1x18x4xbf16>,
    %140 = arith.index_cast %arg1 : i32 to index
    %c5 = arith.constant 5 : index
    %141 = memref.load %arg2[%140, %c5] : memref<2x12xi32, #tpu.memory_space<smem>>
    %142 = arith.index_cast %arg1 : i32 to index
    %c5_68 = arith.constant 5 : index
    %143 = memref.load %arg3[%142, %c5_68] : memref<2x12xi32, #tpu.memory_space<smem>>
    %144 = arith.sitofp %143 : i32 to f32
    %cst_69 = arith.constant 1.52587891E-5 : f32
    %145 = arith.mulf %144, %cst_69 : f32
    %146 = arith.index_cast %arg1 : i32 to index
    %c5_70 = arith.constant 5 : index
    %147 = memref.load %arg4[%146, %c5_70] : memref<2x12xi32, #tpu.memory_space<smem>>
    %148 = arith.sitofp %147 : i32 to f32
    %cst_71 = arith.constant 1.52587891E-5 : f32
    %149 = arith.mulf %148, %cst_71 : f32
    %c0_72 = arith.constant 0 : index
    %150 = arith.index_cast %141 : i32 to index
    %c0_73 = arith.constant 0 : index
    %c0_74 = arith.constant 0 : index
    %151 = vector.load %arg5[%c0_72, %150, %c0_73, %c0_74] : memref<1x9x18x4xbf16, #tpu.memory_space<vmem>>, vector<1x1x18x4xbf16>
    %152 = vector.shape_cast %151 : vector<1x1x18x4xbf16> to vector<18x4xbf16>
    %153 = arith.extf %152 : vector<18x4xbf16> to vector<18x4xf32>
    %154 = vector.broadcast %145 : f32 to vector<18x4xf32>
    %155 = arith.mulf %154, %153 : vector<18x4xf32>
    %c1_i32_75 = arith.constant 1 : i32
    %156 = arith.addi %141, %c1_i32_75 : i32
    %c0_76 = arith.constant 0 : index
    %157 = arith.index_cast %156 : i32 to index
    %c0_77 = arith.constant 0 : index
    %c0_78 = arith.constant 0 : index
    %158 = vector.load %arg5[%c0_76, %157, %c0_77, %c0_78] : memref<1x9x18x4xbf16, #tpu.memory_space<vmem>>, vector<1x1x18x4xbf16>
    %159 = vector.shape_cast %158 : vector<1x1x18x4xbf16> to vector<18x4xbf16>
    %160 = arith.extf %159 : vector<18x4xbf16> to vector<18x4xf32>
    %161 = vector.broadcast %149 : f32 to vector<18x4xf32>
    %162 = arith.mulf %161, %160 : vector<18x4xf32>
    %163 = arith.addf %155, %162 : vector<18x4xf32>
    %164 = arith.truncf %163 : vector<18x4xf32> to vector<18x4xbf16>
    %c5_79 = arith.constant 5 : index
    %c0_80 = arith.constant 0 : index
    %c0_81 = arith.constant 0 : index
    %165 = vector.load %arg16[%c5_79, %c0_80, %c0_81] : memref<12x18x4xbf16, #tpu.memory_space<vmem>>, vector<1x18x4xbf16>
    %166 = vector.shape_cast %165 : vector<1x18x4xbf16> to vector<18x4xbf16>
    %167 = vector.shape_cast %164 : vector<18x4xbf16> to vector<1x18x4xbf16>
    tpu.vector_store %arg16[%c5_79, %c0_80, %c0_81], %167 {strides = array<i32>} : memref<12x18x4xbf16, #tpu.memory_space<vmem>>, vector<1x18x4xbf16>,
    %168 = arith.index_cast %arg1 : i32 to index
    %c6 = arith.constant 6 : index
    %169 = memref.load %arg2[%168, %c6] : memref<2x12xi32, #tpu.memory_space<smem>>
    %170 = arith.index_cast %arg1 : i32 to index
    %c6_82 = arith.constant 6 : index
    %171 = memref.load %arg3[%170, %c6_82] : memref<2x12xi32, #tpu.memory_space<smem>>
    %172 = arith.sitofp %171 : i32 to f32
    %cst_83 = arith.constant 1.52587891E-5 : f32
    %173 = arith.mulf %172, %cst_83 : f32
    %174 = arith.index_cast %arg1 : i32 to index
    %c6_84 = arith.constant 6 : index
    %175 = memref.load %arg4[%174, %c6_84] : memref<2x12xi32, #tpu.memory_space<smem>>
    %176 = arith.sitofp %175 : i32 to f32
    %cst_85 = arith.constant 1.52587891E-5 : f32
    %177 = arith.mulf %176, %cst_85 : f32
    %c0_86 = arith.constant 0 : index
    %178 = arith.index_cast %169 : i32 to index
    %c0_87 = arith.constant 0 : index
    %c0_88 = arith.constant 0 : index
    %179 = vector.load %arg5[%c0_86, %178, %c0_87, %c0_88] : memref<1x9x18x4xbf16, #tpu.memory_space<vmem>>, vector<1x1x18x4xbf16>
    %180 = vector.shape_cast %179 : vector<1x1x18x4xbf16> to vector<18x4xbf16>
    %181 = arith.extf %180 : vector<18x4xbf16> to vector<18x4xf32>
    %182 = vector.broadcast %173 : f32 to vector<18x4xf32>
    %183 = arith.mulf %182, %181 : vector<18x4xf32>
    %c1_i32_89 = arith.constant 1 : i32
    %184 = arith.addi %169, %c1_i32_89 : i32
    %c0_90 = arith.constant 0 : index
    %185 = arith.index_cast %184 : i32 to index
    %c0_91 = arith.constant 0 : index
    %c0_92 = arith.constant 0 : index
    %186 = vector.load %arg5[%c0_90, %185, %c0_91, %c0_92] : memref<1x9x18x4xbf16, #tpu.memory_space<vmem>>, vector<1x1x18x4xbf16>
    %187 = vector.shape_cast %186 : vector<1x1x18x4xbf16> to vector<18x4xbf16>
    %188 = arith.extf %187 : vector<18x4xbf16> to vector<18x4xf32>
    %189 = vector.broadcast %177 : f32 to vector<18x4xf32>
    %190 = arith.mulf %189, %188 : vector<18x4xf32>
    %191 = arith.addf %183, %190 : vector<18x4xf32>
    %192 = arith.truncf %191 : vector<18x4xf32> to vector<18x4xbf16>
    %c6_93 = arith.constant 6 : index
    %c0_94 = arith.constant 0 : index
    %c0_95 = arith.constant 0 : index
    %193 = vector.load %arg16[%c6_93, %c0_94, %c0_95] : memref<12x18x4xbf16, #tpu.memory_space<vmem>>, vector<1x18x4xbf16>
    %194 = vector.shape_cast %193 : vector<1x18x4xbf16> to vector<18x4xbf16>
    %195 = vector.shape_cast %192 : vector<18x4xbf16> to vector<1x18x4xbf16>
    tpu.vector_store %arg16[%c6_93, %c0_94, %c0_95], %195 {strides = array<i32>} : memref<12x18x4xbf16, #tpu.memory_space<vmem>>, vector<1x18x4xbf16>,
    %196 = arith.index_cast %arg1 : i32 to index
    %c7 = arith.constant 7 : index
    %197 = memref.load %arg2[%196, %c7] : memref<2x12xi32, #tpu.memory_space<smem>>
    %198 = arith.index_cast %arg1 : i32 to index
    %c7_96 = arith.constant 7 : index
    %199 = memref.load %arg3[%198, %c7_96] : memref<2x12xi32, #tpu.memory_space<smem>>
    %200 = arith.sitofp %199 : i32 to f32
    %cst_97 = arith.constant 1.52587891E-5 : f32
    %201 = arith.mulf %200, %cst_97 : f32
    %202 = arith.index_cast %arg1 : i32 to index
    %c7_98 = arith.constant 7 : index
    %203 = memref.load %arg4[%202, %c7_98] : memref<2x12xi32, #tpu.memory_space<smem>>
    %204 = arith.sitofp %203 : i32 to f32
    %cst_99 = arith.constant 1.52587891E-5 : f32
    %205 = arith.mulf %204, %cst_99 : f32
    %c0_100 = arith.constant 0 : index
    %206 = arith.index_cast %197 : i32 to index
    %c0_101 = arith.constant 0 : index
    %c0_102 = arith.constant 0 : index
    %207 = vector.load %arg5[%c0_100, %206, %c0_101, %c0_102] : memref<1x9x18x4xbf16, #tpu.memory_space<vmem>>, vector<1x1x18x4xbf16>
    %208 = vector.shape_cast %207 : vector<1x1x18x4xbf16> to vector<18x4xbf16>
    %209 = arith.extf %208 : vector<18x4xbf16> to vector<18x4xf32>
    %210 = vector.broadcast %201 : f32 to vector<18x4xf32>
    %211 = arith.mulf %210, %209 : vector<18x4xf32>
    %c1_i32_103 = arith.constant 1 : i32
    %212 = arith.addi %197, %c1_i32_103 : i32
    %c0_104 = arith.constant 0 : index
    %213 = arith.index_cast %212 : i32 to index
    %c0_105 = arith.constant 0 : index
    %c0_106 = arith.constant 0 : index
    %214 = vector.load %arg5[%c0_104, %213, %c0_105, %c0_106] : memref<1x9x18x4xbf16, #tpu.memory_space<vmem>>, vector<1x1x18x4xbf16>
    %215 = vector.shape_cast %214 : vector<1x1x18x4xbf16> to vector<18x4xbf16>
    %216 = arith.extf %215 : vector<18x4xbf16> to vector<18x4xf32>
    %217 = vector.broadcast %205 : f32 to vector<18x4xf32>
    %218 = arith.mulf %217, %216 : vector<18x4xf32>
    %219 = arith.addf %211, %218 : vector<18x4xf32>
    %220 = arith.truncf %219 : vector<18x4xf32> to vector<18x4xbf16>
    %c7_107 = arith.constant 7 : index
    %c0_108 = arith.constant 0 : index
    %c0_109 = arith.constant 0 : index
    %221 = vector.load %arg16[%c7_107, %c0_108, %c0_109] : memref<12x18x4xbf16, #tpu.memory_space<vmem>>, vector<1x18x4xbf16>
    %222 = vector.shape_cast %221 : vector<1x18x4xbf16> to vector<18x4xbf16>
    %223 = vector.shape_cast %220 : vector<18x4xbf16> to vector<1x18x4xbf16>
    tpu.vector_store %arg16[%c7_107, %c0_108, %c0_109], %223 {strides = array<i32>} : memref<12x18x4xbf16, #tpu.memory_space<vmem>>, vector<1x18x4xbf16>,
    %224 = arith.index_cast %arg1 : i32 to index
    %c8 = arith.constant 8 : index
    %225 = memref.load %arg2[%224, %c8] : memref<2x12xi32, #tpu.memory_space<smem>>
    %226 = arith.index_cast %arg1 : i32 to index
    %c8_110 = arith.constant 8 : index
    %227 = memref.load %arg3[%226, %c8_110] : memref<2x12xi32, #tpu.memory_space<smem>>
    %228 = arith.sitofp %227 : i32 to f32
    %cst_111 = arith.constant 1.52587891E-5 : f32
    %229 = arith.mulf %228, %cst_111 : f32
    %230 = arith.index_cast %arg1 : i32 to index
    %c8_112 = arith.constant 8 : index
    %231 = memref.load %arg4[%230, %c8_112] : memref<2x12xi32, #tpu.memory_space<smem>>
    %232 = arith.sitofp %231 : i32 to f32
    %cst_113 = arith.constant 1.52587891E-5 : f32
    %233 = arith.mulf %232, %cst_113 : f32
    %c0_114 = arith.constant 0 : index
    %234 = arith.index_cast %225 : i32 to index
    %c0_115 = arith.constant 0 : index
    %c0_116 = arith.constant 0 : index
    %235 = vector.load %arg5[%c0_114, %234, %c0_115, %c0_116] : memref<1x9x18x4xbf16, #tpu.memory_space<vmem>>, vector<1x1x18x4xbf16>
    %236 = vector.shape_cast %235 : vector<1x1x18x4xbf16> to vector<18x4xbf16>
    %237 = arith.extf %236 : vector<18x4xbf16> to vector<18x4xf32>
    %238 = vector.broadcast %229 : f32 to vector<18x4xf32>
    %239 = arith.mulf %238, %237 : vector<18x4xf32>
    %c1_i32_117 = arith.constant 1 : i32
    %240 = arith.addi %225, %c1_i32_117 : i32
    %c0_118 = arith.constant 0 : index
    %241 = arith.index_cast %240 : i32 to index
    %c0_119 = arith.constant 0 : index
    %c0_120 = arith.constant 0 : index
    %242 = vector.load %arg5[%c0_118, %241, %c0_119, %c0_120] : memref<1x9x18x4xbf16, #tpu.memory_space<vmem>>, vector<1x1x18x4xbf16>
    %243 = vector.shape_cast %242 : vector<1x1x18x4xbf16> to vector<18x4xbf16>
    %244 = arith.extf %243 : vector<18x4xbf16> to vector<18x4xf32>
    %245 = vector.broadcast %233 : f32 to vector<18x4xf32>
    %246 = arith.mulf %245, %244 : vector<18x4xf32>
    %247 = arith.addf %239, %246 : vector<18x4xf32>
    %248 = arith.truncf %247 : vector<18x4xf32> to vector<18x4xbf16>
    %c8_121 = arith.constant 8 : index
    %c0_122 = arith.constant 0 : index
    %c0_123 = arith.constant 0 : index
    %249 = vector.load %arg16[%c8_121, %c0_122, %c0_123] : memref<12x18x4xbf16, #tpu.memory_space<vmem>>, vector<1x18x4xbf16>
    %250 = vector.shape_cast %249 : vector<1x18x4xbf16> to vector<18x4xbf16>
    %251 = vector.shape_cast %248 : vector<18x4xbf16> to vector<1x18x4xbf16>
    tpu.vector_store %arg16[%c8_121, %c0_122, %c0_123], %251 {strides = array<i32>} : memref<12x18x4xbf16, #tpu.memory_space<vmem>>, vector<1x18x4xbf16>,
    %252 = arith.index_cast %arg1 : i32 to index
    %c9 = arith.constant 9 : index
    %253 = memref.load %arg2[%252, %c9] : memref<2x12xi32, #tpu.memory_space<smem>>
    %254 = arith.index_cast %arg1 : i32 to index
    %c9_124 = arith.constant 9 : index
    %255 = memref.load %arg3[%254, %c9_124] : memref<2x12xi32, #tpu.memory_space<smem>>
    %256 = arith.sitofp %255 : i32 to f32
    %cst_125 = arith.constant 1.52587891E-5 : f32
    %257 = arith.mulf %256, %cst_125 : f32
    %258 = arith.index_cast %arg1 : i32 to index
    %c9_126 = arith.constant 9 : index
    %259 = memref.load %arg4[%258, %c9_126] : memref<2x12xi32, #tpu.memory_space<smem>>
    %260 = arith.sitofp %259 : i32 to f32
    %cst_127 = arith.constant 1.52587891E-5 : f32
    %261 = arith.mulf %260, %cst_127 : f32
    %c0_128 = arith.constant 0 : index
    %262 = arith.index_cast %253 : i32 to index
    %c0_129 = arith.constant 0 : index
    %c0_130 = arith.constant 0 : index
    %263 = vector.load %arg5[%c0_128, %262, %c0_129, %c0_130] : memref<1x9x18x4xbf16, #tpu.memory_space<vmem>>, vector<1x1x18x4xbf16>
    %264 = vector.shape_cast %263 : vector<1x1x18x4xbf16> to vector<18x4xbf16>
    %265 = arith.extf %264 : vector<18x4xbf16> to vector<18x4xf32>
    %266 = vector.broadcast %257 : f32 to vector<18x4xf32>
    %267 = arith.mulf %266, %265 : vector<18x4xf32>
    %c1_i32_131 = arith.constant 1 : i32
    %268 = arith.addi %253, %c1_i32_131 : i32
    %c0_132 = arith.constant 0 : index
    %269 = arith.index_cast %268 : i32 to index
    %c0_133 = arith.constant 0 : index
    %c0_134 = arith.constant 0 : index
    %270 = vector.load %arg5[%c0_132, %269, %c0_133, %c0_134] : memref<1x9x18x4xbf16, #tpu.memory_space<vmem>>, vector<1x1x18x4xbf16>
    %271 = vector.shape_cast %270 : vector<1x1x18x4xbf16> to vector<18x4xbf16>
    %272 = arith.extf %271 : vector<18x4xbf16> to vector<18x4xf32>
    %273 = vector.broadcast %261 : f32 to vector<18x4xf32>
    %274 = arith.mulf %273, %272 : vector<18x4xf32>
    %275 = arith.addf %267, %274 : vector<18x4xf32>
    %276 = arith.truncf %275 : vector<18x4xf32> to vector<18x4xbf16>
    %c9_135 = arith.constant 9 : index
    %c0_136 = arith.constant 0 : index
    %c0_137 = arith.constant 0 : index
    %277 = vector.load %arg16[%c9_135, %c0_136, %c0_137] : memref<12x18x4xbf16, #tpu.memory_space<vmem>>, vector<1x18x4xbf16>
    %278 = vector.shape_cast %277 : vector<1x18x4xbf16> to vector<18x4xbf16>
    %279 = vector.shape_cast %276 : vector<18x4xbf16> to vector<1x18x4xbf16>
    tpu.vector_store %arg16[%c9_135, %c0_136, %c0_137], %279 {strides = array<i32>} : memref<12x18x4xbf16, #tpu.memory_space<vmem>>, vector<1x18x4xbf16>,
    %280 = arith.index_cast %arg1 : i32 to index
    %c10 = arith.constant 10 : index
    %281 = memref.load %arg2[%280, %c10] : memref<2x12xi32, #tpu.memory_space<smem>>
    %282 = arith.index_cast %arg1 : i32 to index
    %c10_138 = arith.constant 10 : index
    %283 = memref.load %arg3[%282, %c10_138] : memref<2x12xi32, #tpu.memory_space<smem>>
    %284 = arith.sitofp %283 : i32 to f32
    %cst_139 = arith.constant 1.52587891E-5 : f32
    %285 = arith.mulf %284, %cst_139 : f32
    %286 = arith.index_cast %arg1 : i32 to index
    %c10_140 = arith.constant 10 : index
    %287 = memref.load %arg4[%286, %c10_140] : memref<2x12xi32, #tpu.memory_space<smem>>
    %288 = arith.sitofp %287 : i32 to f32
    %cst_141 = arith.constant 1.52587891E-5 : f32
    %289 = arith.mulf %288, %cst_141 : f32
    %c0_142 = arith.constant 0 : index
    %290 = arith.index_cast %281 : i32 to index
    %c0_143 = arith.constant 0 : index
    %c0_144 = arith.constant 0 : index
    %291 = vector.load %arg5[%c0_142, %290, %c0_143, %c0_144] : memref<1x9x18x4xbf16, #tpu.memory_space<vmem>>, vector<1x1x18x4xbf16>
    %292 = vector.shape_cast %291 : vector<1x1x18x4xbf16> to vector<18x4xbf16>
    %293 = arith.extf %292 : vector<18x4xbf16> to vector<18x4xf32>
    %294 = vector.broadcast %285 : f32 to vector<18x4xf32>
    %295 = arith.mulf %294, %293 : vector<18x4xf32>
    %c1_i32_145 = arith.constant 1 : i32
    %296 = arith.addi %281, %c1_i32_145 : i32
    %c0_146 = arith.constant 0 : index
    %297 = arith.index_cast %296 : i32 to index
    %c0_147 = arith.constant 0 : index
    %c0_148 = arith.constant 0 : index
    %298 = vector.load %arg5[%c0_146, %297, %c0_147, %c0_148] : memref<1x9x18x4xbf16, #tpu.memory_space<vmem>>, vector<1x1x18x4xbf16>
    %299 = vector.shape_cast %298 : vector<1x1x18x4xbf16> to vector<18x4xbf16>
    %300 = arith.extf %299 : vector<18x4xbf16> to vector<18x4xf32>
    %301 = vector.broadcast %289 : f32 to vector<18x4xf32>
    %302 = arith.mulf %301, %300 : vector<18x4xf32>
    %303 = arith.addf %295, %302 : vector<18x4xf32>
    %304 = arith.truncf %303 : vector<18x4xf32> to vector<18x4xbf16>
    %c10_149 = arith.constant 10 : index
    %c0_150 = arith.constant 0 : index
    %c0_151 = arith.constant 0 : index
    %305 = vector.load %arg16[%c10_149, %c0_150, %c0_151] : memref<12x18x4xbf16, #tpu.memory_space<vmem>>, vector<1x18x4xbf16>
    %306 = vector.shape_cast %305 : vector<1x18x4xbf16> to vector<18x4xbf16>
    %307 = vector.shape_cast %304 : vector<18x4xbf16> to vector<1x18x4xbf16>
    tpu.vector_store %arg16[%c10_149, %c0_150, %c0_151], %307 {strides = array<i32>} : memref<12x18x4xbf16, #tpu.memory_space<vmem>>, vector<1x18x4xbf16>,
    %308 = arith.index_cast %arg1 : i32 to index
    %c11 = arith.constant 11 : index
    %309 = memref.load %arg2[%308, %c11] : memref<2x12xi32, #tpu.memory_space<smem>>
    %310 = arith.index_cast %arg1 : i32 to index
    %c11_152 = arith.constant 11 : index
    %311 = memref.load %arg3[%310, %c11_152] : memref<2x12xi32, #tpu.memory_space<smem>>
    %312 = arith.sitofp %311 : i32 to f32
    %cst_153 = arith.constant 1.52587891E-5 : f32
    %313 = arith.mulf %312, %cst_153 : f32
    %314 = arith.index_cast %arg1 : i32 to index
    %c11_154 = arith.constant 11 : index
    %315 = memref.load %arg4[%314, %c11_154] : memref<2x12xi32, #tpu.memory_space<smem>>
    %316 = arith.sitofp %315 : i32 to f32
    %cst_155 = arith.constant 1.52587891E-5 : f32
    %317 = arith.mulf %316, %cst_155 : f32
    %c0_156 = arith.constant 0 : index
    %318 = arith.index_cast %309 : i32 to index
    %c0_157 = arith.constant 0 : index
    %c0_158 = arith.constant 0 : index
    %319 = vector.load %arg5[%c0_156, %318, %c0_157, %c0_158] : memref<1x9x18x4xbf16, #tpu.memory_space<vmem>>, vector<1x1x18x4xbf16>
    %320 = vector.shape_cast %319 : vector<1x1x18x4xbf16> to vector<18x4xbf16>
    %321 = arith.extf %320 : vector<18x4xbf16> to vector<18x4xf32>
    %322 = vector.broadcast %313 : f32 to vector<18x4xf32>
    %323 = arith.mulf %322, %321 : vector<18x4xf32>
    %c1_i32_159 = arith.constant 1 : i32
    %324 = arith.addi %309, %c1_i32_159 : i32
    %c0_160 = arith.constant 0 : index
    %325 = arith.index_cast %324 : i32 to index
    %c0_161 = arith.constant 0 : index
    %c0_162 = arith.constant 0 : index
    %326 = vector.load %arg5[%c0_160, %325, %c0_161, %c0_162] : memref<1x9x18x4xbf16, #tpu.memory_space<vmem>>, vector<1x1x18x4xbf16>
    %327 = vector.shape_cast %326 : vector<1x1x18x4xbf16> to vector<18x4xbf16>
    %328 = arith.extf %327 : vector<18x4xbf16> to vector<18x4xf32>
    %329 = vector.broadcast %317 : f32 to vector<18x4xf32>
    %330 = arith.mulf %329, %328 : vector<18x4xf32>
    %331 = arith.addf %323, %330 : vector<18x4xf32>
    %332 = arith.truncf %331 : vector<18x4xf32> to vector<18x4xbf16>
    %c11_163 = arith.constant 11 : index
    %c0_164 = arith.constant 0 : index
    %c0_165 = arith.constant 0 : index
    %333 = vector.load %arg16[%c11_163, %c0_164, %c0_165] : memref<12x18x4xbf16, #tpu.memory_space<vmem>>, vector<1x18x4xbf16>
    %334 = vector.shape_cast %333 : vector<1x18x4xbf16> to vector<18x4xbf16>
    %335 = vector.shape_cast %332 : vector<18x4xbf16> to vector<1x18x4xbf16>
    tpu.vector_store %arg16[%c11_163, %c0_164, %c0_165], %335 {strides = array<i32>} : memref<12x18x4xbf16, #tpu.memory_space<vmem>>, vector<1x18x4xbf16>,
    %c0_166 = arith.constant 0 : index
    %c0_167 = arith.constant 0 : index
    %c0_168 = arith.constant 0 : index
    %c0_169 = arith.constant 0 : index
    %336 = vector.load %arg7[%c0_166, %c0_167, %c0_168, %c0_169] : memref<1x4x18x4xbf16, #tpu.memory_space<vmem>>, vector<1x4x18x4xbf16>
    %337 = vector.shape_cast %336 : vector<1x4x18x4xbf16> to vector<4x18x4xbf16>
    %338 = vector.extract_strided_slice %337 {offsets = [0, 0, 0], sizes = [2, 18, 4], strides = [1, 1, 1]} : vector<4x18x4xbf16> to vector<2x18x4xbf16>
    %c0_170 = arith.constant 0 : index
    %c0_171 = arith.constant 0 : index
    %c0_172 = arith.constant 0 : index
    %c0_173 = arith.constant 0 : index
    %339 = vector.load %arg6[%c0_170, %c0_171, %c0_172, %c0_173] : memref<1x8x18x4xbf16, #tpu.memory_space<vmem>>, vector<1x8x18x4xbf16>
    %340 = vector.shape_cast %339 : vector<1x8x18x4xbf16> to vector<8x18x4xbf16>
    %341 = vector.extract_strided_slice %337 {offsets = [2, 0, 0], sizes = [2, 18, 4], strides = [1, 1, 1]} : vector<4x18x4xbf16> to vector<2x18x4xbf16>
    %342 = tpu.concatenate %338, %340, %341 in 0 : vector<2x18x4xbf16>, vector<8x18x4xbf16>, vector<2x18x4xbf16> -> vector<12x18x4xbf16>
    %c0_174 = arith.constant 0 : index
    %c0_175 = arith.constant 0 : index
    %c0_176 = arith.constant 0 : index
    %343 = vector.load %arg16[%c0_174, %c0_175, %c0_176] : memref<12x18x4xbf16, #tpu.memory_space<vmem>>, vector<12x18x4xbf16>
    %344 = vector.extract_strided_slice %343 {offsets = [0, 0, 0], sizes = [12, 16, 4], strides = [1, 1, 1]} : vector<12x18x4xbf16> to vector<12x16x4xbf16>
    %345 = vector.extract_strided_slice %343 {offsets = [0, 1, 0], sizes = [12, 16, 4], strides = [1, 1, 1]} : vector<12x18x4xbf16> to vector<12x16x4xbf16>
    %346 = vector.extract_strided_slice %343 {offsets = [0, 2, 0], sizes = [12, 16, 4], strides = [1, 1, 1]} : vector<12x18x4xbf16> to vector<12x16x4xbf16>
    %347 = tpu.concatenate %344, %345, %346 in 2 : vector<12x16x4xbf16>, vector<12x16x4xbf16>, vector<12x16x4xbf16> -> vector<12x16x12xbf16>
    %cst_177 = arith.constant 0.000000e+00 : f32
    %348 = vector.broadcast %cst_177 : f32 to vector<160x128xf32>
    %349 = vector.extract_strided_slice %347 {offsets = [0, 0, 0], sizes = [10, 16, 12], strides = [1, 1, 1]} : vector<12x16x12xbf16> to vector<10x16x12xbf16>
    %350 = vector.shape_cast %349 : vector<10x16x12xbf16> to vector<160x12xbf16>
    %c0_178 = arith.constant 0 : index
    %c0_179 = arith.constant 0 : index
    %c0_180 = arith.constant 0 : index
    %351 = vector.load %arg8[%c0_178, %c0_179, %c0_180] : memref<3x12x128xbf16, #tpu.memory_space<vmem>>, vector<1x12x128xbf16>
    %352 = vector.shape_cast %351 : vector<1x12x128xbf16> to vector<12x128xbf16>
    %cst_181 = arith.constant dense<0.000000e+00> : vector<160x128xf32>
    %353 = tpu.matmul %350, %352, %cst_181 {dimension_numbers = #tpu.dot_dimension_numbers<[1], [0], [0], [1], [0, 0, 1, 1], [], []>} : vector<160x12xbf16>, vector<12x128xbf16>, vector<160x128xf32> -> vector<160x128xf32>
    %354 = arith.addf %348, %353 : vector<160x128xf32>
    %355 = vector.extract_strided_slice %347 {offsets = [1, 0, 0], sizes = [10, 16, 12], strides = [1, 1, 1]} : vector<12x16x12xbf16> to vector<10x16x12xbf16>
    %356 = vector.shape_cast %355 : vector<10x16x12xbf16> to vector<160x12xbf16>
    %c1_182 = arith.constant 1 : index
    %c0_183 = arith.constant 0 : index
    %c0_184 = arith.constant 0 : index
    %357 = vector.load %arg8[%c1_182, %c0_183, %c0_184] : memref<3x12x128xbf16, #tpu.memory_space<vmem>>, vector<1x12x128xbf16>
    %358 = vector.shape_cast %357 : vector<1x12x128xbf16> to vector<12x128xbf16>
    %cst_185 = arith.constant dense<0.000000e+00> : vector<160x128xf32>
    %359 = tpu.matmul %356, %358, %cst_185 {dimension_numbers = #tpu.dot_dimension_numbers<[1], [0], [0], [1], [0, 0, 1, 1], [], []>} : vector<160x12xbf16>, vector<12x128xbf16>, vector<160x128xf32> -> vector<160x128xf32>
    %360 = arith.addf %354, %359 : vector<160x128xf32>
    %361 = vector.extract_strided_slice %347 {offsets = [2, 0, 0], sizes = [10, 16, 12], strides = [1, 1, 1]} : vector<12x16x12xbf16> to vector<10x16x12xbf16>
    %362 = vector.shape_cast %361 : vector<10x16x12xbf16> to vector<160x12xbf16>
    %c2_186 = arith.constant 2 : index
    %c0_187 = arith.constant 0 : index
    %c0_188 = arith.constant 0 : index
    %363 = vector.load %arg8[%c2_186, %c0_187, %c0_188] : memref<3x12x128xbf16, #tpu.memory_space<vmem>>, vector<1x12x128xbf16>
    %364 = vector.shape_cast %363 : vector<1x12x128xbf16> to vector<12x128xbf16>
    %cst_189 = arith.constant dense<0.000000e+00> : vector<160x128xf32>
    %365 = tpu.matmul %362, %364, %cst_189 {dimension_numbers = #tpu.dot_dimension_numbers<[1], [0], [0], [1], [0, 0, 1, 1], [], []>} : vector<160x12xbf16>, vector<12x128xbf16>, vector<160x128xf32> -> vector<160x128xf32>
    %366 = arith.addf %360, %365 : vector<160x128xf32>
    %367 = vector.extract_strided_slice %342 {offsets = [0, 0, 0], sizes = [12, 16, 4], strides = [1, 1, 1]} : vector<12x18x4xbf16> to vector<12x16x4xbf16>
    %368 = vector.extract_strided_slice %342 {offsets = [0, 1, 0], sizes = [12, 16, 4], strides = [1, 1, 1]} : vector<12x18x4xbf16> to vector<12x16x4xbf16>
    %369 = vector.extract_strided_slice %342 {offsets = [0, 2, 0], sizes = [12, 16, 4], strides = [1, 1, 1]} : vector<12x18x4xbf16> to vector<12x16x4xbf16>
    %370 = tpu.concatenate %367, %368, %369 in 2 : vector<12x16x4xbf16>, vector<12x16x4xbf16>, vector<12x16x4xbf16> -> vector<12x16x12xbf16>
    %cst_190 = arith.constant 0.000000e+00 : f32
    %371 = vector.broadcast %cst_190 : f32 to vector<160x128xf32>
    %372 = vector.extract_strided_slice %370 {offsets = [0, 0, 0], sizes = [10, 16, 12], strides = [1, 1, 1]} : vector<12x16x12xbf16> to vector<10x16x12xbf16>
    %373 = vector.shape_cast %372 : vector<10x16x12xbf16> to vector<160x12xbf16>
    %c0_191 = arith.constant 0 : index
    %c0_192 = arith.constant 0 : index
    %c0_193 = arith.constant 0 : index
    %374 = vector.load %arg9[%c0_191, %c0_192, %c0_193] : memref<3x12x128xbf16, #tpu.memory_space<vmem>>, vector<1x12x128xbf16>
    %375 = vector.shape_cast %374 : vector<1x12x128xbf16> to vector<12x128xbf16>
    %cst_194 = arith.constant dense<0.000000e+00> : vector<160x128xf32>
    %376 = tpu.matmul %373, %375, %cst_194 {dimension_numbers = #tpu.dot_dimension_numbers<[1], [0], [0], [1], [0, 0, 1, 1], [], []>} : vector<160x12xbf16>, vector<12x128xbf16>, vector<160x128xf32> -> vector<160x128xf32>
    %377 = arith.addf %371, %376 : vector<160x128xf32>
    %378 = vector.extract_strided_slice %370 {offsets = [1, 0, 0], sizes = [10, 16, 12], strides = [1, 1, 1]} : vector<12x16x12xbf16> to vector<10x16x12xbf16>
    %379 = vector.shape_cast %378 : vector<10x16x12xbf16> to vector<160x12xbf16>
    %c1_195 = arith.constant 1 : index
    %c0_196 = arith.constant 0 : index
    %c0_197 = arith.constant 0 : index
    %380 = vector.load %arg9[%c1_195, %c0_196, %c0_197] : memref<3x12x128xbf16, #tpu.memory_space<vmem>>, vector<1x12x128xbf16>
    %381 = vector.shape_cast %380 : vector<1x12x128xbf16> to vector<12x128xbf16>
    %cst_198 = arith.constant dense<0.000000e+00> : vector<160x128xf32>
    %382 = tpu.matmul %379, %381, %cst_198 {dimension_numbers = #tpu.dot_dimension_numbers<[1], [0], [0], [1], [0, 0, 1, 1], [], []>} : vector<160x12xbf16>, vector<12x128xbf16>, vector<160x128xf32> -> vector<160x128xf32>
    %383 = arith.addf %377, %382 : vector<160x128xf32>
    %384 = vector.extract_strided_slice %370 {offsets = [2, 0, 0], sizes = [10, 16, 12], strides = [1, 1, 1]} : vector<12x16x12xbf16> to vector<10x16x12xbf16>
    %385 = vector.shape_cast %384 : vector<10x16x12xbf16> to vector<160x12xbf16>
    %c2_199 = arith.constant 2 : index
    %c0_200 = arith.constant 0 : index
    %c0_201 = arith.constant 0 : index
    %386 = vector.load %arg9[%c2_199, %c0_200, %c0_201] : memref<3x12x128xbf16, #tpu.memory_space<vmem>>, vector<1x12x128xbf16>
    %387 = vector.shape_cast %386 : vector<1x12x128xbf16> to vector<12x128xbf16>
    %cst_202 = arith.constant dense<0.000000e+00> : vector<160x128xf32>
    %388 = tpu.matmul %385, %387, %cst_202 {dimension_numbers = #tpu.dot_dimension_numbers<[1], [0], [0], [1], [0, 0, 1, 1], [], []>} : vector<160x12xbf16>, vector<12x128xbf16>, vector<160x128xf32> -> vector<160x128xf32>
    %389 = arith.addf %383, %388 : vector<160x128xf32>
    %390 = arith.addf %366, %389 : vector<160x128xf32>
    %c0_203 = arith.constant 0 : index
    %c0_204 = arith.constant 0 : index
    %391 = vector.load %arg11[%c0_203, %c0_204] : memref<1x128xf32, #tpu.memory_space<vmem>>, vector<1x128xf32>
    %392 = vector.broadcast %391 : vector<1x128xf32> to vector<160x128xf32>
    %393 = arith.mulf %390, %392 : vector<160x128xf32>
    %c0_205 = arith.constant 0 : index
    %c0_206 = arith.constant 0 : index
    %394 = vector.load %arg12[%c0_205, %c0_206] : memref<1x128xf32, #tpu.memory_space<vmem>>, vector<1x128xf32>
    %395 = vector.broadcast %394 : vector<1x128xf32> to vector<160x128xf32>
    %396 = arith.addf %393, %395 : vector<160x128xf32>
    %cst_207 = arith.constant 0.000000e+00 : f32
    %397 = vector.broadcast %cst_207 : f32 to vector<160x128xf32>
    %398 = arith.cmpf oge, %396, %397 : vector<160x128xf32>
    %cst_208 = arith.constant 0.00999999977 : f32
    %399 = vector.broadcast %cst_208 : f32 to vector<160x128xf32>
    %400 = arith.mulf %399, %396 : vector<160x128xf32>
    %401 = arith.select %398, %396, %400 : vector<160x128xi1>, vector<160x128xf32>
    %402 = arith.truncf %401 : vector<160x128xf32> to vector<160x128xbf16>
    %403 = vector.shape_cast %402 : vector<160x128xbf16> to vector<10x16x128xbf16>
    %404 = tpu.iota {dimensions = array<i32: 0>} : vector<10x1x1xi32>
    %c0_i32 = arith.constant 0 : i32
    %405 = arith.cmpi eq, %arg1, %c0_i32 : i32
    %c0_i32_209 = arith.constant 0 : i32
    %406 = vector.broadcast %c0_i32_209 : i32 to vector<10x1x1xi32>
    %407 = arith.cmpi eq, %404, %406 : vector<10x1x1xi32>
    %408 = vector.broadcast %405 : i1 to vector<10x1x1xi1>
    %409 = arith.andi %408, %407 : vector<10x1x1xi1>
    %c1_i32_210 = arith.constant 1 : i32
    %410 = arith.cmpi eq, %arg1, %c1_i32_210 : i32
    %c9_i32 = arith.constant 9 : i32
    %411 = vector.broadcast %c9_i32 : i32 to vector<10x1x1xi32>
    %412 = arith.cmpi eq, %404, %411 : vector<10x1x1xi32>
    %413 = vector.broadcast %410 : i1 to vector<10x1x1xi1>
    %414 = arith.andi %413, %412 : vector<10x1x1xi1>
    %415 = arith.ori %409, %414 : vector<10x1x1xi1>
    %cst_211 = arith.constant 0.000000e+00 : bf16
    %416 = vector.broadcast %cst_211 : bf16 to vector<10x16x128xbf16>
    %417 = vector.shape_cast %415 : vector<10x1x1xi1> to vector<10x1x1xi1>
    %418 = vector.broadcast %417 : vector<10x1x1xi1> to vector<10x16x128xi1>
    %419 = arith.select %418, %416, %403 : vector<10x16x128xi1>, vector<10x16x128xbf16>
    %cst_212 = arith.constant 0.000000e+00 : bf16
    %420 = vector.broadcast %cst_212 : bf16 to vector<10x1x128xbf16>
    %421 = tpu.concatenate %420, %419, %420 in 1 : vector<10x1x128xbf16>, vector<10x16x128xbf16>, vector<10x1x128xbf16> -> vector<10x18x128xbf16>
    %422 = vector.extract_strided_slice %421 {offsets = [0, 0, 0], sizes = [10, 16, 128], strides = [1, 1, 1]} : vector<10x18x128xbf16> to vector<10x16x128xbf16>
    %423 = vector.extract_strided_slice %421 {offsets = [0, 1, 0], sizes = [10, 16, 128], strides = [1, 1, 1]} : vector<10x18x128xbf16> to vector<10x16x128xbf16>
    %424 = vector.extract_strided_slice %421 {offsets = [0, 2, 0], sizes = [10, 16, 128], strides = [1, 1, 1]} : vector<10x18x128xbf16> to vector<10x16x128xbf16>
    %425 = tpu.concatenate %422, %423, %424 in 2 : vector<10x16x128xbf16>, vector<10x16x128xbf16>, vector<10x16x128xbf16> -> vector<10x16x384xbf16>
    %cst_213 = arith.constant 0.000000e+00 : f32
    %426 = vector.broadcast %cst_213 : f32 to vector<128x128xf32>
    %427 = vector.extract_strided_slice %425 {offsets = [0, 0, 0], sizes = [8, 16, 384], strides = [1, 1, 1]} : vector<10x16x384xbf16> to vector<8x16x384xbf16>
    %428 = vector.shape_cast %427 : vector<8x16x384xbf16> to vector<128x384xbf16>
    %c0_214 = arith.constant 0 : index
    %c0_215 = arith.constant 0 : index
    %c0_216 = arith.constant 0 : index
    %429 = vector.load %arg10[%c0_214, %c0_215, %c0_216] : memref<3x384x128xbf16, #tpu.memory_space<vmem>>, vector<1x384x128xbf16>
    %430 = vector.shape_cast %429 : vector<1x384x128xbf16> to vector<384x128xbf16>
    %cst_217 = arith.constant dense<0.000000e+00> : vector<128x128xf32>
    %431 = tpu.matmul %428, %430, %cst_217 {dimension_numbers = #tpu.dot_dimension_numbers<[1], [0], [0], [1], [0, 0, 1, 1], [], []>} : vector<128x384xbf16>, vector<384x128xbf16>, vector<128x128xf32> -> vector<128x128xf32>
    %432 = arith.addf %426, %431 : vector<128x128xf32>
    %433 = vector.extract_strided_slice %425 {offsets = [1, 0, 0], sizes = [8, 16, 384], strides = [1, 1, 1]} : vector<10x16x384xbf16> to vector<8x16x384xbf16>
    %434 = vector.shape_cast %433 : vector<8x16x384xbf16> to vector<128x384xbf16>
    %c1_218 = arith.constant 1 : index
    %c0_219 = arith.constant 0 : index
    %c0_220 = arith.constant 0 : index
    %435 = vector.load %arg10[%c1_218, %c0_219, %c0_220] : memref<3x384x128xbf16, #tpu.memory_space<vmem>>, vector<1x384x128xbf16>
    %436 = vector.shape_cast %435 : vector<1x384x128xbf16> to vector<384x128xbf16>
    %cst_221 = arith.constant dense<0.000000e+00> : vector<128x128xf32>
    %437 = tpu.matmul %434, %436, %cst_221 {dimension_numbers = #tpu.dot_dimension_numbers<[1], [0], [0], [1], [0, 0, 1, 1], [], []>} : vector<128x384xbf16>, vector<384x128xbf16>, vector<128x128xf32> -> vector<128x128xf32>
    %438 = arith.addf %432, %437 : vector<128x128xf32>
    %439 = vector.extract_strided_slice %425 {offsets = [2, 0, 0], sizes = [8, 16, 384], strides = [1, 1, 1]} : vector<10x16x384xbf16> to vector<8x16x384xbf16>
    %440 = vector.shape_cast %439 : vector<8x16x384xbf16> to vector<128x384xbf16>
    %c2_222 = arith.constant 2 : index
    %c0_223 = arith.constant 0 : index
    %c0_224 = arith.constant 0 : index
    %441 = vector.load %arg10[%c2_222, %c0_223, %c0_224] : memref<3x384x128xbf16, #tpu.memory_space<vmem>>, vector<1x384x128xbf16>
    %442 = vector.shape_cast %441 : vector<1x384x128xbf16> to vector<384x128xbf16>
    %cst_225 = arith.constant dense<0.000000e+00> : vector<128x128xf32>
    %443 = tpu.matmul %440, %442, %cst_225 {dimension_numbers = #tpu.dot_dimension_numbers<[1], [0], [0], [1], [0, 0, 1, 1], [], []>} : vector<128x384xbf16>, vector<384x128xbf16>, vector<128x128xf32> -> vector<128x128xf32>
    %444 = arith.addf %438, %443 : vector<128x128xf32>
    %c0_226 = arith.constant 0 : index
    %c0_227 = arith.constant 0 : index
    %445 = vector.load %arg13[%c0_226, %c0_227] : memref<1x128xf32, #tpu.memory_space<vmem>>, vector<1x128xf32>
    %446 = vector.broadcast %445 : vector<1x128xf32> to vector<128x128xf32>
    %447 = arith.mulf %444, %446 : vector<128x128xf32>
    %c0_228 = arith.constant 0 : index
    %c0_229 = arith.constant 0 : index
    %448 = vector.load %arg14[%c0_228, %c0_229] : memref<1x128xf32, #tpu.memory_space<vmem>>, vector<1x128xf32>
    %449 = vector.broadcast %448 : vector<1x128xf32> to vector<128x128xf32>
    %450 = arith.addf %447, %449 : vector<128x128xf32>
    %cst_230 = arith.constant 0.000000e+00 : f32
    %451 = vector.broadcast %cst_230 : f32 to vector<128x128xf32>
    %452 = arith.cmpf oge, %450, %451 : vector<128x128xf32>
    %cst_231 = arith.constant 0.00999999977 : f32
    %453 = vector.broadcast %cst_231 : f32 to vector<128x128xf32>
    %454 = arith.mulf %453, %450 : vector<128x128xf32>
    %455 = arith.select %452, %450, %454 : vector<128x128xi1>, vector<128x128xf32>
    %456 = vector.shape_cast %455 : vector<128x128xf32> to vector<1x8x16x128xf32>
    %457 = arith.truncf %456 : vector<1x8x16x128xf32> to vector<1x8x16x128xbf16>
    %c0_232 = arith.constant 0 : index
    %c0_233 = arith.constant 0 : index
    %c0_234 = arith.constant 0 : index
    %c0_235 = arith.constant 0 : index
    %458 = vector.load %arg15[%c0_232, %c0_233, %c0_234, %c0_235] : memref<1x8x16x128xbf16, #tpu.memory_space<vmem>>, vector<1x8x16x128xbf16>
    tpu.vector_store %arg15[%c0_232, %c0_233, %c0_234, %c0_235], %457 {strides = array<i32>} : memref<1x8x16x128xbf16, #tpu.memory_space<vmem>>, vector<1x8x16x128xbf16>,
    return
  }
  func.func @transform_0(%arg0: i32, %arg1: i32, %arg2: memref<2x12xi32, #tpu.memory_space<smem>>, %arg3: memref<2x12xi32, #tpu.memory_space<smem>>, %arg4: memref<2x12xi32, #tpu.memory_space<smem>>) -> (i32, i32, i32, i32) {
    %c0_i32 = arith.constant 0 : i32
    %c0_i32_0 = arith.constant 0 : i32
    %c0_i32_1 = arith.constant 0 : i32
    %c0_i32_2 = arith.constant 0 : i32
    return %arg0, %c0_i32, %c0_i32_0, %c0_i32_1 : i32, i32, i32, i32
  }
  func.func @transform_1(%arg0: i32, %arg1: i32, %arg2: memref<2x12xi32, #tpu.memory_space<smem>>, %arg3: memref<2x12xi32, #tpu.memory_space<smem>>, %arg4: memref<2x12xi32, #tpu.memory_space<smem>>) -> (i32, i32, i32, i32) {
    %c0_i32 = arith.constant 0 : i32
    %c0_i32_0 = arith.constant 0 : i32
    %c0_i32_1 = arith.constant 0 : i32
    return %arg0, %arg1, %c0_i32, %c0_i32_0 : i32, i32, i32, i32
  }
  func.func @transform_2(%arg0: i32, %arg1: i32, %arg2: memref<2x12xi32, #tpu.memory_space<smem>>, %arg3: memref<2x12xi32, #tpu.memory_space<smem>>, %arg4: memref<2x12xi32, #tpu.memory_space<smem>>) -> (i32, i32, i32, i32) {
    %c0_i32 = arith.constant 0 : i32
    %c0_i32_0 = arith.constant 0 : i32
    %c0_i32_1 = arith.constant 0 : i32
    return %arg0, %arg1, %c0_i32, %c0_i32_0 : i32, i32, i32, i32
  }
  func.func @transform_3(%arg0: i32, %arg1: i32, %arg2: memref<2x12xi32, #tpu.memory_space<smem>>, %arg3: memref<2x12xi32, #tpu.memory_space<smem>>, %arg4: memref<2x12xi32, #tpu.memory_space<smem>>) -> (i32, i32, i32) {
    %c0_i32 = arith.constant 0 : i32
    %c0_i32_0 = arith.constant 0 : i32
    %c0_i32_1 = arith.constant 0 : i32
    %c0_i32_2 = arith.constant 0 : i32
    return %c0_i32, %c0_i32_0, %c0_i32_1 : i32, i32, i32
  }
  func.func @transform_4(%arg0: i32, %arg1: i32, %arg2: memref<2x12xi32, #tpu.memory_space<smem>>, %arg3: memref<2x12xi32, #tpu.memory_space<smem>>, %arg4: memref<2x12xi32, #tpu.memory_space<smem>>) -> (i32, i32, i32) {
    %c0_i32 = arith.constant 0 : i32
    %c0_i32_0 = arith.constant 0 : i32
    %c0_i32_1 = arith.constant 0 : i32
    %c0_i32_2 = arith.constant 0 : i32
    return %c0_i32, %c0_i32_0, %c0_i32_1 : i32, i32, i32
  }
  func.func @transform_5(%arg0: i32, %arg1: i32, %arg2: memref<2x12xi32, #tpu.memory_space<smem>>, %arg3: memref<2x12xi32, #tpu.memory_space<smem>>, %arg4: memref<2x12xi32, #tpu.memory_space<smem>>) -> (i32, i32, i32) {
    %c0_i32 = arith.constant 0 : i32
    %c0_i32_0 = arith.constant 0 : i32
    %c0_i32_1 = arith.constant 0 : i32
    %c0_i32_2 = arith.constant 0 : i32
    return %c0_i32, %c0_i32_0, %c0_i32_1 : i32, i32, i32
  }
  func.func @transform_6(%arg0: i32, %arg1: i32, %arg2: memref<2x12xi32, #tpu.memory_space<smem>>, %arg3: memref<2x12xi32, #tpu.memory_space<smem>>, %arg4: memref<2x12xi32, #tpu.memory_space<smem>>) -> (i32, i32) {
    %c0_i32 = arith.constant 0 : i32
    %c0_i32_0 = arith.constant 0 : i32
    %c0_i32_1 = arith.constant 0 : i32
    return %c0_i32, %c0_i32_0 : i32, i32
  }
  func.func @transform_7(%arg0: i32, %arg1: i32, %arg2: memref<2x12xi32, #tpu.memory_space<smem>>, %arg3: memref<2x12xi32, #tpu.memory_space<smem>>, %arg4: memref<2x12xi32, #tpu.memory_space<smem>>) -> (i32, i32) {
    %c0_i32 = arith.constant 0 : i32
    %c0_i32_0 = arith.constant 0 : i32
    %c0_i32_1 = arith.constant 0 : i32
    return %c0_i32, %c0_i32_0 : i32, i32
  }
  func.func @transform_8(%arg0: i32, %arg1: i32, %arg2: memref<2x12xi32, #tpu.memory_space<smem>>, %arg3: memref<2x12xi32, #tpu.memory_space<smem>>, %arg4: memref<2x12xi32, #tpu.memory_space<smem>>) -> (i32, i32) {
    %c0_i32 = arith.constant 0 : i32
    %c0_i32_0 = arith.constant 0 : i32
    %c0_i32_1 = arith.constant 0 : i32
    return %c0_i32, %c0_i32_0 : i32, i32
  }
  func.func @transform_9(%arg0: i32, %arg1: i32, %arg2: memref<2x12xi32, #tpu.memory_space<smem>>, %arg3: memref<2x12xi32, #tpu.memory_space<smem>>, %arg4: memref<2x12xi32, #tpu.memory_space<smem>>) -> (i32, i32) {
    %c0_i32 = arith.constant 0 : i32
    %c0_i32_0 = arith.constant 0 : i32
    %c0_i32_1 = arith.constant 0 : i32
    return %c0_i32, %c0_i32_0 : i32, i32
  }
  func.func @transform_10(%arg0: i32, %arg1: i32, %arg2: memref<2x12xi32, #tpu.memory_space<smem>>, %arg3: memref<2x12xi32, #tpu.memory_space<smem>>, %arg4: memref<2x12xi32, #tpu.memory_space<smem>>) -> (i32, i32, i32, i32) {
    %c0_i32 = arith.constant 0 : i32
    %c0_i32_0 = arith.constant 0 : i32
    %c0_i32_1 = arith.constant 0 : i32
    return %arg0, %arg1, %c0_i32, %c0_i32_0 : i32, i32, i32, i32
  }
}

</mosaic_0001>

<bundles_post_ra>
// kernel: a_call__.1
= control target key start
LH: loop header
LB: loop body
LE: loop exit
PB: predicated region body
PF: predicated region fallthrough
CT: control target
= control target key end

     0   :  { %s8060_s0 = inlined_call_operand.vmem [shape: s32[2,12], index: 0, kind: input, shape index: {}]   ;;  %s8061_s3 = inlined_call_operand.vmem [shape: bf16[2,9,18,4], index: 3, kind: input, shape index: {}]   ;;  %s8062_s4 = inlined_call_operand.vmem [shape: bf16[2,16,18,4], index: 4, kind: input, shape index: {}]   ;;  %s8063_s5 = inlined_call_operand.vmem [shape: bf16[2,8,18,4], index: 5, kind: input, shape index: {}]   ;;  %s8064_s6 = inlined_call_operand.vmem [shape: bf16[3,12,128], index: 6, kind: input, shape index: {}]   ;;  %s8065_s7 = inlined_call_operand.vmem [shape: bf16[3,12,128], index: 7, kind: input, shape index: {}]   ;;  %s8066_s8 = inlined_call_operand.vmem [shape: bf16[3,384,128], index: 8, kind: input, shape index: {}]   ;;  %s8067_s9 = inlined_call_operand.vmem [shape: f32[1,128], index: 9, kind: input, shape index: {}, may-alias: {9,11}]   ;;  %s8068_s10 = inlined_call_operand.vmem [shape: f32[1,128], index: 10, kind: input, shape index: {}]   ;;  %s8069_s11 = inlined_call_operand.vmem [shape: f32[1,128], index: 11, kind: input, shape index: {}, may-alias: {9,11}]   ;;  %s8070_s12 = inlined_call_operand.vmem [shape: f32[1,128], index: 12, kind: input, shape index: {}]   ;;  %s8071_s13 = inlined_call_operand.vmem [shape: bf16[2,16,16,128], index: 13, kind: output, shape index: {}]   ;;  %s8072_s1 = inlined_call_operand.vmem [shape: s32[2,12], index: 1, kind: input, shape index: {}]   ;;  %s8073_s2 = inlined_call_operand.vmem [shape: s32[2,12], index: 2, kind: input, shape index: {}]  }
   0x1   :  { %8080 = sst [smem:[#allocation14_spill]] %s8069_s11  ;;  %s18_s27 = sshll.u32 %s8060_s0, 4  ;;  %s19_s27 = int_to_ptr.vmem [resolvable:$true] %s18_s27 }
   0x2   :  { %8081 = sst [smem:[#allocation15_spill]] %s8070_s12  ;;  %s22_s30 = sshll.u32 %s8072_s1, 4  ;;  %s23_s30 = int_to_ptr.vmem [resolvable:$true] %s22_s30 }
   0x3   :  { %8082 = sst [smem:[#allocation16_spill]] %s8071_s13  ;;  %s6294_s14 = scalar_lea.vmem %s19_s27, 32 }
   0x4   :  { %p6295_p0 = scmp.ne.s32.totalorder %s19_s27, %s6294_s14  ;;  %p6299_p1 = scmp.lt.s32.totalorder %s19_s27, %s19_s27 }
   0x5   :  { %p6300_p2 = scmp.lt.s32.totalorder %s6294_s14, %s6294_s14 }
   0x7   :  { %p6301_p3 = por %p6300_p2, %p6299_p1 }
   0x9   :  { %p6302_p4 = pnand %p6301_p3, %p6295_p0 }
   0xb   :  { %6305 = shalt.err (!%p6302_p4)  }
   0xc   :  { %s6372_s15 = smov [#allocation4]   ;;  %s6306_s16 = scalar_lea.vmem %s23_s30, 32 }
   0xd   :  { %21 = dma.vmem_to_smem %s19_s27, 32, %s6372_s15, [#allocation3] }
   0xe   :  { %p6307_p5 = scmp.ne.s32.totalorder %s23_s30, %s6306_s16  ;;  %p6311_p6 = scmp.lt.s32.totalorder %s23_s30, %s23_s30 }
   0xf   :  { %p6312_p7 = scmp.lt.s32.totalorder %s6306_s16, %s6306_s16 }
  0x11   :  { %p6313_p8 = por %p6312_p7, %p6311_p6 }
  0x13   :  { %p6314_p9 = pnand %p6313_p8, %p6307_p5 }
  0x15   :  { %6317 = shalt.err (!%p6314_p9)  }
  0x16   :  { %s6373_s0 = smov [#allocation5]   ;;  %s26_s18 = sshll.u32 %s8073_s2, 4  ;;  %s27_s18 = int_to_ptr.vmem [resolvable:$true] %s26_s18 }
  0x17   :  { %25 = dma.vmem_to_smem %s23_s30, 32, %s6373_s0, [#allocation3] }
  0x18   :  { %s6318_s19 = scalar_lea.vmem %s27_s18, 32  ;;  %p6323_p11 = scmp.lt.s32.totalorder %s27_s18, %s27_s18 }
  0x19   :  { %p6319_p10 = scmp.ne.s32.totalorder %s27_s18, %s6318_s19  ;;  %p6324_p12 = scmp.lt.s32.totalorder %s6318_s19, %s6318_s19 }
  0x1b   :  { %p6325_p13 = por %p6324_p12, %p6323_p11 }
  0x1d   :  { %p6326_p0 = pnand %p6325_p13, %p6319_p10 }
  0x1f   :  { %6329 = shalt.err (!%p6326_p0)  }
  0x20   :  { %s6374_s20 = smov [#allocation6]  }
  0x21   :  { %29 = dma.vmem_to_smem %s27_s18, 32, %s6374_s20, [#allocation3] }
  0x22   :  { %6350 = dma.done.wait [#allocation3], 96 }
  0x23   :  { %6351 = vsyncadd [#allocation3], 4294967200 }
  0x24   :  { %31 = sfence }
  0x25   :  { %s6456_s21 = smov 0   ;;  %s6458_s22 = smov 0  }
  0x26   :  { %s6460_s23 = smov 0   ;;  %s6462_s2 = smov 0  }
  0x27   :  { %s6464_s24 = smov 0  }
  0x28 LB: > { %8083 = sst [smem:[#allocation8_spill]] %s6362_s23  ;;  %s46_s25 = sadd.s32 1, %s6362_s23  ;;  %s6370_s24 = sphi %s6464_s24, %s37_s24   ;;  %s6366_s2 = sphi %s6462_s2, %s8103_s2   ;;  %s6362_s23 = sphi %s6460_s23, %s8102_s23   ;;  %s6358_s22 = sphi %s6458_s22, %s8101_s22   ;;  %s6354_s21 = sphi %s6456_s21, %s8100_s21  }
  0x29   : > { %8084 = sst [smem:[#allocation9_spill]] %s6366_s2  ;;  %s49_s26 = sadd.s32 1, %s6366_s2 }
  0x2a   : > { %8085 = sst [smem:[#allocation10_spill]] %s6370_s24  ;;  %p47_p1 = scmp.ge.s32.totalorder %s46_s25, 2 }
  0x2b   : > { %p4809_p2 = scmp.ge.s32.totalorder %s6370_s24, 1  ;;  %p379_p3 = scmp.lt.s32.totalorder %s6370_s24, 5 }
  0x2c   : > { %s8105_s25 = smov (%p47_p1, %s46_s25), 0  ;;  %s8107_s26 = smov (!%p47_p1, %s49_s26), %s6366_s2 }
  0x2d   : > { %8086 = sst [smem:[#allocation11_spill]] %s8105_s25  ;;  %p380_p4 = pnand %p4809_p2, %p379_p3 }
  0x2e   : > { %p51_p5 = scmp.ge.s32.totalorder %s8107_s26, 2 }
  0x2f   : > { %383 = sbr.rel (%p380_p4) target bundleno = 1190 (0x4a6), region = 60 }
  0x30   : > { %s8109_s26 = smov (%p51_p5, %s8107_s26), 0 }
  0x31   : > { %8087 = sst [smem:[#allocation12_spill]] %s8109_s26 }
  0x36   : > { %p442_p6 = scmp.lt.s32.totalorder %s6358_s22, 1  ;;  %s4811_s27 = sshll.u32 %s6354_s21, 3  ;;  %vm532_vm0 = vcmask 27648   ;;  %vm535_vm1 = vcmask 24576   ;;  %vm1479_vm2 = vcmask 1046528   ;;  %vm1621_vm4 = vcmask 1045504  }
  0x37   : > { %p450_p7 = scmp.lt.s32.totalorder %s4811_s27, 15  ;;  %s6490_s28 = sshll.u32 %s6354_s21, 7  ;;  %vm1310_vm3 = vsmask.f32 7424  ;;  %vm1540_vm5 = vcmask 31744   ;;  %vm1565_vm6 = vcmask 64512  }
  0x38   : > { %s8111_s22 = smov (!%p442_p6, %s6358_s22), 1  ;;  %s537_s30 = sadd.s32 1, %s6490_s28  ;;  %vm1600_vm7 = vcmask 97280   ;;  %vm3050_vm12 = vcmask 1040384   ;;  %vm3051_vm13 = vsmask.f32 256 }
  0x39   : > { %s8113_s27 = smov (!%p450_p7, %s4811_s27), 15  ;;  %s6111_s29 = smul.u32 108, %s8111_s22 }
  0x3a   : > { %8088 = sst [smem:[#allocation13_spill]] %s8113_s27  ;;  %s6112_s14 = smul.u32 3, %s8113_s27 }
  0x3b   : > { %s538_s15 = sld [smem:[#allocation4 + %s537_s30]]  ;;  %s6113_s16 = smul.u32 48, %s8111_s22 }
  0x3c   : > { %s539_s0 = sld [smem:[#allocation5 + %s537_s30]]  ;;  %s6503_s19 = scalar_lea.vmem %s8061_s3, %s6111_s29 }
  0x3d   : > { %s542_s1 = sld [smem:[#allocation6 + %s537_s30]]  ;;  %s454_s20 = sadd.s32 %s6113_s16, %s6112_s14 }
  0x3e   : > { %s4812_s26 = sshll.u32 %s454_s20, 2  ;;  %s592_s24 = sadd.s32 2, %s6490_s28 }
  0x3f   : > { %s6508_s23 = scalar_lea.vmem %s8062_s4, %s4812_s26  ;;  %s6511_s12 = sld [smem:[#allocation4 + %s592_s24]] }
  0x40   : > { %s6513_s11 = sld [smem:[#allocation5 + %s592_s24]]  ;;  %s702_s18 = sadd.s32 4, %s6490_s28 }
  0x41   : > { %s5220_s13 = smul.u32 12, %s538_s15  ;;  %s6515_s30 = sld [smem:[#allocation6 + %s592_s24]] }
  0x42   : > { %s540_s27 = scvt.s32.f32 %s539_s0  ;;  %s6519_s2 = sld [smem:[#allocation4 + %s702_s18]] }
  0x43   : > { %s543_s17 = scvt.s32.f32 %s542_s1  ;;  %s547_s29 = scalar_lea.vmem %s6503_s19, %s5220_s13 }
  0x44   : > { %s541_s14 = smul.f32 1.5258789e-05, %s540_s27  ;;  %v5285_v0 = vld [vmem:[%s547_s29] sm:$0xff]   ;;  %v550_v1 = vld [vmem:[%s547_s29 + $0x8] sm:$0x1]  ;;  %v4828_v2 = vld [vmem:[%s547_s29 + $0xc] sm:$0xff]   ;;  %s6521_s24 = sld [smem:[#allocation5 + %s702_s18]] }
  0x45   : > { %s544_s25 = smul.f32 1.5258789e-05, %s543_s17  ;;  %v5286_v3 = vunpack.c.l.bf16 %v5285_v0  ;;  %v5287_v4 = vunpack.c.h.bf16 %v5285_v0  ;;  %v553_v5 = vunpack.c.l.bf16 %v550_v1  ;;  %v4830_v6 = vld [vmem:[%s547_s29 + $0x14] sm:$0x1]  ;;  %v565_v7 = vunpack.c.l.bf16 %v4828_v2  ;;  %s6524_s26 = sld [smem:[#allocation6 + %s702_s18]] }
  0x46   : > { %v554_v8 = vstv %s541_s14  ;;  %v566_v9 = vunpack.c.h.bf16 %v4828_v2  ;;  %v567_v10 = vunpack.c.l.bf16 %v4830_v6  ;;  %s5224_s13 = smul.u32 12, %s6511_s12  ;;  %s595_s27 = scvt.s32.f32 %s6513_s11 }
  0x47   : > { %v555_v11 = vmul.f32 %v5286_v3, %v554_v8  ;;  %v556_v12 = vmul.f32 %v5287_v4, %v554_v8  ;;  %v557_v13 = vmul.f32 %v554_v8, %v553_v5  ;;  %v568_v14 = vstv %s544_s25  ;;  %s598_s15 = scvt.s32.f32 %s6515_s30  ;;  %s647_s0 = sadd.s32 3, %s6490_s28 }
  0x48   : > { %v569_v15 = vmul.f32 %v568_v14, %v565_v7  ;;  %v570_v16 = vmul.f32 %v568_v14, %v566_v9  ;;  %v571_v17 = vmul.f32 %v568_v14, %v567_v10  ;;  %s602_s16 = scalar_lea.vmem %s6503_s19, %s5224_s13  ;;  %s596_s1 = smul.f32 1.5258789e-05, %s595_s27 }
  0x49   : > { %v5289_v18 = vld [vmem:[%s602_s16] sm:$0xff]   ;;  %v605_v19 = vld [vmem:[%s602_s16 + $0x8] sm:$0x1]  ;;  %v4835_v20 = vld [vmem:[%s602_s16 + $0xc] sm:$0xff]   ;;  %s6530_s12 = sld [smem:[#allocation4 + %s647_s0]]  ;;  %s599_s11 = smul.f32 1.5258789e-05, %s598_s15 }
  0x4a   : > { %v572_v21 = vadd.f32 %v569_v15, %v555_v11  ;;  %v573_v22 = vadd.f32 %v570_v16, %v556_v12  ;;  %v574_v23 = vadd.f32 %v571_v17, %v557_v13  ;;  %v5290_v24 = vunpack.c.l.bf16 %v5289_v18  ;;  %v4837_v25 = vld [vmem:[%s602_s16 + $0x14] sm:$0x1]  ;;  %s6532_s20 = sld [smem:[#allocation5 + %s647_s0]]  ;;  %s705_s30 = scvt.s32.f32 %s6521_s24 }
  0x4b   : > { %v5291_v26 = vunpack.c.h.bf16 %v5289_v18  ;;  %v608_v27 = vunpack.c.l.bf16 %v605_v19  ;;  %v609_v28 = vstv %s596_s1  ;;  %v620_v29 = vunpack.c.l.bf16 %v4835_v20  ;;  %s5232_s17 = smul.u32 12, %s6519_s2  ;;  %s708_s29 = scvt.s32.f32 %s6524_s26 }
  0x4c   : > { %v5221_v30 = vpack.c.bf16 %v572_v21, %v572_v21  ;;  %v5222_v31 = vpack.c.bf16 %v573_v22, %v573_v22  ;;  %v5223_v32 = vpack.c.bf16 %v574_v23, %v574_v23  ;;  %v610_v33 = vmul.f32 %v5290_v24, %v609_v28  ;;  %s6537_s18 = sld [smem:[#allocation6 + %s647_s0]]  ;;  %s706_s14 = smul.f32 1.5258789e-05, %s705_s30 }
  0x4d   : > { %v611_v34 = vmul.f32 %v5291_v26, %v609_v28  ;;  %v612_v35 = vmul.f32 %v609_v28, %v608_v27  ;;  %v621_v36 = vunpack.c.h.bf16 %v4835_v20  ;;  %v622_v37 = vunpack.c.l.bf16 %v4837_v25  ;;  %s712_s25 = scalar_lea.vmem %s6503_s19, %s5232_s17  ;;  %s6543_s2 = smul.f32 1.5258789e-05, %s708_s29 }
  0x4e   : > { %589 = vst.msk [vmem:[#allocation2 + $0xc] sm:$0xf] %vm532_vm0, %v5221_v30  ;;  %590 = vst.msk [vmem:[#allocation2 + $0x10] sm:$0xf] %vm532_vm0, %v5222_v31  ;;  %v623_v38 = vstv %s599_s11  ;;  %v5297_v39 = vld [vmem:[%s712_s25] sm:$0xff]   ;;  %v4849_v41 = vld [vmem:[%s712_s25 + $0xc] sm:$0xff]   ;;  %v719_v49 = vstv %s706_s14 }
  0x4f   : > { %591 = vst.msk [vmem:[#allocation2 + $0x14] sm:$0x1] %vm535_vm1, %v5223_v32  ;;  %v715_v40 = vld [vmem:[%s712_s25 + $0x8] sm:$0x1]  ;;  %s812_s24 = sadd.s32 6, %s6490_s28  ;;  %v624_v42 = vmul.f32 %v623_v38, %v620_v29  ;;  %v625_v43 = vmul.f32 %v623_v38, %v621_v36  ;;  %v626_v44 = vmul.f32 %v623_v38, %v622_v37  ;;  %v5298_v45 = vunpack.c.l.bf16 %v5297_v39  ;;  %s5228_s13 = smul.u32 12, %s6530_s12 }
  0x50   : > { %v4851_v46 = vld [vmem:[%s712_s25 + $0x14] sm:$0x1]  ;;  %s6547_s26 = sld [smem:[#allocation4 + %s812_s24]]  ;;  %v5299_v47 = vunpack.c.h.bf16 %v5297_v39  ;;  %v718_v48 = vunpack.c.l.bf16 %v715_v40  ;;  %v730_v50 = vunpack.c.l.bf16 %v4849_v41  ;;  %s650_s27 = scvt.s32.f32 %s6532_s20  ;;  %v731_v57 = vunpack.c.h.bf16 %v4849_v41 }
  0x51   : > { %s6550_s15 = sld [smem:[#allocation5 + %s812_s24]]  ;;  %v627_v51 = vadd.f32 %v624_v42, %v610_v33  ;;  %v628_v52 = vadd.f32 %v625_v43, %v611_v34  ;;  %v629_v53 = vadd.f32 %v626_v44, %v612_v35  ;;  %v720_v54 = vmul.f32 %v5298_v45, %v719_v49  ;;  %s657_s16 = scalar_lea.vmem %s6503_s19, %s5228_s13 }
  0x52   : > { %s6553_s0 = sld [smem:[#allocation6 + %s812_s24]]  ;;  %v721_v55 = vmul.f32 %v5299_v47, %v719_v49  ;;  %v722_v56 = vmul.f32 %v719_v49, %v718_v48  ;;  %v732_v58 = vunpack.c.l.bf16 %v4851_v46  ;;  %s651_s1 = smul.f32 1.5258789e-05, %s650_s27  ;;  %v5293_v59 = vld [vmem:[%s657_s16] sm:$0xff]   ;;  %v660_v60 = vld [vmem:[%s657_s16 + $0x8] sm:$0x1]  ;;  %v4842_v61 = vld [vmem:[%s657_s16 + $0xc] sm:$0xff]   ;;  %v733_v1 = vstv %s6543_s2 }
  0x53   : > { %s653_s12 = scvt.s32.f32 %s6537_s18  ;;  %v5225_v62 = vpack.c.bf16 %v627_v51, %v627_v51  ;;  %v5226_v63 = vpack.c.bf16 %v628_v52, %v628_v52  ;;  %v5227_v0 = vpack.c.bf16 %v629_v53, %v629_v53  ;;  %v4844_v2 = vld [vmem:[%s657_s16 + $0x14] sm:$0x1]  ;;  %s6558_s11 = sadd.s32 5, %s6490_s28  ;;  %v734_v3 = vmul.f32 %v733_v1, %v730_v50 }
  0x54   : > { %s6561_s20 = sadd.s32 8, %s6490_s28  ;;  %v735_v4 = vmul.f32 %v733_v1, %v731_v57  ;;  %v736_v5 = vmul.f32 %v733_v1, %v732_v58  ;;  %v5294_v6 = vunpack.c.l.bf16 %v5293_v59  ;;  %s6566_s17 = sld [smem:[#allocation4 + %s6558_s11]]  ;;  %v5295_v7 = vunpack.c.h.bf16 %v5293_v59 }
  0x55   : > { %s6563_s30 = smul.f32 1.5258789e-05, %s653_s12  ;;  %644 = vst.msk [vmem:[#allocation2 + $0x18] sm:$0xf] %vm532_vm0, %v5225_v62  ;;  %645 = vst.msk [vmem:[#allocation2 + $0x1c] sm:$0xf] %vm532_vm0, %v5226_v63  ;;  %v663_v8 = vunpack.c.l.bf16 %v660_v60  ;;  %v664_v9 = vstv %s651_s1  ;;  %v675_v10 = vunpack.c.l.bf16 %v4842_v61  ;;  %v6161_v11 = vld [vmem:[#allocation2 + $0xc] sm:$0xff]   ;;  %v737_v13 = vadd.f32 %v734_v3, %v720_v54 }
  0x56   : > { %646 = vst.msk [vmem:[#allocation2 + $0x20] sm:$0x1] %vm535_vm1, %v5227_v0  ;;  %v6162_v12 = vld [vmem:[#allocation2 + $0x14] ss:$0 sps:$4 sm:$0x11]   ;;  %v738_v14 = vadd.f32 %v735_v4, %v721_v55  ;;  %v739_v15 = vadd.f32 %v736_v5, %v722_v56  ;;  %v665_v16 = vmul.f32 %v5294_v6, %v664_v9  ;;  %s5240_s18 = smul.u32 12, %s6547_s26  ;;  %v666_v17 = vmul.f32 %v5295_v7, %v664_v9 }
  0x57   : > { %s815_s29 = scvt.s32.f32 %s6550_s15  ;;  %v667_v18 = vmul.f32 %v664_v9, %v663_v8  ;;  %v676_v19 = vunpack.c.h.bf16 %v4842_v61  ;;  %v677_v20 = vunpack.c.l.bf16 %v4844_v2  ;;  %s6575_s25 = sld [smem:[#allocation5 + %s6558_s11]]  ;;  %v1483_v21 = vrot.slane %v6161_v11, 1 }
  0x58   : > { %s818_s14 = scvt.s32.f32 %s6553_s0  ;;  %v1484_v22 = vrot.slane %v6162_v12, 1  ;;  %v1324_v23 = vshrl.u32 %v6161_v11, 16  ;;  %v1326_v24 = vshll.u32 %v6161_v11, 16  ;;  %s6578_s24 = scalar_lea.vmem %s6503_s19, %s5240_s18  ;;  %v1331_v25 = vshll.u32 %v6162_v12, 16 }
  0x59   : > { %s816_s2 = smul.f32 1.5258789e-05, %s815_s29  ;;  %v5233_v26 = vpack.c.bf16 %v737_v13, %v737_v13  ;;  %v5234_v27 = vpack.c.bf16 %v738_v14, %v738_v14  ;;  %v5235_v28 = vpack.c.bf16 %v739_v15, %v739_v15  ;;  %v5305_v29 = vld [vmem:[%s6578_s24] sm:$0xff]   ;;  %v825_v30 = vld [vmem:[%s6578_s24 + $0x8] sm:$0x1]  ;;  %v678_v33 = vstv %s6563_s30  ;;  %s6585_s13 = sld [smem:[#allocation6 + %s6558_s11]]  ;;  %v4863_v39 = vld [vmem:[%s6578_s24 + $0xc] sm:$0xff]  }
  0x5a   : > { %v1485_v31 = vsel %vm1479_vm2, %v1483_v21, %v1484_v22  ;;  %v1328_v32 = vrot.slane %v1326_v24, 1  ;;  %v5306_v34 = vunpack.c.l.bf16 %v5305_v29  ;;  %s5236_s26 = smul.u32 12, %s6566_s17  ;;  %s6375_s27 = smov 8   ;;  %v1333_v35 = vrot.slane %v1331_v25, 1  ;;  %v4865_v53 = vld [vmem:[%s6578_s24 + $0x14] sm:$0x1] }
  0x5b   : > { %1518 = vrot.lane.b32.xlu1 %v1485_v31, %s6375_s27  ;;  %754 = vst.msk [vmem:[#allocation2 + $0x30] sm:$0xf] %vm532_vm0, %v5233_v26  ;;  %755 = vst.msk [vmem:[#allocation2 + $0x34] sm:$0xf] %vm532_vm0, %v5234_v27  ;;  %v679_v36 = vmul.f32 %v678_v33, %v675_v10  ;;  %v680_v37 = vmul.f32 %v678_v33, %v676_v19  ;;  %v681_v38 = vmul.f32 %v678_v33, %v677_v20  ;;  %s6592_s15 = smul.f32 1.5258789e-05, %s818_s14  ;;  %s6596_s16 = sld [smem:[#allocation4 + %s6561_s20]] }
  0x5c   : > { %756 = vst.msk [vmem:[#allocation2 + $0x38] sm:$0x1] %vm535_vm1, %v5235_v28  ;;  %v1329_v40 = vor.u32 %v1328_v32, %v1324_v23  ;;  %v5307_v41 = vunpack.c.h.bf16 %v5305_v29  ;;  %v828_v42 = vunpack.c.l.bf16 %v825_v30  ;;  %v829_v43 = vstv %s816_s2  ;;  %s6599_s0 = scalar_lea.vmem %s6503_s19, %s5236_s26  ;;  %v6163_v44 = vld [vmem:[#allocation2 + $0x18] sm:$0xff]   ;;  %s6603_s12 = sld [smem:[#allocation5 + %s6561_s20]] }
  0x5d   : > { %v6164_v45 = vld [vmem:[#allocation2 + $0x20] ss:$0 sps:$4 sm:$0x11]   ;;  %v682_v46 = vadd.f32 %v679_v36, %v665_v16  ;;  %v683_v47 = vadd.f32 %v680_v37, %v666_v17  ;;  %v684_v48 = vadd.f32 %v681_v38, %v667_v18  ;;  %v830_v49 = vmul.f32 %v5306_v34, %v829_v43  ;;  %s760_s1 = scvt.s32.f32 %s6575_s25  ;;  %s6608_s11 = sld [smem:[#allocation6 + %s6561_s20]]  ;;  %v770_v0 = vld [vmem:[%s6599_s0 + $0x8] sm:$0x1] }
  0x5e   : > { %v1334_v50 = vsel %vm1310_vm3, %v1329_v40, %v1333_v35  ;;  %v831_v51 = vmul.f32 %v5307_v41, %v829_v43  ;;  %v832_v52 = vmul.f32 %v829_v43, %v828_v42  ;;  %v840_v54 = vunpack.c.l.bf16 %v4863_v39  ;;  %s6611_s30 = sadd.s32 7, %s6490_s28  ;;  %s8078_s17 = smov 4   ;;  %v5301_v59 = vld [vmem:[%s6599_s0] sm:$0xff]   ;;  %v4856_v27 = vld [vmem:[%s6599_s0 + $0xc] sm:$0xff]   ;;  %v4858_v28 = vld [vmem:[%s6599_s0 + $0x14] sm:$0x1] }
  0x5f   : > { %1457 = vrot.lane.b32.xlu0 %v1334_v50, %s8078_s17  ;;  %v1486_v55 = vrot.slane %v6163_v44, 1  ;;  %v1487_v56 = vrot.slane %v6164_v45, 1  ;;  %v1336_v57 = vshrl.u32 %v6163_v44, 16  ;;  %v1338_v58 = vshll.u32 %v6163_v44, 16  ;;  %s6616_s29 = sld [smem:[#allocation4 + %s6611_s30]]  ;;  %s6618_s20 = smul.f32 1.5258789e-05, %s760_s1 }
  0x60   : > { %v1343_v60 = vshll.u32 %v6164_v45, 16  ;;  %v5229_v61 = vpack.c.bf16 %v682_v46, %v682_v46  ;;  %v5230_v62 = vpack.c.bf16 %v683_v47, %v683_v47  ;;  %v5231_v63 = vpack.c.bf16 %v684_v48, %v684_v48  ;;  %s763_s14 = scvt.s32.f32 %s6585_s13  ;;  %s6635_s24 = sld [smem:[#allocation5 + %s6611_s30]] }
  0x61   : > { %v1488_v1 = vsel %vm1479_vm2, %v1486_v55, %v1487_v56  ;;  %v1340_v2 = vrot.slane %v1338_v58, 1  ;;  %v841_v3 = vunpack.c.h.bf16 %v4863_v39  ;;  %v842_v4 = vunpack.c.l.bf16 %v4865_v53  ;;  %s5248_s18 = smul.u32 12, %s6596_s16  ;;  %s6646_s16 = sadd.s32 10, %s6490_s28 }
  0x62   : > { %1520 = vrot.lane.b32.xlu1 %v1488_v1, %s6375_s27  ;;  %v1345_v5 = vrot.slane %v1343_v60, 1  ;;  %v6165_v6 = vld [vmem:[#allocation2 + $0x30] sm:$0xff]   ;;  %699 = vst.msk [vmem:[#allocation2 + $0x24] sm:$0xf] %vm532_vm0, %v5229_v61  ;;  %700 = vst.msk [vmem:[#allocation2 + $0x28] sm:$0xf] %vm532_vm0, %v5230_v62  ;;  %v843_v7 = vstv %s6592_s15  ;;  %v5302_v8 = vunpack.c.l.bf16 %v5301_v59  ;;  %v5303_v9 = vunpack.c.h.bf16 %v5301_v59  ;;  %s925_s2 = scvt.s32.f32 %s6603_s12 }
  0x63   : > { %701 = vst.msk [vmem:[#allocation2 + $0x2c] sm:$0x1] %vm535_vm1, %v5231_v63  ;;  %v1341_v10 = vor.u32 %v1340_v2, %v1336_v57  ;;  %v6166_v11 = vld [vmem:[#allocation2 + $0x38] ss:$0 sps:$4 sm:$0x11]   ;;  %v844_v12 = vmul.f32 %v843_v7, %v840_v54  ;;  %v845_v13 = vmul.f32 %v843_v7, %v841_v3  ;;  %v846_v14 = vmul.f32 %v843_v7, %v842_v4  ;;  %s6630_s25 = scalar_lea.vmem %s6503_s19, %s5248_s18  ;;  %s764_s13 = smul.f32 1.5258789e-05, %s763_s14 }
  0x64   : > { %v1360_v15 = vshrl.u32 %v6165_v6, 16  ;;  %v1362_v16 = vshll.u32 %v6165_v6, 16  ;;  %v1492_v17 = vrot.slane %v6165_v6, 1  ;;  %v773_v18 = vunpack.c.l.bf16 %v770_v0  ;;  %s928_s26 = scvt.s32.f32 %s6608_s11  ;;  %v5313_v33 = vld [vmem:[%s6630_s25] sm:$0xff]   ;;  %v935_v38 = vld [vmem:[%s6630_s25 + $0x8] sm:$0x1] }
  0x65   : > { %v1346_v19 = vsel %vm1310_vm3, %v1341_v10, %v1345_v5  ;;  %v1367_v20 = vshll.u32 %v6166_v11, 16  ;;  %v1493_v21 = vrot.slane %v6166_v11, 1  ;;  %v847_v22 = vadd.f32 %v844_v12, %v830_v49  ;;  %s5244_s15 = smul.u32 12, %s6616_s29  ;;  %s6650_s1 = sld [smem:[#allocation6 + %s6611_s30]]  ;;  %v4877_v53 = vld [vmem:[%s6630_s25 + $0xc] sm:$0xff]  }
  0x66   : > { %1459 = vrot.lane.b32.xlu0 %v1346_v19, %s8078_s17  ;;  %v1364_v23 = vrot.slane %v1362_v16, 1  ;;  %v848_v24 = vadd.f32 %v845_v13, %v831_v51  ;;  %v849_v25 = vadd.f32 %v846_v14, %v832_v52  ;;  %v774_v26 = vstv %s6618_s20  ;;  %s6653_s0 = sld [smem:[#allocation4 + %s6646_s16]]  ;;  %s926_s30 = smul.f32 1.5258789e-05, %s925_s2  ;;  %v4879_v62 = vld [vmem:[%s6630_s25 + $0x14] sm:$0x1] }
  0x67   : > { %v1369_v29 = vrot.slane %v1367_v20, 1  ;;  %v1494_v30 = vsel %vm1479_vm2, %v1492_v17, %v1493_v21  ;;  %v5241_v31 = vpack.c.bf16 %v847_v22, %v847_v22  ;;  %v775_v32 = vmul.f32 %v5302_v8, %v774_v26  ;;  %s6666_s20 = scalar_lea.vmem %s6503_s19, %s5244_s15  ;;  %s6670_s12 = smul.f32 1.5258789e-05, %s928_s26 }
  0x68   : > { %v1365_v34 = vor.u32 %v1364_v23, %v1360_v15  ;;  %v5242_v35 = vpack.c.bf16 %v848_v24, %v848_v24  ;;  %v5243_v36 = vpack.c.bf16 %v849_v25, %v849_v25  ;;  %v776_v37 = vmul.f32 %v5303_v9, %v774_v26  ;;  %s6673_s18 = sadd.s32 9, %s6490_s28  ;;  %s870_s29 = scvt.s32.f32 %s6635_s24  ;;  %v6678_v63 = vld [vmem:[%s6666_s20 + $0x8] sm:$0x1]  ;;  %v5309_v4 = vld [vmem:[%s6666_s20] sm:$0xff]   ;;  %v4870_v23 = vld [vmem:[%s6666_s20 + $0xc] sm:$0xff]  }
  0x69   : > { %864 = vst.msk [vmem:[#allocation2 + $0x48] sm:$0xf] %vm532_vm0, %v5241_v31  ;;  %v777_v39 = vmul.f32 %v774_v26, %v773_v18  ;;  %v785_v40 = vunpack.c.l.bf16 %v4856_v27  ;;  %v786_v41 = vunpack.c.h.bf16 %v4856_v27  ;;  %v787_v42 = vunpack.c.l.bf16 %v4858_v28  ;;  %v6167_v44 = vld [vmem:[#allocation2 + $0x24] sm:$0xff]   ;;  %s6681_s14 = sld [smem:[#allocation5 + %s6646_s16]]  ;;  %p2938_p9 = scmp.eq.s32.totalorder %s6354_s21, 0 }
  0x6a   : > { %v1370_v43 = vsel %vm1310_vm3, %v1365_v34, %v1369_v29  ;;  %v6168_v45 = vld [vmem:[#allocation2 + $0x2c] ss:$0 sps:$4 sm:$0x11]   ;;  %865 = vst.msk [vmem:[#allocation2 + $0x4c] sm:$0xf] %vm532_vm0, %v5242_v35  ;;  %v788_v46 = vstv %s764_s13  ;;  %v5314_v47 = vunpack.c.l.bf16 %v5313_v33  ;;  %v5315_v48 = vunpack.c.h.bf16 %v5313_v33  ;;  %s6685_s11 = sld [smem:[#allocation4 + %s6673_s18]] }
  0x6b   : > { %866 = vst.msk [vmem:[#allocation2 + $0x50] sm:$0x1] %vm535_vm1, %v5243_v36  ;;  %1463 = vrot.lane.b32.xlu1 %v1370_v43, %s8078_s17  ;;  %v789_v49 = vmul.f32 %v788_v46, %v785_v40  ;;  %v790_v50 = vmul.f32 %v788_v46, %v786_v41  ;;  %v791_v51 = vmul.f32 %v788_v46, %v787_v42  ;;  %v938_v52 = vunpack.c.l.bf16 %v935_v38  ;;  %s6690_s25 = sld [smem:[#allocation6 + %s6646_s16]]  ;;  %s873_s24 = scvt.s32.f32 %s6650_s1  ;;  %v4872_v35 = vld [vmem:[%s6666_s20 + $0x14] sm:$0x1] }
  0x6c   : > { %v1348_v54 = vshrl.u32 %v6167_v44, 16  ;;  %v1350_v55 = vshll.u32 %v6167_v44, 16  ;;  %v1355_v56 = vshll.u32 %v6168_v45, 16  ;;  %v1489_v57 = vrot.slane %v6167_v44, 1  ;;  %s5256_s2 = smul.u32 12, %s6653_s0  ;;  %s6695_s13 = sld [smem:[#allocation5 + %s6673_s18]] }
  0x6d   : > { %v1490_v58 = vrot.slane %v6168_v45, 1  ;;  %v792_v59 = vadd.f32 %v789_v49, %v775_v32  ;;  %v793_v60 = vadd.f32 %v790_v50, %v776_v37  ;;  %v794_v61 = vadd.f32 %v791_v51, %v777_v39  ;;  %s871_s26 = smul.f32 1.5258789e-05, %s870_s29  ;;  %s6713_s0 = sld [smem:[#allocation4 + %s6490_s28]] }
  0x6e   : > { %v1352_v0 = vrot.slane %v1350_v55, 1  ;;  %v1357_v1 = vrot.slane %v1355_v56, 1  ;;  %v939_v2 = vstv %s926_s30  ;;  %v950_v3 = vunpack.c.l.bf16 %v4877_v53  ;;  %s6706_s15 = scalar_lea.vmem %s6503_s19, %s5256_s2  ;;  %s6708_s16 = smul.f32 1.5258789e-05, %s873_s24 }
  0x6f   : > { %1524 = vrot.lane.b32.xlu1 %v1494_v30, %s6375_s27  ;;  %v1491_v5 = vsel %vm1479_vm2, %v1489_v57, %v1490_v58  ;;  %v5237_v6 = vpack.c.bf16 %v792_v59, %v792_v59  ;;  %v5238_v7 = vpack.c.bf16 %v793_v60, %v793_v60  ;;  %v5239_v8 = vpack.c.bf16 %v794_v61, %v794_v61  ;;  %s1035_s1 = scvt.s32.f32 %s6681_s14  ;;  %v6717_v41 = vld [vmem:[%s6706_s15] sm:$0xff]   ;;  %s6720_s30 = sld [smem:[#allocation6 + %s6673_s18]]  ;;  %v1045_v46 = vld [vmem:[%s6706_s15 + $0x8] sm:$0x1]  ;;  %v4891_v61 = vld [vmem:[%s6706_s15 + $0xc] sm:$0xff]  }
  0x70   : > { %v1353_v9 = vor.u32 %v1352_v0, %v1348_v54  ;;  %v940_v10 = vmul.f32 %v5314_v47, %v939_v2  ;;  %v941_v11 = vmul.f32 %v5315_v48, %v939_v2  ;;  %v942_v12 = vmul.f32 %v939_v2, %v938_v52  ;;  %s6727_s29 = sld [smem:[#allocation5 + %s6490_s28]]  ;;  %v4893_v2 = vld [vmem:[%s6706_s15 + $0x14] sm:$0x1]  ;;  %s6748_s24 = sadd.s32 11, %s6490_s28 }
  0x71   : > { %v6169_v13 = vld [vmem:[#allocation2 + $0x48] sm:$0xff]   ;;  %809 = vst.msk [vmem:[#allocation2 + $0x3c] sm:$0xf] %vm532_vm0, %v5237_v6  ;;  %810 = vst.msk [vmem:[#allocation2 + $0x40] sm:$0xf] %vm532_vm0, %v5238_v7  ;;  %v951_v14 = vunpack.c.h.bf16 %v4877_v53  ;;  %v952_v15 = vunpack.c.l.bf16 %v4879_v62  ;;  %v953_v16 = vstv %s6670_s12  ;;  %v5310_v17 = vunpack.c.l.bf16 %v5309_v4  ;;  %s5252_s12 = smul.u32 12, %s6685_s11  ;;  %s1038_s20 = scvt.s32.f32 %s6690_s25 }
  0x72   : > { %811 = vst.msk [vmem:[#allocation2 + $0x44] sm:$0x1] %vm535_vm1, %v5239_v8  ;;  %v1358_v18 = vsel %vm1310_vm3, %v1353_v9, %v1357_v1  ;;  %v6170_v19 = vld [vmem:[#allocation2 + $0x50] ss:$0 sps:$4 sm:$0x11]   ;;  %v954_v20 = vmul.f32 %v953_v16, %v950_v3  ;;  %v5311_v21 = vunpack.c.h.bf16 %v5309_v4  ;;  %v883_v22 = vunpack.c.l.bf16 %v6678_v63  ;;  %s980_s18 = scvt.s32.f32 %s6695_s13  ;;  %s1036_s14 = smul.f32 1.5258789e-05, %s1035_s1 }
  0x73   : > { %1461 = vrot.lane.b32.xlu0 %v1358_v18, %s8078_s17  ;;  %v1384_v24 = vshrl.u32 %v6169_v13, 16  ;;  %v1386_v25 = vshll.u32 %v6169_v13, 16  ;;  %v1498_v26 = vrot.slane %v6169_v13, 1  ;;  %v955_v27 = vmul.f32 %v953_v16, %v951_v14  ;;  %s6742_s25 = scalar_lea.vmem %s6503_s19, %s5252_s12  ;;  %s6744_s2 = smul.f32 1.5258789e-05, %s1038_s20 }
  0x74   : > { %v1391_v28 = vshll.u32 %v6170_v19, 16  ;;  %v1499_v29 = vrot.slane %v6170_v19, 1  ;;  %v956_v30 = vmul.f32 %v953_v16, %v952_v15  ;;  %v957_v31 = vadd.f32 %v954_v20, %v940_v10  ;;  %s6750_s11 = smul.f32 1.5258789e-05, %s980_s18  ;;  %s6753_s13 = sld [smem:[#allocation6 + %s6490_s28]]  ;;  %v6762_v16 = vld [vmem:[%s6742_s25 + $0x8] sm:$0x1] }
  0x75   : > { %v1388_v32 = vrot.slane %v1386_v25, 1  ;;  %v958_v33 = vadd.f32 %v955_v27, %v941_v11  ;;  %v884_v34 = vstv %s871_s26  ;;  %v895_v36 = vunpack.c.l.bf16 %v4870_v23  ;;  %v6756_v11 = vld [vmem:[%s6742_s25] sm:$0xff]   ;;  %s5216_s26 = smul.u32 12, %s6713_s0  ;;  %s6765_s28 = sld [smem:[#allocation4 + %s6748_s24]] }
  0x76   : > { %v1393_v37 = vrot.slane %v1391_v28, 1  ;;  %v1500_v38 = vsel %vm1479_vm2, %v1498_v26, %v1499_v29  ;;  %v959_v39 = vadd.f32 %v956_v30, %v942_v12  ;;  %v5249_v40 = vpack.c.bf16 %v957_v31, %v957_v31  ;;  %s4813_s15 = sshll.u32 %s6354_s21, 2  ;;  %s484_s12 = scvt.s32.f32 %s6727_s29 }
  0x77   : > { %1522 = vrot.lane.b32.xlu0 %v1491_v5, %s6375_s27  ;;  %v1389_v42 = vor.u32 %v1388_v32, %v1384_v24  ;;  %v5250_v43 = vpack.c.bf16 %v958_v33, %v958_v33  ;;  %v885_v44 = vmul.f32 %v5310_v17, %v884_v34  ;;  %v886_v45 = vmul.f32 %v5311_v21, %v884_v34  ;;  %v6770_v21 = vld [vmem:[%s6742_s25 + $0xc] sm:$0xff]   ;;  %p6772_p8 = scmp.lt.s32.totalorder %s4813_s15, 7  ;;  %s6115_s20 = smul.u32 24, %s8111_s22 }
  0x78   : > { %v5251_v47 = vpack.c.bf16 %v959_v39, %v959_v39  ;;  %974 = vst.msk [vmem:[#allocation2 + $0x60] sm:$0xf] %vm532_vm0, %v5249_v40  ;;  %v887_v48 = vmul.f32 %v884_v34, %v883_v22  ;;  %v896_v49 = vunpack.c.h.bf16 %v4870_v23  ;;  %v897_v50 = vunpack.c.l.bf16 %v4872_v35  ;;  %v6171_v52 = vld [vmem:[#allocation2 + $0x3c] sm:$0xff]   ;;  %s6792_s18 = scalar_lea.vmem %s6503_s19, %s5216_s26  ;;  %s6808_s0 = smul.f32 1.5258789e-05, %s484_s12 }
  0x79   : > { %v1394_v51 = vsel %vm1310_vm3, %v1389_v42, %v1393_v37  ;;  %v6172_v53 = vld [vmem:[#allocation2 + $0x44] ss:$0 sps:$4 sm:$0x11]   ;;  %975 = vst.msk [vmem:[#allocation2 + $0x64] sm:$0xf] %vm532_vm0, %v5250_v43  ;;  %v898_v54 = vstv %s6708_s16  ;;  %v5322_v55 = vunpack.c.l.bf16 %v6717_v41  ;;  %v5323_v56 = vunpack.c.h.bf16 %v6717_v41  ;;  %s983_s16 = scvt.s32.f32 %s6720_s30  ;;  %s8115_s15 = smov (!%p6772_p8, %s4813_s15), 7 }
  0x7a   : > { %1467 = vrot.lane.b32.xlu1 %v1394_v51, %s8078_s17  ;;  %976 = vst.msk [vmem:[#allocation2 + $0x68] sm:$0x1] %vm535_vm1, %v5251_v47  ;;  %v899_v57 = vmul.f32 %v898_v54, %v895_v36  ;;  %v900_v58 = vmul.f32 %v898_v54, %v896_v49  ;;  %v901_v59 = vmul.f32 %v898_v54, %v897_v50  ;;  %v1048_v60 = vunpack.c.l.bf16 %v1045_v46  ;;  %s6114_s1 = smul.u32 3, %s8115_s15  ;;  %v4886_v43 = vld [vmem:[%s6742_s25 + $0x14] sm:$0x1]  ;;  %v5281_v49 = vld [vmem:[%s6792_s18] sm:$0xff]   ;;  %s487_s29 = scvt.s32.f32 %s6753_s13 }
  0x7b   : > { %v1372_v62 = vshrl.u32 %v6171_v52, 16  ;;  %v1374_v63 = vshll.u32 %v6171_v52, 16  ;;  %v1379_v0 = vshll.u32 %v6172_v53, 16  ;;  %v1495_v1 = vrot.slane %v6171_v52, 1  ;;  %v494_v54 = vld [vmem:[%s6792_s18 + $0x8] sm:$0x1] }
  0x7c   : > { %v1496_v3 = vrot.slane %v6172_v53, 1  ;;  %v902_v4 = vadd.f32 %v899_v57, %v885_v44  ;;  %v903_v5 = vadd.f32 %v900_v58, %v886_v45  ;;  %v904_v6 = vadd.f32 %v901_v59, %v887_v48  ;;  %s5260_s30 = smul.u32 12, %s6765_s28  ;;  %s8090_s28 = smov 4  }
  0x7d   : > { %v1376_v7 = vrot.slane %v1374_v63, 1  ;;  %v1381_v8 = vrot.slane %v1379_v0, 1  ;;  %v1049_v9 = vstv %s1036_s14  ;;  %v1060_v10 = vunpack.c.l.bf16 %v4891_v61  ;;  %s6795_s14 = sld [smem:[#allocation5 + %s6748_s24]]  ;;  %p2942_p10 = scmp.eq.s32.totalorder %s6354_s21, 1 }
  0x7e   : > { %1528 = vrot.lane.b32.xlu1 %v1500_v38, %s6375_s27  ;;  %v1497_v12 = vsel %vm1479_vm2, %v1495_v1, %v1496_v3  ;;  %v5245_v13 = vpack.c.bf16 %v902_v4, %v902_v4  ;;  %v5246_v14 = vpack.c.bf16 %v903_v5, %v903_v5  ;;  %v5247_v15 = vpack.c.bf16 %v904_v6, %v904_v6  ;;  %v4821_v5 = vld [vmem:[%s6792_s18 + $0xc] sm:$0xff]   ;;  %s6836_s13 = scalar_lea.vmem %s6503_s19, %s5260_s30  ;;  %s8095_s21 = sld [smem:[#allocation13_spill]] }
  0x7f   : > { %v1377_v17 = vor.u32 %v1376_v7, %v1372_v62  ;;  %v1050_v18 = vmul.f32 %v5322_v55, %v1049_v9  ;;  %v1051_v19 = vmul.f32 %v5323_v56, %v1049_v9  ;;  %v1052_v20 = vmul.f32 %v1049_v9, %v1048_v60  ;;  %s7384_s30 = scalar_select %p2938_p9, 1, 0 }
  0x80   : > { %v6173_v22 = vld [vmem:[#allocation2 + $0x60] sm:$0xff]   ;;  %919 = vst.msk [vmem:[#allocation2 + $0x54] sm:$0xf] %vm532_vm0, %v5245_v13  ;;  %920 = vst.msk [vmem:[#allocation2 + $0x58] sm:$0xf] %vm532_vm0, %v5246_v14  ;;  %v1061_v23 = vunpack.c.h.bf16 %v4891_v61  ;;  %v1062_v24 = vunpack.c.l.bf16 %v4893_v2  ;;  %v1063_v25 = vstv %s6744_s2  ;;  %v5318_v26 = vunpack.c.l.bf16 %v6756_v11  ;;  %s6798_s2 = sld [smem:[#allocation6 + %s6748_s24]]  ;;  %s465_s24 = sadd.s32 %s6115_s20, %s6114_s1 }
  0x81   : > { %921 = vst.msk [vmem:[#allocation2 + $0x5c] sm:$0x1] %vm535_vm1, %v5247_v15  ;;  %v1382_v27 = vsel %vm1310_vm3, %v1377_v17, %v1381_v8  ;;  %v6174_v28 = vld [vmem:[#allocation2 + $0x68] ss:$0 sps:$4 sm:$0x11]   ;;  %v1064_v29 = vmul.f32 %v1063_v25, %v1060_v10  ;;  %v5319_v30 = vunpack.c.h.bf16 %v6756_v11  ;;  %v993_v31 = vunpack.c.l.bf16 %v6762_v16  ;;  %s4814_s25 = sshll.u32 %s465_s24, 2 }
  0x82   : > { %1465 = vrot.lane.b32.xlu0 %v1382_v27, %s8078_s17  ;;  %v1408_v32 = vshrl.u32 %v6173_v22, 16  ;;  %v1410_v33 = vshll.u32 %v6173_v22, 16  ;;  %v1504_v34 = vrot.slane %v6173_v22, 1  ;;  %v1065_v35 = vmul.f32 %v1063_v25, %v1061_v23  ;;  %s984_s17 = smul.f32 1.5258789e-05, %s983_s16  ;;  %s6822_s15 = scalar_lea.vmem %s8063_s5, %s4814_s25  ;;  %v4823_v17 = vld [vmem:[%s6792_s18 + $0x14] sm:$0x1] }
  0x83   : > { %v1415_v36 = vshll.u32 %v6174_v28, 16  ;;  %v1505_v37 = vrot.slane %v6174_v28, 1  ;;  %v1066_v38 = vmul.f32 %v1063_v25, %v1062_v24  ;;  %v1067_v39 = vadd.f32 %v1064_v29, %v1050_v18  ;;  %s488_s16 = smul.f32 1.5258789e-05, %s487_s29  ;;  %v5325_v22 = vld [vmem:[%s6836_s13] sm:$0xff]   ;;  %v1100_v27 = vld [vmem:[%s6836_s13 + $0x8] sm:$0x1] }
  0x84   : > { %v1412_v40 = vrot.slane %v1410_v33, 1  ;;  %v1068_v41 = vadd.f32 %v1065_v35, %v1051_v19  ;;  %v994_v42 = vstv %s6750_s11  ;;  %v1005_v44 = vunpack.c.l.bf16 %v6770_v21  ;;  %s7501_s25 = scalar_select %p2942_p10, 1, 0 }
  0x85   : > { %v1417_v45 = vrot.slane %v1415_v36, 1  ;;  %v1506_v46 = vsel %vm1479_vm2, %v1504_v34, %v1505_v37  ;;  %v1069_v47 = vadd.f32 %v1066_v38, %v1052_v20  ;;  %v5257_v48 = vpack.c.bf16 %v1067_v39, %v1067_v39  ;;  %v4898_v38 = vld [vmem:[%s6836_s13 + $0xc] sm:$0xff]   ;;  %s8096_s26 = sld [smem:[#allocation14_spill]]  ;;  %s8098_s18 = sld [smem:[#allocation16_spill]] }
  0x86   : > { %1526 = vrot.lane.b32.xlu0 %v1497_v12, %s6375_s27  ;;  %v1413_v50 = vor.u32 %v1412_v40, %v1408_v32  ;;  %v5258_v51 = vpack.c.bf16 %v1068_v41, %v1068_v41  ;;  %v995_v52 = vmul.f32 %v5318_v26, %v994_v42  ;;  %v996_v53 = vmul.f32 %v5319_v30, %v994_v42  ;;  %s1093_s12 = scvt.s32.f32 %s6798_s2 }
  0x87   : > { %v5259_v55 = vpack.c.bf16 %v1069_v47, %v1069_v47  ;;  %1084 = vst.msk [vmem:[#allocation2 + $0x78] sm:$0xf] %vm532_vm0, %v5257_v48  ;;  %v997_v56 = vmul.f32 %v994_v42, %v993_v31  ;;  %v1006_v57 = vunpack.c.h.bf16 %v6770_v21  ;;  %v1007_v58 = vunpack.c.l.bf16 %v4886_v43  ;;  %v6825_v60 = vld [vmem:[#allocation2 + $0x54] sm:$0xff]   ;;  %v6185_v48 = vld [vmem:[%s8064_s6 + $0x8] sm:$0x3f]  }
  0x88   : > { %v1418_v59 = vsel %vm1310_vm3, %v1413_v50, %v1417_v45  ;;  %v6176_v61 = vld [vmem:[#allocation2 + $0x5c] ss:$0 sps:$4 sm:$0x11]   ;;  %1085 = vst.msk [vmem:[#allocation2 + $0x7c] sm:$0xf] %vm532_vm0, %v5258_v51  ;;  %v1008_v62 = vstv %s984_s17  ;;  %v5282_v63 = vunpack.c.l.bf16 %v5281_v49  ;;  %v5283_v0 = vunpack.c.h.bf16 %v5281_v49  ;;  %s1090_s17 = scvt.s32.f32 %s6795_s14  ;;  %s6852_s20 = smul.f32 1.5258789e-05, %s1093_s12  ;;  %6105 = vmatprep.subr.msk.bf16.mxu0 %vm1621_vm4, %v6185_v48 }
  0x89   : > { %1471 = vrot.lane.b32.xlu1 %v1418_v59, %s8090_s28  ;;  %1086 = vst.msk [vmem:[#allocation2 + $0x80] sm:$0x1] %vm535_vm1, %v5259_v55  ;;  %v1009_v1 = vmul.f32 %v1008_v62, %v1005_v44  ;;  %v1010_v2 = vmul.f32 %v1008_v62, %v1006_v57  ;;  %v1011_v3 = vmul.f32 %v1008_v62, %v1007_v58  ;;  %v497_v4 = vunpack.c.l.bf16 %v494_v54  ;;  %v4900_v43 = vld [vmem:[%s6836_s13 + $0x14] sm:$0x1]  ;;  %v6868_v57 = vld [vmem:[%s8064_s6] sm:$0x3f]  }
  0x8a   : > { %v1396_v6 = vshrl.u32 %v6825_v60, 16  ;;  %v1398_v7 = vshll.u32 %v6825_v60, 16  ;;  %v1403_v8 = vshll.u32 %v6176_v61, 16  ;;  %v1501_v9 = vrot.slane %v6825_v60, 1  ;;  %s6844_s19 = smul.f32 1.5258789e-05, %s1090_s17  ;;  %s8097_s17 = sld [smem:[#allocation15_spill]] }
  0x8b   : > { %v1502_v10 = vrot.slane %v6176_v61, 1  ;;  %v1012_v11 = vadd.f32 %v1009_v1, %v995_v52  ;;  %v1013_v12 = vadd.f32 %v1010_v2, %v996_v53  ;;  %v1014_v13 = vadd.f32 %v1011_v3, %v997_v56  ;;  %s4816_s13 = sshll.u32 %s8095_s21, 1 }
  0x8c   : > { %v1400_v14 = vrot.slane %v1398_v7, 1  ;;  %v1405_v15 = vrot.slane %v1403_v8, 1  ;;  %v498_v16 = vstv %s6808_s0  ;;  %v509_v18 = vunpack.c.l.bf16 %v4821_v5 }
  0x8d   : > { %1532 = vrot.lane.b32.xlu1 %v1506_v46, %s6375_s27  ;;  %v5253_v19 = vpack.c.bf16 %v1012_v11, %v1012_v11  ;;  %v5254_v20 = vpack.c.bf16 %v1013_v12, %v1013_v12  ;;  %v5255_v21 = vpack.c.bf16 %v1014_v13, %v1014_v13  ;;  %v1503_v24 = vsel %vm1479_vm2, %v1501_v9, %v1502_v10 }
  0x8e   : > { %v1401_v23 = vor.u32 %v1400_v14, %v1396_v6  ;;  %v499_v25 = vmul.f32 %v5282_v63, %v498_v16  ;;  %v500_v26 = vmul.f32 %v5283_v0, %v498_v16  ;;  %v501_v29 = vmul.f32 %v498_v16, %v497_v4 }
  0x8f   : > { %v6847_v28 = vld [vmem:[#allocation2 + $0x78] sm:$0xff]   ;;  %1029 = vst.msk [vmem:[#allocation2 + $0x6c] sm:$0xf] %vm532_vm0, %v5253_v19  ;;  %1030 = vst.msk [vmem:[#allocation2 + $0x70] sm:$0xf] %vm532_vm0, %v5254_v20  ;;  %v510_v30 = vunpack.c.h.bf16 %v4821_v5  ;;  %v511_v31 = vunpack.c.l.bf16 %v4823_v17  ;;  %v512_v32 = vstv %s488_s16  ;;  %v5326_v36 = vunpack.c.l.bf16 %v5325_v22  ;;  %s4817_s16 = sshll.u32 %s8111_s22, 5 }
  0x90   : > { %1031 = vst.msk [vmem:[#allocation2 + $0x74] sm:$0x1] %vm535_vm1, %v5255_v21  ;;  %v1406_v33 = vsel %vm1310_vm3, %v1401_v23, %v1405_v15  ;;  %v6178_v34 = vld [vmem:[#allocation2 + $0x80] ss:$0 sps:$4 sm:$0x11]   ;;  %v513_v35 = vmul.f32 %v512_v32, %v509_v18  ;;  %v5327_v37 = vunpack.c.h.bf16 %v5325_v22  ;;  %v1432_v39 = vshrl.u32 %v6847_v28, 16  ;;  %s476_s12 = sadd.s32 %s4817_s16, %s4816_s13 }
  0x91   : > { %1469 = vrot.lane.b32.xlu0 %v1406_v33, %s8090_s28  ;;  %v1434_v40 = vshll.u32 %v6847_v28, 16  ;;  %v514_v41 = vmul.f32 %v512_v32, %v510_v30  ;;  %v1103_v42 = vunpack.c.l.bf16 %v1100_v27  ;;  %v1439_v44 = vshll.u32 %v6178_v34, 16  ;;  %v6888_v23 = vld [vmem:[%s6508_s23] sm:$0xff]   ;;  %v6892_v27 = vld [vmem:[%s6822_s15 + $0xc] sm:$0xff]   ;;  %s4818_s22 = sshll.u32 %s476_s12, 2 }
  0x92   : > { %v1510_v45 = vrot.slane %v6847_v28, 1  ;;  %v515_v46 = vmul.f32 %v512_v32, %v511_v31  ;;  %v516_v47 = vadd.f32 %v513_v35, %v499_v25  ;;  %v1511_v50 = vrot.slane %v6178_v34, 1  ;;  %v6900_v30 = vld [vmem:[%s6822_s15 + $0x14] ss:$0 sps:$4 sm:$0x11]   ;;  %s8001_s14 = scalar_lea.vmem %s8098_s18, %s4818_s22 }
  0x93   : > { %v1436_v49 = vrot.slane %v1434_v40, 1  ;;  %v517_v51 = vadd.f32 %v514_v41, %v500_v26  ;;  %v1104_v52 = vstv %s6844_s19  ;;  %v1441_v53 = vrot.slane %v1439_v44, 1  ;;  %v6903_v31 = vld [vmem:[%s6508_s23 + $0x8] ss:$0 sps:$4 sm:$0x11]   ;;  %v6917_v44 = vld [vmem:[%s6508_s23 + $0x18] sm:$0xff]  }
  0x94   : > { %v518_v54 = vadd.f32 %v515_v46, %v501_v29  ;;  %v5217_v55 = vpack.c.bf16 %v516_v47, %v516_v47  ;;  %v1115_v56 = vunpack.c.l.bf16 %v4898_v38  ;;  %v1105_v61 = vmul.f32 %v5326_v36, %v1104_v52 }
  0x95   : > { %1530 = vrot.lane.b32.xlu0 %v1503_v24, %s6375_s27  ;;  %v1437_v58 = vor.u32 %v1436_v49, %v1432_v39  ;;  %v5218_v59 = vpack.c.bf16 %v517_v51, %v517_v51  ;;  %v1106_v62 = vmul.f32 %v5327_v37, %v1104_v52  ;;  %v1107_v0 = vmul.f32 %v1104_v52, %v1103_v42  ;;  %v6926_v52 = vld [vmem:[%s6508_s23 + $0x14] ss:$0 sps:$4 sm:$0x11]  }
  0x96   : > { %v5219_v63 = vpack.c.bf16 %v518_v54, %v518_v54  ;;  %533 = vst.msk [vmem:[#allocation2] sm:$0xf] %vm532_vm0, %v5217_v55  ;;  %v1116_v1 = vunpack.c.h.bf16 %v4898_v38  ;;  %v1117_v2 = vunpack.c.l.bf16 %v4900_v43  ;;  %v6873_v4 = vld [vmem:[#allocation2 + $0x6c] sm:$0xff]   ;;  %v1118_v6 = vstv %s6852_s20 }
  0x97   : > { %v1442_v3 = vsel %vm1310_vm3, %v1437_v58, %v1441_v53  ;;  %v6180_v5 = vld [vmem:[#allocation2 + $0x74] ss:$0 sps:$4 sm:$0x11]   ;;  %534 = vst.msk [vmem:[#allocation2 + $0x4] sm:$0xf] %vm532_vm0, %v5218_v59  ;;  %v1119_v7 = vmul.f32 %v1118_v6, %v1115_v56  ;;  %v1623_v10 = vsel %vm1621_vm4, %v6185_v48, 0  ;;  %v1512_v14 = vsel %vm1479_vm2, %v1510_v45, %v1511_v50 }
  0x98   : > { %1475 = vrot.lane.b32.xlu1 %v1442_v3, %s8090_s28  ;;  %536 = vst.msk [vmem:[#allocation2 + $0x8] sm:$0x1] %vm535_vm1, %v5219_v63  ;;  %v1120_v8 = vmul.f32 %v1118_v6, %v1116_v1  ;;  %v1121_v9 = vmul.f32 %v1118_v6, %v1117_v2  ;;  %v1420_v11 = vshrl.u32 %v6873_v4, 16  ;;  %v1422_v12 = vshll.u32 %v6873_v4, 16  ;;  %5682 = vmatpush3.bf16.msra.mxu0 %v1623_v10  ;;  %v6914_v43 = vld [vmem:[%s6508_s23 + $0xc] sm:$0xff]  }
  0x99   : > { %v1427_v13 = vshll.u32 %v6180_v5, 16  ;;  %v1122_v15 = vadd.f32 %v1119_v7, %v1105_v61  ;;  %6106 = vmatprep.subr.msk.bf16.mxu0 %vm1621_vm4, %v6868_v57  ;;  %v1507_v25 = vrot.slane %v6873_v4, 1  ;;  %v1508_v26 = vrot.slane %v6180_v5, 1  ;;  %v6933_v59 = vld [vmem:[%s6508_s23 + $0x20] ss:$0 sps:$4 sm:$0x11]  }
  0x9a   : > { %v1123_v16 = vadd.f32 %v1120_v8, %v1106_v62  ;;  %v1124_v17 = vadd.f32 %v1121_v9, %v1107_v0  ;;  %v1424_v18 = vrot.slane %v1422_v12, 1  ;;  %v2130_v37 = vshll.u32 %v6888_v23, 16  ;;  %v6943_v12 = vld [vmem:[%s6508_s23 + $0x24] sm:$0xff]  }
  0x9b   : > { %v1429_v19 = vrot.slane %v1427_v13, 1  ;;  %v5261_v20 = vpack.c.bf16 %v1122_v15, %v1122_v15  ;;  %v1509_v38 = vsel %vm1479_vm2, %v1507_v25, %v1508_v26  ;;  %v2118_v42 = vshll.u32 %v6892_v27, 16 }
  0x9c   : > { %1536 = vrot.lane.b32.xlu1 %v1512_v14, %s6375_s27  ;;  %v5262_v21 = vpack.c.bf16 %v1123_v16, %v1123_v16  ;;  %v5263_v22 = vpack.c.bf16 %v1124_v17, %v1124_v17  ;;  %v1425_v24 = vor.u32 %v1424_v18, %v1420_v11  ;;  %v2123_v47 = vshll.u32 %v6900_v30, 16  ;;  %v6948_v16 = vld [vmem:[%s6508_s23 + $0x2c] ss:$0 sps:$4 sm:$0x11]  }
  0x9d   : > { %1139 = vst.msk [vmem:[#allocation2 + $0x84] sm:$0xf] %vm532_vm0, %v5261_v20  ;;  %v2128_v49 = vshrl.u32 %v6888_v23, 16  ;;  %v2132_v50 = vrot.slane %v2130_v37, 1  ;;  %v2135_v51 = vshll.u32 %v6903_v31, 16  ;;  %v2116_v56 = vshrl.u32 %v6892_v27, 16 }
  0x9e   : > { %v6894_v29 = vld [vmem:[#allocation2] sm:$0xff]   ;;  %1140 = vst.msk [vmem:[#allocation2 + $0x88] sm:$0xf] %vm532_vm0, %v5262_v21  ;;  %v1430_v32 = vsel %vm1310_vm3, %v1425_v24, %v1429_v19  ;;  %v2120_v58 = vrot.slane %v2118_v42, 1  ;;  %v2142_v61 = vshll.u32 %v6914_v43, 16  ;;  %v2154_v62 = vshll.u32 %v6917_v44, 16 }
  0x9f   : > { %1141 = vst.msk [vmem:[#allocation2 + $0x8c] sm:$0x1] %vm535_vm1, %v5263_v22  ;;  %v6182_v33 = vld [vmem:[#allocation2 + $0x8] ss:$0 sps:$4 sm:$0x11]   ;;  %1473 = vrot.lane.b32.xlu0 %v1430_v32, %s8090_s28  ;;  %v1312_v34 = vshrl.u32 %v6894_v29, 16  ;;  %v2133_v6 = vor.u32 %v2132_v50, %v2128_v49 }
  0xa0   : > { %v1314_v35 = vshll.u32 %v6894_v29, 16  ;;  %v1480_v36 = vrot.slane %v6894_v29, 1  ;;  %v1319_v39 = vshll.u32 %v6182_v33, 16  ;;  %v1481_v40 = vrot.slane %v6182_v33, 1  ;;  %v6954_v21 = vld [vmem:[%s6508_s23 + $0x30] sm:$0xff]   ;;  %v6980_v49 = vld [vmem:[%s6508_s23 + $0x3c] sm:$0xff]  }
  0xa1   : > { %v2125_v5 = vrot.slane %v2123_v47, 1  ;;  %v2137_v7 = vrot.slane %v2135_v51, 1  ;;  %v2121_v10 = vor.u32 %v2120_v58, %v2116_v56  ;;  %v2140_v11 = vshrl.u32 %v6914_v43, 16  ;;  %v6957_v22 = vld [vmem:[%s6508_s23 + $0x38] ss:$0 sps:$4 sm:$0x11]  }
  0xa2   : > { %v1316_v41 = vrot.slane %v1314_v35, 1  ;;  %v1321_v45 = vrot.slane %v1319_v39, 1  ;;  %v1482_v46 = vsel %vm1479_vm2, %v1480_v36, %v1481_v40  ;;  %v2144_v14 = vrot.slane %v2142_v61, 1  ;;  %v6983_v50 = vld [vmem:[%s6508_s23 + $0x50] ss:$0 sps:$4 sm:$0x11]  }
  0xa3   : > { %1534 = vrot.lane.b32.xlu0 %v1509_v38, %s6375_s27  ;;  %1516 = vrot.lane.b32.xlu1 %v1482_v46, %s6375_s27  ;;  %v2147_v15 = vshll.u32 %v6926_v52, 16  ;;  %v2152_v18 = vshrl.u32 %v6917_v44, 16  ;;  %v2156_v19 = vrot.slane %v2154_v62, 1  ;;  %v2159_v20 = vshll.u32 %v6933_v59, 16 }
  0xa4   : > { %v1317_v48 = vor.u32 %v1316_v41, %v1312_v34  ;;  %v2138_v24 = vsel %vm1310_vm3, %v2133_v6, %v2137_v7  ;;  %v2277_v25 = vrot.slane %v6888_v23, 1  ;;  %v2278_v26 = vrot.slane %v6903_v31, 1  ;;  %v6970_v31 = vld [vmem:[%s6508_s23 + $0x44] ss:$0 sps:$4 sm:$0x11]  }
  0xa5   : > { %v6929_v54 = vld [vmem:[#allocation2 + $0x84] sm:$0xff]   ;;  %v2126_v33 = vsel %vm1310_vm3, %v2121_v10, %v2125_v5  ;;  %v2274_v34 = vrot.slane %v6892_v27, 1  ;;  %v2275_v35 = vrot.slane %v6900_v30, 1  ;;  %v2145_v36 = vor.u32 %v2144_v14, %v2140_v11 }
  0xa6   : > { %v1322_v53 = vsel %vm1310_vm3, %v1317_v48, %v1321_v45  ;;  %v6184_v55 = vld [vmem:[#allocation2 + $0x8c] ss:$0 sps:$4 sm:$0x11]   ;;  %v1444_v63 = vshrl.u32 %v6929_v54, 16  ;;  %v1446_v0 = vshll.u32 %v6929_v54, 16  ;;  %v1513_v2 = vrot.slane %v6929_v54, 1 }
  0xa7   : > { %1455 = vrot.lane.b32.xlu0 %v1322_v53, %s8090_s28  ;;  %v1451_v1 = vshll.u32 %v6184_v55, 16  ;;  %v1514_v3 = vrot.slane %v6184_v55, 1  ;;  %v2149_v37 = vrot.slane %v2147_v15, 1  ;;  %v2280_v38 = vrot.slane %v6914_v43, 1 }
  0xa8   : > { %v1448_v8 = vrot.slane %v1446_v0, 1  ;;  %v2281_v39 = vrot.slane %v6926_v52, 1  ;;  %v2157_v40 = vor.u32 %v2156_v19, %v2152_v18  ;;  %v2161_v41 = vrot.slane %v2159_v20, 1  ;;  %v6987_v52 = vld [vmem:[%s6508_s23 + $0x5c] ss:$0 sps:$4 sm:$0x11]  }
  0xa9   : > { %v1453_v9 = vrot.slane %v1451_v1, 1  ;;  %v1515_v13 = vsel %vm1479_vm2, %v1513_v2, %v1514_v3  ;;  %v2166_v30 = vshll.u32 %v6943_v12, 16  ;;  %v2178_v42 = vshll.u32 %v6954_v21, 16  ;;  %v7001_v1 = vld [vmem:[%s6508_s23 + $0x54] sm:$0xff]  }
  0xaa   : > { %v1449_v17 = vor.u32 %v1448_v8, %v1444_v63  ;;  %1538 = vrot.lane.b32.xlu1 %v1515_v13, %s6375_s27  ;;  %v2279_v45 = vsel %vm1479_vm2, %v2277_v25, %v2278_v26  ;;  %v2283_v46 = vrot.slane %v6917_v44, 1  ;;  %v2284_v47 = vrot.slane %v6933_v59, 1  ;;  %v6995_v59 = vld [vmem:[%s6508_s23 + $0x48] sm:$0xff]   ;;  %v7004_v2 = vld [vmem:[%s6822_s15 + $0x20] ss:$0 sps:$4 sm:$0x11]  }
  0xab   : > { %v2171_v48 = vshll.u32 %v6948_v16, 16  ;;  %v2183_v51 = vshll.u32 %v6957_v22, 16  ;;  %v2276_v53 = vsel %vm1479_vm2, %v2274_v34, %v2275_v35  ;;  %v2150_v55 = vsel %vm1310_vm3, %v2145_v36, %v2149_v37  ;;  %v7010_v8 = vld [vmem:[%s6822_s15 + $0x18] sm:$0xff]   ;;  %v7024_v25 = vld [vmem:[%s6822_s15] sm:$0xff]  }
  0xac   : > { %v1454_v32 = vsel %vm1310_vm3, %v1449_v17, %v1453_v9  ;;  %v2282_v56 = vsel %vm1479_vm2, %v2280_v38, %v2281_v39  ;;  %v2164_v58 = vshrl.u32 %v6943_v12, 16  ;;  %v2162_v61 = vsel %vm1310_vm3, %v2157_v40, %v2161_v41  ;;  %v7029_v34 = vld [vmem:[%s6822_s15 + $0x8] ss:$0 sps:$4 sm:$0x11]  }
  0xad   : > { %1477 = vrot.lane.b32.xlu0 %v1454_v32, %s8090_s28  ;;  %v2168_v62 = vrot.slane %v2166_v30, 1  ;;  %v2176_v63 = vshrl.u32 %v6954_v21, 16  ;;  %v2180_v0 = vrot.slane %v2178_v42, 1  ;;  %v2285_v3 = vsel %vm1479_vm2, %v2283_v46, %v2284_v47 }
  0xae   : > { %2251 = vrot.lane.b32.xlu1 %v2138_v24, %s8090_s28  ;;  %v2173_v5 = vrot.slane %v2171_v48, 1  ;;  %v2190_v6 = vshll.u32 %v6980_v49, 16  ;;  %v2195_v7 = vshll.u32 %v6970_v31, 16  ;;  %v2185_v9 = vrot.slane %v2183_v51, 1 }
  0xaf   : > { %v2286_v10 = vrot.slane %v6943_v12, 1  ;;  %v2287_v11 = vrot.slane %v6948_v16, 1  ;;  %v2289_v13 = vrot.slane %v6954_v21, 1  ;;  %v2290_v14 = vrot.slane %v6957_v22, 1 }
  0xb0   : > { %v2188_v15 = vshrl.u32 %v6980_v49, 16  ;;  %v2202_v17 = vshll.u32 %v6995_v59, 16  ;;  %v2207_v18 = vshll.u32 %v6983_v50, 16  ;;  %v2169_v19 = vor.u32 %v2168_v62, %v2164_v58 }
  0xb1   : > { %2249 = vrot.lane.b32.xlu0 %v2126_v33, %s8090_s28  ;;  %v2181_v20 = vor.u32 %v2180_v0, %v2176_v63  ;;  %v2214_v24 = vshll.u32 %v7001_v1, 16  ;;  %v2219_v16 = vshll.u32 %v6987_v52, 16  ;;  %v2192_v26 = vrot.slane %v2190_v6, 1 }
  0xb2   : > { %2311 = vrot.lane.b32.xlu1 %v2279_v45, %s6375_s27  ;;  %v2197_v32 = vrot.slane %v2195_v7, 1  ;;  %v2200_v22 = vshrl.u32 %v6995_v59, 16  ;;  %v2292_v33 = vrot.slane %v6980_v49, 1  ;;  %v2293_v35 = vrot.slane %v6970_v31, 1 }
  0xb3   : > { %v2295_v36 = vrot.slane %v6995_v59, 1  ;;  %v2226_v37 = vshll.u32 %v7010_v8, 16  ;;  %v2231_v38 = vshll.u32 %v7004_v2, 16  ;;  %v2204_v39 = vrot.slane %v2202_v17, 1 }
  0xb4   : > { %v2209_v40 = vrot.slane %v2207_v18, 1  ;;  %v2296_v41 = vrot.slane %v6983_v50, 1  ;;  %v2212_v30 = vshrl.u32 %v7001_v1, 16  ;;  %v2216_v42 = vrot.slane %v2214_v24, 1 }
  0xb5   : > { %2309 = vrot.lane.b32.xlu0 %v2276_v53, %s6375_s27  ;;  %v2221_v45 = vrot.slane %v2219_v16, 1  ;;  %v2224_v31 = vshrl.u32 %v7010_v8, 16  ;;  %v2298_v46 = vrot.slane %v7001_v1, 1  ;;  %v2186_v47 = vsel %vm1310_vm3, %v2181_v20, %v2185_v9  ;;  %v6287_v16 = vld [vmem:[#allocation2 + $0xc] sm:$0xff]  }
  0xb6   : > { %2255 = vrot.lane.b32.xlu1 %v2162_v61, %s8090_s28  ;;  %v2299_v48 = vrot.slane %v6987_v52, 1  ;;  %v2301_v51 = vrot.slane %v7010_v8, 1  ;;  %v2228_v53 = vrot.slane %v2226_v37, 1  ;;  %v2302_v50 = vrot.slane %v7004_v2, 1 }
  0xb7   : > { %v2106_v58 = vshll.u32 %v7024_v25, 16  ;;  %v2104_v61 = vshrl.u32 %v7024_v25, 16  ;;  %v2111_v62 = vshll.u32 %v7029_v34, 16  ;;  %v2174_v63 = vsel %vm1310_vm3, %v2169_v19, %v2173_v5 }
  0xb8   : > { %v2291_v52 = vsel %vm1479_vm2, %v2289_v13, %v2290_v14  ;;  %v2205_v0 = vor.u32 %v2204_v39, %v2200_v22  ;;  %v2271_v6 = vrot.slane %v7024_v25, 1  ;;  %v2288_v2 = vsel %vm1479_vm2, %v2286_v10, %v2287_v11 }
  0xb9   : > { %2253 = vrot.lane.b32.xlu0 %v2150_v55, %s8090_s28  ;;  %v2233_v55 = vrot.slane %v2231_v38, 1  ;;  %v2297_v9 = vsel %vm1479_vm2, %v2295_v36, %v2296_v41  ;;  %v2229_v13 = vor.u32 %v2228_v53, %v2224_v31  ;;  %v2113_v14 = vrot.slane %v2111_v62, 1  ;;  %v6288_v38 = vld [vmem:[#allocation2 + $0x18] sm:$0xff]   ;;  %v7089_v41 = vld [vmem:[%s8064_s6 + $0x10] sm:$0x3f]  }
  0xba   : > { %2315 = vrot.lane.b32.xlu1 %v2285_v3, %s6375_s27  ;;  %v2108_v3 = vrot.slane %v2106_v58, 1  ;;  %v2210_v7 = vsel %vm1310_vm3, %v2205_v0, %v2209_v40  ;;  %v2272_v10 = vrot.slane %v7029_v34, 1  ;;  %v2294_v11 = vsel %vm1479_vm2, %v2292_v33, %v2293_v35  ;;  %v6212_v31 = vld [vmem:[%s6822_s15 + $0x2c] ss:$0 sps:$4 sm:$0x11]   ;;  %v6289_v53 = vld [vmem:[#allocation2 + $0x30] sm:$0xff]  }
  0xbb   : > { %v2234_v17 = vsel %vm1310_vm3, %v2229_v13, %v2233_v55  ;;  %v2303_v20 = vsel %vm1479_vm2, %v2301_v51, %v2302_v50  ;;  %v2300_v22 = vsel %vm1479_vm2, %v2298_v46, %v2299_v48  ;;  %v1746_v40 = vsel %vm1621_vm4, %v6868_v57, 0  ;;  %v6290_v50 = vld [vmem:[#allocation2 + $0x24] sm:$0xff]  }
  0xbc   : > { %v2109_v33 = vor.u32 %v2108_v3, %v2104_v61  ;;  %v2273_v34 = vsel %vm1479_vm2, %v2271_v6, %v2272_v10  ;;  %v2243_v51 = vshll.u32 %v6212_v31, 16  ;;  %v2305_v3 = vrot.slane %v6212_v31, 1  ;;  %v6291_v13 = vld [vmem:[#allocation2 + $0x48] sm:$0xff]  }
  0xbd   : > { %2313 = vrot.lane.b32.xlu0 %v2282_v56, %s6375_s27  ;;  %v2193_v56 = vor.u32 %v2192_v26, %v2188_v15  ;;  %v2217_v15 = vor.u32 %v2216_v42, %v2212_v30 }
  0xbe   : > { %2259 = vrot.lane.b32.xlu1 %v2186_v47, %s8090_s28  ;;  %v2114_v36 = vsel %vm1310_vm3, %v2109_v33, %v2113_v14 }
  0xbf   : > { %v2198_v5 = vsel %vm1310_vm3, %v2193_v56, %v2197_v32  ;;  %v2222_v18 = vsel %vm1310_vm3, %v2217_v15, %v2221_v45  ;;  %v7100_v45 = vld [vmem:[%s6822_s15 + $0x24] sm:$0xff]  }
  0xc0   : > { %v2238_v46 = vshll.u32 %v7100_v45, 16  ;;  %v2236_v47 = vshrl.u32 %v7100_v45, 16  ;;  %v2304_v0 = vrot.slane %v7100_v45, 1 }
  0xc1   : > { %2257 = vrot.lane.b32.xlu0 %v2174_v63, %s8090_s28 }
  0xc2   : > { %2319 = vrot.lane.b32.xlu1 %v2291_v52, %s6375_s27  ;;  %v2240_v48 = vrot.slane %v2238_v46, 1  ;;  %v2245_v52 = vrot.slane %v2243_v51, 1  ;;  %v6210_v51 = vld [vmem:[%s8065_s7 + $0x8] sm:$0x3f]  }
  0xc4   : > { %v2241_v63 = vor.u32 %v2240_v48, %v2236_v47 }
  0xc5   : > { %2317 = vrot.lane.b32.xlu0 %v2288_v2, %s6375_s27 }
  0xc6   : > { %2263 = vrot.lane.b32.xlu1 %v2210_v7, %s8090_s28  ;;  %v2246_v56 = vsel %vm1310_vm3, %v2241_v63, %v2245_v52  ;;  %v2306_v7 = vsel %vm1479_vm2, %v2304_v0, %v2305_v3  ;;  %v7185_v52 = vld [vmem:[%s8066_s8 + $0x100] sm:$0xff]  }
  0xc7   : > { %v7191_v0 = vld [vmem:[%s8066_s8 + $0xc0] sm:$0xff]   ;;  %5909 = vmatprep.subr.bf16.mxu1 %v7185_v52 }
  0xc8   : > { %5917 = vmatpush3.bf16.msra.mxu1 %v7191_v0 }
  0xc9   : > { %2261 = vrot.lane.b32.xlu0 %v2198_v5, %s8090_s28 }
  0xca   : > { %2323 = vrot.lane.b32.xlu1 %v2297_v9, %s6375_s27 }
  0xcd   : > { %2321 = vrot.lane.b32.xlu0 %v2294_v11, %s6375_s27  ;;  %v1519_v24 = vpop.permute.xlu1 %1518  ;;  %v6292_v11 = vld [vmem:[#allocation2 + $0x3c] sm:$0xff]  }
  0xce   : > { %2267 = vrot.lane.b32.xlu1 %v2234_v17, %s8090_s28 }
  0xd1   : > { %v1458_v19 = vpop.permute.xlu0 %1457  ;;  %2265 = vrot.lane.b32.xlu0 %v2222_v18, %s8090_s28 }
  0xd2   : > { %v1544_v26 = vsel %vm1540_vm5, %v6287_v16, %v1458_v19  ;;  %2327 = vrot.lane.b32.xlu1 %v2303_v20, %s6375_s27  ;;  %v6293_v16 = vld [vmem:[#allocation2 + $0x60] sm:$0xff]  }
  0xd3   : > { %v7072_v32 = vsel %vm1565_vm6, %v1544_v26, %v1519_v24 }
  0xd4   : > { %5683 = vmatprep.mubr.msk.bf16.mxu0 %vm1600_vm7, %v7072_v32  ;;  %v1521_v37 = vpop.permute.xlu1 %1520 }
  0xd5   : > { %2325 = vrot.lane.b32.xlu0 %v2300_v22, %s6375_s27 }
  0xd6   : > { %2307 = vrot.lane.b32.xlu1 %v2273_v34, %s6375_s27 }
  0xd8   : > { %v1460_v35 = vpop.permute.xlu0 %1459 }
  0xd9   : > { %v1546_v39 = vsel %vm1540_vm5, %v6288_v38, %v1460_v35  ;;  %2247 = vrot.lane.b32.xlu0 %v2114_v36, %s8090_s28 }
  0xda   : > { %v7092_v30 = vsel %vm1565_vm6, %v1546_v39, %v1521_v37  ;;  %2329 = vrot.lane.b32.xlu1 %v2306_v7, %s6375_s27 }
  0xdb   : > { %5684 = vmatmul.mubr.msk.bf16.vlgmr.msra.gmra.mrb[0].mxu0 %vm1600_vm7, %v7092_v30 }
  0xdc   : > { %5704 = vmatpush3.bf16.msra.mxu0 %v1746_v40 }
  0xdd   : > { %6107 = vmatprep.subr.msk.bf16.mxu0 %vm1621_vm4, %v7089_v41  ;;  %v1464_v42 = vpop.permute.xlu1 %1463  ;;  %2269 = vrot.lane.b32.xlu0 %v2246_v56, %s8090_s28 }
  0xde   : > { %v1550_v55 = vsel %vm1540_vm5, %v6289_v53, %v1464_v42 }
  0xe1   : > { %v1525_v61 = vpop.permute.xlu1 %1524 }
  0xe2   : > { %v7112_v2 = vsel %vm1565_vm6, %v1550_v55, %v1525_v61 }
  0xe5   : > { %v1462_v57 = vpop.permute.xlu0 %1461 }
  0xe6   : > { %v1548_v58 = vsel %vm1540_vm5, %v6290_v50, %v1462_v57 }
  0xe9   : > { %v1523_v62 = vpop.permute.xlu0 %1522 }
  0xea   : > { %v7109_v6 = vsel %vm1565_vm6, %v1548_v58, %v1523_v62 }
  0xeb   : > { %5687 = vmatprep.mubr.msk.bf16.mxu0 %vm1600_vm7, %v7109_v6 }
  0xec   : > { %5688 = vmatmul.mubr.msk.bf16.gmra.mrb[4].mxu0 %vm1600_vm7, %v7112_v2  ;;  %v1468_v5 = vpop.permute.xlu1 %1467 }
  0xed   : > { %v1554_v14 = vsel %vm1540_vm5, %v6291_v13, %v1468_v5 }
  0xf0   : > { %v1529_v10 = vpop.permute.xlu1 %1528 }
  0xf1   : > { %v1579_v19 = vsel %vm1565_vm6, %v1554_v14, %v1529_v10 }
  0xf4   : > { %v1466_v9 = vpop.permute.xlu0 %1465 }
  0xf5   : > { %v1552_v15 = vsel %vm1540_vm5, %v6292_v11, %v1466_v9 }
  0xf8   : > { %v1527_v17 = vpop.permute.xlu0 %1526 }
  0xf9   : > { %v1577_v18 = vsel %vm1565_vm6, %v1552_v15, %v1527_v17  ;;  %v6214_v15 = vld [vmem:[%s8065_s7 + $0x10] sm:$0x3f]  }
  0xfa   : > { %5691 = vmatprep.mubr.msk.bf16.mxu0 %vm1600_vm7, %v1577_v18 }
  0xfb   : > { %5692 = vmatmul.mubr.msk.bf16.gmra.mrb[8].mxu0 %vm1600_vm7, %v1579_v19  ;;  %v1472_v20 = vpop.permute.xlu1 %1471 }
  0xfc   : > { %v1558_v26 = vsel %vm1540_vm5, %v6293_v16, %v1472_v20 }
  0xff   : > { %v1533_v22 = vpop.permute.xlu1 %1532 }
 0x100   : > { %v1583_v36 = vsel %vm1565_vm6, %v1558_v26, %v1533_v22 }
 0x103   : > { %v1470_v24 = vpop.permute.xlu0 %1469 }
 0x104   : > { %v1556_v33 = vsel %vm1540_vm5, %v6825_v60, %v1470_v24 }
 0x107   : > { %v1531_v34 = vpop.permute.xlu0 %1530 }
 0x108   : > { %v1581_v35 = vsel %vm1565_vm6, %v1556_v33, %v1531_v34 }
 0x109   : > { %5695 = vmatprep.mubr.msk.bf16.mxu0 %vm1600_vm7, %v1581_v35 }
 0x10a   : > { %5696 = vmatmul.mubr.msk.bf16.gmra.mrb[12].mxu0 %vm1600_vm7, %v1583_v36  ;;  %v1476_v37 = vpop.permute.xlu1 %1475 }
 0x10b   : > { %v1562_v39 = vsel %vm1540_vm5, %v6847_v28, %v1476_v37 }
 0x10e   : > { %v1537_v40 = vpop.permute.xlu1 %1536 }
 0x10f   : > { %v1587_v31 = vsel %vm1565_vm6, %v1562_v39, %v1537_v40 }
 0x111   : > { %v1474_v38 = vpop.permute.xlu0 %1473 }
 0x112   : > { %v1560_v42 = vsel %vm1540_vm5, %v6873_v4, %v1474_v38  ;;  %v1872_v4 = vsel %vm1621_vm4, %v7089_v41, 0 }
 0x115   : > { %v1535_v57 = vpop.permute.xlu0 %1534  ;;  %v1517_v46 = vpop.permute.xlu1 %1516 }
 0x116   : > { %v1585_v60 = vsel %vm1565_vm6, %v1560_v42, %v1535_v57 }
 0x117   : > { %5699 = vmatprep.mubr.msk.bf16.mxu0 %vm1600_vm7, %v1585_v60 }
 0x118   : > { %5700 = vmatmul.mubr.msk.bf16.gmra.mrb[16].mxu0 %vm1600_vm7, %v1587_v31 }
 0x119   : > { %v1456_v47 = vpop.permute.xlu0 %1455 }
 0x11a   : > { %v1542_v48 = vsel %vm1540_vm5, %v6894_v29, %v1456_v47  ;;  %v2410_v29 = vsel %vm1621_vm4, %v6210_v51, 0 }
 0x11b   : > { %v1567_v28 = vsel %vm1565_vm6, %v1542_v48, %v1517_v46  ;;  %v2659_v46 = vsel %vm1621_vm4, %v6214_v15, 0 }
 0x11c   : > { %5705 = vmatprep.mubr.msk.bf16.mxu0 %vm1600_vm7, %v1567_v28  ;;  %v1539_v53 = vpop.permute.xlu1 %1538  ;;  %v6218_v28 = vld [vmem:[%s8066_s8 + $0xc8] sm:$0xff]  }
 0x11f   : > { %v1478_v41 = vpop.permute.xlu0 %1477 }
 0x120   : > { %5706 = vmatmul.mubr.msk.bf16.vlgmr.msra.gmra.mrb[0].mxu0 %vm1600_vm7, %v7072_v32  ;;  %v6213_v32 = vld [vmem:[%s8065_s7] sm:$0x3f]   ;;  %v1564_v3 = vsel %vm1540_vm5, %v6929_v54, %v1478_v41 }
 0x121   : > { %5726 = vmatpush3.bf16.msra.mxu0 %v1872_v4  ;;  %5709 = vmatprep.mubr.msk.bf16.mxu0 %vm1600_vm7, %v7092_v30  ;;  %v1589_v7 = vsel %vm1565_vm6, %v1564_v3, %v1539_v53  ;;  %v2533_v10 = vsel %vm1621_vm4, %v6213_v32, 0  ;;  %v6219_v4 = vld [vmem:[%s8066_s8 + $0x110] sm:$0xff]   ;;  %v6224_v41 = vld [vmem:[%s8066_s8 + $0xe0] sm:$0xff]   ;;  %v6225_v53 = vld [vmem:[%s8066_s8 + $0x128] sm:$0xff]  }
 0x122   : > { %6108 = vmatprep.subr.msk.bf16.mxu0 %vm1621_vm4, %v6210_v51  ;;  %v6220_v51 = vld [vmem:[%s8066_s8 + $0xd0] sm:$0xff]  }
 0x123   : > { %v2250_v55 = vpop.permute.xlu0 %2249 }
 0x127   : > { %v2310_v50 = vpop.permute.xlu0 %2309 }
 0x128   : > { %5710 = vmatmul.mubr.msk.bf16.gmra.mrb[4].mxu0 %vm1600_vm7, %v7109_v6 }
 0x129   : > { %5713 = vmatprep.mubr.msk.bf16.mxu0 %vm1600_vm7, %v7112_v2 }
 0x12b   : > { %v2254_v61 = vpop.permute.xlu0 %2253 }
 0x12c   : > { %v2338_v13 = vsel %vm1540_vm5, %v6914_v43, %v2254_v61  ;;  %v6230_v61 = vld [vmem:[%s8066_s8 + $0xf8] sm:$0xff]  }
 0x12f   : > { %v2314_v63 = vpop.permute.xlu0 %2313 }
 0x130   : > { %5714 = vmatmul.mubr.msk.bf16.gmra.mrb[8].mxu0 %vm1600_vm7, %v1577_v18  ;;  %v2362_v11 = vsel %vm1565_vm6, %v2338_v13, %v2314_v63  ;;  %v7328_v63 = vld [vmem:[%s8067_s9] ss:$0 sm:$0xff] }
 0x131   : > { %5717 = vmatprep.mubr.msk.bf16.mxu0 %vm1600_vm7, %v1579_v19 }
 0x133   : > { %v2258_v5 = vpop.permute.xlu0 %2257 }
 0x137   : > { %v2318_v14 = vpop.permute.xlu0 %2317 }
 0x138   : > { %5718 = vmatmul.mubr.msk.bf16.gmra.mrb[12].mxu0 %vm1600_vm7, %v1581_v35 }
 0x139   : > { %5721 = vmatprep.mubr.msk.bf16.mxu0 %vm1600_vm7, %v1583_v36 }
 0x13b   : > { %v2262_v43 = vpop.permute.xlu0 %2261 }
 0x13c   : > { %v2346_v22 = vsel %vm1540_vm5, %v6980_v49, %v2262_v43 }
 0x13f   : > { %v2322_v26 = vpop.permute.xlu0 %2321 }
 0x140   : > { %5722 = vmatmul.mubr.msk.bf16.gmra.mrb[16].mxu0 %vm1600_vm7, %v1585_v60 }
 0x141   : > { %5727 = vmatprep.mubr.msk.bf16.mxu0 %vm1600_vm7, %v7092_v30  ;;  %v2252_v30 = vpop.permute.xlu1 %2251 }
 0x143   : > { %v2266_v34 = vpop.permute.xlu0 %2265 }
 0x144   : > { %v2350_v37 = vsel %vm1540_vm5, %v7001_v1, %v2266_v34 }
 0x145   : > { %v2312_v58 = vpop.permute.xlu1 %2311 }
 0x147   : > { %v2326_v38 = vpop.permute.xlu0 %2325 }
 0x148   : > { %5728 = vmatmul.mubr.msk.bf16.vlgmr.msra.gmra.mrb[0].mxu0 %vm1600_vm7, %v7109_v6  ;;  %v7198_v6 = vld [vmem:[%s8066_s8 + $0x108] sm:$0xff]   ;;  %v2374_v39 = vsel %vm1565_vm6, %v2350_v37, %v2326_v38 }
 0x149   : > { %5748 = vmatpush3.bf16.msra.mxu0 %v2410_v29  ;;  %5731 = vmatprep.mubr.msk.bf16.mxu0 %vm1600_vm7, %v7112_v2  ;;  %v2256_v62 = vpop.permute.xlu1 %2255  ;;  %v2334_v2 = vsel %vm1540_vm5, %v6892_v27, %v2250_v55  ;;  %v2336_v27 = vsel %vm1540_vm5, %v6888_v23, %v2252_v30  ;;  %v2342_v23 = vsel %vm1540_vm5, %v6943_v12, %v2258_v5  ;;  %v6222_v29 = vld [vmem:[%s8066_s8 + $0xd8] sm:$0xff]   ;;  %v6226_v55 = vld [vmem:[%s8066_s8 + $0xe8] sm:$0xff]   ;;  %v6227_v30 = vld [vmem:[%s8066_s8 + $0x130] sm:$0xff]  }
 0x14a   : > { %6109 = vmatprep.subr.msk.bf16.mxu0 %vm1621_vm4, %v6213_v32  ;;  %5910 = vmatprep.subr.bf16.mxu1 %v7198_v6  ;;  %v2358_v54 = vsel %vm1565_vm6, %v2334_v2, %v2310_v50  ;;  %v2360_v17 = vsel %vm1565_vm6, %v2336_v27, %v2312_v58  ;;  %v2366_v24 = vsel %vm1565_vm6, %v2342_v23, %v2318_v14  ;;  %v6223_v32 = vld [vmem:[%s8066_s8 + $0x120] sm:$0xff]   ;;  %v6228_v50 = vld [vmem:[%s8066_s8 + $0xf0] sm:$0xff]   ;;  %v6229_v58 = vld [vmem:[%s8066_s8 + $0x138] sm:$0xff]  }
 0x14b   : > { %v2248_v42 = vpop.permute.xlu0 %2247  ;;  %5918 = vmatpush3.bf16.msra.mxu1 %v6218_v28 }
 0x14c   : > { %v2332_v57 = vsel %vm1540_vm5, %v7024_v25, %v2248_v42  ;;  %5911 = vmatprep.subr.bf16.mxu1 %v6219_v4 }
 0x14d   : > { %v2316_v56 = vpop.permute.xlu1 %2315 }
 0x14f   : > { %5919 = vmatpush3.bf16.msra.mxu1 %v6220_v51 }
 0x150   : > { %5732 = vmatmul.mubr.msk.bf16.gmra.mrb[4].mxu0 %vm1600_vm7, %v1577_v18 }
 0x151   : > { %5735 = vmatprep.mubr.msk.bf16.mxu0 %vm1600_vm7, %v1579_v19  ;;  %v2260_v9 = vpop.permute.xlu1 %2259  ;;  %v2340_v19 = vsel %vm1540_vm5, %v6917_v44, %v2256_v62  ;;  %v2370_v44 = vsel %vm1565_vm6, %v2346_v22, %v2322_v26  ;;  %v7322_v62 = vld [vmem:[%s8066_s8 + $0x140] sm:$0xff]  }
 0x152   : > { %v2364_v16 = vsel %vm1565_vm6, %v2340_v19, %v2316_v56  ;;  %v2344_v12 = vsel %vm1540_vm5, %v6954_v21, %v2260_v9 }
 0x155   : > { %v2320_v18 = vpop.permute.xlu1 %2319 }
 0x158   : > { %5736 = vmatmul.mubr.msk.bf16.gmra.mrb[8].mxu0 %vm1600_vm7, %v1581_v35  ;;  %v2368_v35 = vsel %vm1565_vm6, %v2344_v12, %v2320_v18 }
 0x159   : > { %5739 = vmatprep.mubr.msk.bf16.mxu0 %vm1600_vm7, %v1583_v36  ;;  %v2264_v20 = vpop.permute.xlu1 %2263 }
 0x15a   : > { %v2348_v49 = vsel %vm1540_vm5, %v6995_v59, %v2264_v20 }
 0x15d   : > { %v2324_v33 = vpop.permute.xlu1 %2323 }
 0x15e   : > { %v2372_v21 = vsel %vm1565_vm6, %v2348_v49, %v2324_v33 }
 0x160   : > { %5740 = vmatmul.mubr.msk.bf16.gmra.mrb[12].mxu0 %vm1600_vm7, %v1585_v60 }
 0x161   : > { %5743 = vmatprep.mubr.msk.bf16.mxu0 %vm1600_vm7, %v1587_v31  ;;  %v2268_v36 = vpop.permute.xlu1 %2267 }
 0x162   : > { %v2352_v1 = vsel %vm1540_vm5, %v7010_v8, %v2268_v36  ;;  %v2270_v8 = vpop.permute.xlu0 %2269 }
 0x163   : > { %v2354_v25 = vsel %vm1540_vm5, %v7100_v45, %v2270_v8  ;;  %v6221_v45 = vld [vmem:[%s8066_s8 + $0x118] sm:$0xff]  }
 0x164   : > { %5912 = vmatprep.subr.bf16.mxu1 %v6221_v45 }
 0x165   : > { %v2328_v40 = vpop.permute.xlu1 %2327  ;;  %5920 = vmatpush3.bf16.msra.mxu1 %v6222_v29 }
 0x166   : > { %v2376_v59 = vsel %vm1565_vm6, %v2352_v1, %v2328_v40  ;;  %5913 = vmatprep.subr.bf16.mxu1 %v6223_v32 }
 0x168   : > { %5744 = vmatmul.mubr.msk.bf16.gmra.mrb[16].mxu0 %vm1600_vm7, %v1589_v7 }
 0x169   : > { %5749 = vmatprep.mubr.msk.bf16.mxu0 %vm1600_vm7, %v2358_v54  ;;  %v2308_v60 = vpop.permute.xlu1 %2307  ;;  %5921 = vmatpush3.bf16.msra.mxu1 %v6224_v41 }
 0x16a   : > { %v2356_v31 = vsel %vm1565_vm6, %v2332_v57, %v2308_v60  ;;  %5914 = vmatprep.subr.bf16.mxu1 %v6225_v53 }
 0x16d   : > { %v2330_v47 = vpop.permute.xlu1 %2329  ;;  %5922 = vmatpush3.bf16.msra.mxu1 %v6226_v55 }
 0x16e   : > { %v2378_v48 = vsel %vm1565_vm6, %v2354_v25, %v2330_v47  ;;  %5915 = vmatprep.subr.bf16.mxu1 %v6227_v30 }
 0x170   : > { %5750 = vmatmul.mubr.msk.bf16.vlgmr.msra.gmra.mrb[0].mxu0 %vm1600_vm7, %v2360_v17 }
 0x171   : > { %5770 = vmatpush3.bf16.msra.mxu0 %v2533_v10  ;;  %5753 = vmatprep.mubr.msk.bf16.mxu0 %vm1600_vm7, %v2362_v11 }
 0x172   : > { %6110 = vmatprep.subr.msk.bf16.mxu0 %vm1621_vm4, %v6214_v15  ;;  %5923 = vmatpush3.bf16.msra.mxu1 %v6228_v50  ;;  %vm7360_vm4 = vmand %vm3050_vm12, %vm3051_vm13 }
 0x173   : > { %5916 = vmatprep.subr.bf16.mxu1 %v6229_v58 }
 0x176   : > { %5924 = vmatpush3.bf16.msra.mxu1 %v6230_v61 }
 0x177   : > { %5813 = vmatprep.subr.bf16.mxu1 %v7322_v62 }
 0x178   : > { %5754 = vmatmul.mubr.msk.bf16.gmra.mrb[4].mxu0 %vm1600_vm7, %v2364_v16 }
 0x179   : > { %5757 = vmatprep.mubr.msk.bf16.mxu0 %vm1600_vm7, %v2366_v24 }
 0x180   : > { %5758 = vmatmul.mubr.msk.bf16.gmra.mrb[8].mxu0 %vm1600_vm7, %v2368_v35 }
 0x181   : > { %5761 = vmatprep.mubr.msk.bf16.mxu0 %vm1600_vm7, %v2370_v44 }
 0x188   : > { %5762 = vmatmul.mubr.msk.bf16.gmra.mrb[12].mxu0 %vm1600_vm7, %v2372_v21 }
 0x189   : > { %5765 = vmatprep.mubr.msk.bf16.mxu0 %vm1600_vm7, %v2374_v39 }
 0x190   : > { %5766 = vmatmul.mubr.msk.bf16.gmra.mrb[16].mxu0 %vm1600_vm7, %v2376_v59 }
 0x191   : > { %5771 = vmatprep.mubr.msk.bf16.mxu0 %vm1600_vm7, %v2356_v31 }
 0x198   : > { %5772 = vmatmul.mubr.msk.bf16.vlgmr.msra.gmra.mrb[0].mxu0 %vm1600_vm7, %v2358_v54 }
 0x199   : > { %5792 = vmatpush3.bf16.msra.mxu0 %v2659_v46  ;;  %5775 = vmatprep.mubr.msk.bf16.mxu0 %vm1600_vm7, %v2360_v17 }
 0x19a   : > { %5441 = vmatprep.subr.bf16.mxu0 %v7185_v52 }
 0x1a0   : > { %5776 = vmatmul.mubr.msk.bf16.gmra.mrb[4].mxu0 %vm1600_vm7, %v2362_v11 }
 0x1a1   : > { %5779 = vmatprep.mubr.msk.bf16.mxu0 %vm1600_vm7, %v2364_v16 }
 0x1a8   : > { %5780 = vmatmul.mubr.msk.bf16.gmra.mrb[8].mxu0 %vm1600_vm7, %v2366_v24 }
 0x1a9   : > { %5783 = vmatprep.mubr.msk.bf16.mxu0 %vm1600_vm7, %v2368_v35 }
 0x1b0   : > { %5784 = vmatmul.mubr.msk.bf16.gmra.mrb[12].mxu0 %vm1600_vm7, %v2370_v44 }
 0x1b1   : > { %5787 = vmatprep.mubr.msk.bf16.mxu0 %vm1600_vm7, %v2372_v21 }
 0x1b8   : > { %5788 = vmatmul.mubr.msk.bf16.gmra.mrb[16].mxu0 %vm1600_vm7, %v2374_v39 }
 0x1b9   : > { %5793 = vmatprep.mubr.msk.bf16.mxu0 %vm1600_vm7, %v2360_v17 }
 0x1c0   : > { %5794 = vmatmul.mubr.msk.bf16.vlgmr.msra.gmra.mrb[0].mxu0 %vm1600_vm7, %v2362_v11 }
 0x1c1   : > { %5797 = vmatprep.mubr.msk.bf16.mxu0 %vm1600_vm7, %v2364_v16  ;;  %5442 = vmatpush3.bf16.msra.mxu0 %v7191_v0  ;;  %v7333_v0 = vld [vmem:[%s8068_s10] ss:$0 sm:$0xff] }
 0x1c2   : > { %5443 = vmatprep.subr.bf16.mxu0 %v7198_v6 }
 0x1c5   : > { %5444 = vmatpush3.bf16.msra.mxu0 %v6218_v28 }
 0x1c6   : > { %5445 = vmatprep.subr.bf16.mxu0 %v6219_v4 }
 0x1c8   : > { %5798 = vmatmul.mubr.msk.bf16.gmra.mrb[4].mxu0 %vm1600_vm7, %v2366_v24 }
 0x1c9   : > { %5801 = vmatprep.mubr.msk.bf16.mxu0 %vm1600_vm7, %v2368_v35  ;;  %5446 = vmatpush3.bf16.msra.mxu0 %v6220_v51 }
 0x1ca   : > { %5447 = vmatprep.subr.bf16.mxu0 %v6221_v45 }
 0x1cd   : > { %5448 = vmatpush3.bf16.msra.mxu0 %v6222_v29 }
 0x1ce   : > { %5449 = vmatprep.subr.bf16.mxu0 %v6223_v32 }
 0x1d0   : > { %5802 = vmatmul.mubr.msk.bf16.gmra.mrb[8].mxu0 %vm1600_vm7, %v2370_v44 }
 0x1d1   : > { %5805 = vmatprep.mubr.msk.bf16.mxu0 %vm1600_vm7, %v2372_v21  ;;  %5450 = vmatpush3.bf16.msra.mxu0 %v6224_v41 }
 0x1d2   : > { %5451 = vmatprep.subr.bf16.mxu0 %v6225_v53 }
 0x1d5   : > { %5452 = vmatpush3.bf16.msra.mxu0 %v6226_v55 }
 0x1d6   : > { %5453 = vmatprep.subr.bf16.mxu0 %v6227_v30 }
 0x1d8   : > { %5806 = vmatmul.mubr.msk.bf16.gmra.mrb[12].mxu0 %vm1600_vm7, %v2374_v39 }
 0x1d9   : > { %5809 = vmatprep.mubr.msk.bf16.mxu0 %vm1600_vm7, %v2376_v59  ;;  %5454 = vmatpush3.bf16.msra.mxu0 %v6228_v50 }
 0x1da   : > { %5455 = vmatprep.subr.bf16.mxu0 %v6229_v58 }
 0x1dd   : > { %5456 = vmatpush3.bf16.msra.mxu0 %v6230_v61 }
 0x1e0   : > { %5810 = vmatmul.mubr.msk.bf16.gmra.mrb[16].mxu0 %vm1600_vm7, %v2378_v48 }
 0x293   : > { %v5795_v52 = vpop.f32.mrb[0].mxu0 }
 0x294   : > { %v2823_v3 = vmul.f32 %v5795_v52, %v7328_v63  ;;  %v2695_v6 = vpop.f32.mrb[1].mxu0 }
 0x295   : > { %v2821_v2 = vmul.f32 %v7328_v63, %v2695_v6  ;;  %v5796_v56 = vpop.f32.mrb[2].mxu0 }
 0x296   : > { %v2850_v7 = vadd.f32 %v7333_v0, %v2823_v3  ;;  %v2824_v5 = vmul.f32 %v5796_v56, %v7328_v63  ;;  %v2698_v54 = vpop.f32.mrb[3].mxu0 }
 0x297   : > { %v2848_v9 = vadd.f32 %v7333_v0, %v2821_v2  ;;  %v2822_v13 = vmul.f32 %v7328_v63, %v2698_v54 }
 0x298   : > { %v2890_v14 = vmul.f32 0.01, %v2850_v7  ;;  %v2851_v27 = vadd.f32 %v7333_v0, %v2824_v5  ;;  %vm2870_vm8 = vcmp.ge.f32.partialorder %v2850_v7, 0.0 }
 0x299   : > { %v2888_v10 = vmul.f32 0.01, %v2848_v9  ;;  %v2849_v11 = vadd.f32 %v7333_v0, %v2822_v13  ;;  %vm2868_vm9 = vcmp.ge.f32.partialorder %v2848_v9, 0.0 }
 0x29a   : > { %vm2871_vm10 = vcmp.ge.f32.partialorder %v2851_v27, 0.0  ;;  %v2891_v15 = vmul.f32 0.01, %v2851_v27  ;;  %v2910_v43 = vsel %vm2870_vm8, %v2850_v7, %v2890_v14 }
 0x29b   : > { %vm2869_vm11 = vcmp.ge.f32.partialorder %v2849_v11, 0.0  ;;  %v2889_v17 = vmul.f32 0.01, %v2849_v11  ;;  %v5799_v18 = vpop.f32.mrb[4].mxu0  ;;  %v7344_v24 = vsel %vm2868_vm9, %v2848_v9, %v2888_v10 }
 0x29c   : > { %v2911_v23 = vsel %vm2871_vm10, %v2851_v27, %v2891_v15  ;;  %v2827_v19 = vmul.f32 %v5799_v18, %v7328_v63  ;;  %v2711_v20 = vpop.f32.mrb[5].mxu0 }
 0x29d   : > { %v2929_v16 = vpack.c.bf16 %v2911_v23, %v2910_v43  ;;  %v7346_v26 = vsel %vm2869_vm11, %v2849_v11, %v2889_v17  ;;  %v2825_v22 = vmul.f32 %v7328_v63, %v2711_v20  ;;  %v5800_v33 = vpop.f32.mrb[6].mxu0 }
 0x29e   : > { %v2928_v12 = vpack.c.bf16 %v7346_v26, %v7344_v24  ;;  %v2854_v34 = vadd.f32 %v7333_v0, %v2827_v19  ;;  %v2828_v44 = vmul.f32 %v5800_v33, %v7328_v63  ;;  %v2714_v35 = vpop.f32.mrb[7].mxu0  ;;  %v6233_v24 = vld [vmem:[%s8066_s8 + $0x150] sm:$0xff]  }
 0x29f   : > { %v2968_v36 = vshrl.u32 %v2929_v16, 16  ;;  %v2852_v37 = vadd.f32 %v7333_v0, %v2825_v22  ;;  %v2826_v38 = vmul.f32 %v7328_v63, %v2714_v35  ;;  %v2971_v21 = vshll.u32 %v2929_v16, 16 }
 0x2a0   : > { %v2894_v49 = vmul.f32 0.01, %v2854_v34  ;;  %v2855_v39 = vadd.f32 %v7333_v0, %v2828_v44  ;;  %vm2874_vm14 = vcmp.ge.f32.partialorder %v2854_v34, 0.0 }
 0x2a1   : > { %v2892_v40 = vmul.f32 0.01, %v2852_v37  ;;  %v2853_v42 = vadd.f32 %v7333_v0, %v2826_v38  ;;  %vm2872_vm15 = vcmp.ge.f32.partialorder %v2852_v37, 0.0  ;;  %v2970_v60 = vrot.slane %v2968_v36, 7 }
 0x2a2   : > { %vm2875_vm0 = vcmp.ge.f32.partialorder %v2855_v39, 0.0  ;;  %v2895_v57 = vmul.f32 0.01, %v2855_v39  ;;  %v2914_v59 = vsel %vm2874_vm14, %v2854_v34, %v2894_v49  ;;  %v2940_v49 = vstv %s7384_s30 }
 0x2a3   : > { %vm2873_vm1 = vcmp.ge.f32.partialorder %v2853_v42, 0.0  ;;  %v2893_v1 = vmul.f32 0.01, %v2853_v42  ;;  %v5803_v31 = vpop.f32.mrb[8].mxu0  ;;  %v2973_v47 = vor.u32 %v2971_v21, %v2970_v60  ;;  %v2912_v28 = vsel %vm2872_vm15, %v2852_v37, %v2892_v40 }
 0x2a4   : > { %v2915_v46 = vsel %vm2875_vm0, %v2855_v39, %v2895_v57  ;;  %v2831_v8 = vmul.f32 %v5803_v31, %v7328_v63  ;;  %v2727_v25 = vpop.f32.mrb[9].mxu0  ;;  %v7378_v61 = vsel %vm7360_vm4, %v2970_v60, 0 }
 0x2a5   : > { %v7364_v4 = vpack.c.bf16 %v2915_v46, %v2914_v59  ;;  %v2913_v51 = vsel %vm2873_vm1, %v2853_v42, %v2893_v1  ;;  %v2829_v45 = vmul.f32 %v7328_v63, %v2727_v25  ;;  %v5804_v29 = vpop.f32.mrb[10].mxu0  ;;  %v7374_v58 = vsel %vm7360_vm4, 0, %v2973_v47 }
 0x2a6   : > { %v2930_v32 = vpack.c.bf16 %v2913_v51, %v2912_v28  ;;  %v2858_v41 = vadd.f32 %v7333_v0, %v2831_v8  ;;  %v2832_v53 = vmul.f32 %v5804_v29, %v7328_v63  ;;  %v2730_v55 = vpop.f32.mrb[11].mxu0  ;;  %v3088_v5 = vshll.u32 %v7374_v58, 16 }
 0x2a7   : > { %v2856_v30 = vadd.f32 %v7333_v0, %v2829_v45  ;;  %v2830_v50 = vmul.f32 %v7328_v63, %v2730_v55  ;;  %v2982_v7 = vshrl.u32 %v7364_v4, 16  ;;  %v3093_v54 = vshll.u32 %v7378_v61, 16 }
 0x2a8   : > { %vm2878_vm5 = vcmp.ge.f32.partialorder %v2858_v41, 0.0  ;;  %v2898_v52 = vmul.f32 0.01, %v2858_v41  ;;  %v2975_v3 = vshrl.u32 %v2930_v32, 16  ;;  %v2859_v2 = vadd.f32 %v7333_v0, %v2832_v53 }
 0x2a9   : > { %v2896_v6 = vmul.f32 0.01, %v2856_v30  ;;  %v2857_v56 = vadd.f32 %v7333_v0, %v2830_v50  ;;  %vm2876_vm6 = vcmp.ge.f32.partialorder %v2856_v30, 0.0  ;;  %v3086_v15 = vshrl.u32 %v7374_v58, 16 }
 0x2aa   : > { %v2918_v9 = vsel %vm2878_vm5, %v2858_v41, %v2898_v52  ;;  %vm2879_vm7 = vcmp.ge.f32.partialorder %v2859_v2, 0.0  ;;  %v2899_v13 = vmul.f32 0.01, %v2859_v2  ;;  %v3090_v17 = vrot.slane %v3088_v5, 1 }
 0x2ab   : > { %vm2877_vm8 = vcmp.ge.f32.partialorder %v2857_v56, 0.0  ;;  %v5807_v14 = vpop.f32.mrb[12].mxu0  ;;  %v2897_v27 = vmul.f32 0.01, %v2857_v56  ;;  %v2916_v18 = vsel %vm2876_vm6, %v2856_v30, %v2896_v6  ;;  %v2977_v20 = vrot.slane %v2975_v3, 7 }
 0x2ac   : > { %v2835_v10 = vmul.f32 %v5807_v14, %v7328_v63  ;;  %v2743_v11 = vpop.f32.mrb[13].mxu0  ;;  %v2919_v43 = vsel %vm2879_vm7, %v2859_v2, %v2899_v13  ;;  %v3091_v37 = vor.u32 %v3090_v17, %v3086_v15  ;;  %v3095_v21 = vrot.slane %v3093_v54, 1 }
 0x2ad   : > { %v2833_v23 = vmul.f32 %v7328_v63, %v2743_v11  ;;  %v5808_v19 = vpop.f32.mrb[14].mxu0  ;;  %v7392_v16 = vpack.c.bf16 %v2919_v43, %v2918_v9  ;;  %v2917_v22 = vsel %vm2877_vm8, %v2857_v56, %v2897_v27  ;;  %v2985_v40 = vshll.u32 %v7364_v4, 16 }
 0x2ae   : > { %v2862_v33 = vadd.f32 %v7333_v0, %v2835_v10  ;;  %v2836_v34 = vmul.f32 %v5808_v19, %v7328_v63  ;;  %v2746_v44 = vpop.f32.mrb[15].mxu0  ;;  %v7396_v35 = vpack.c.bf16 %v2917_v22, %v2916_v18  ;;  %v2978_v42 = vshll.u32 %v2930_v32, 16 }
 0x2af   : > { %v2860_v36 = vadd.f32 %v7333_v0, %v2833_v23  ;;  %v2834_v38 = vmul.f32 %v7328_v63, %v2746_v44  ;;  %v2984_v60 = vrot.slane %v2982_v7, 7  ;;  %v7404_v31 = vsel %vm1310_vm3, %v3091_v37, %v3095_v21 }
 0x2b0   : > { %vm2882_vm9 = vcmp.ge.f32.partialorder %v2862_v33, 0.0  ;;  %v2902_v39 = vmul.f32 0.01, %v2862_v33  ;;  %v2863_v1 = vadd.f32 %v7333_v0, %v2836_v34  ;;  %v2996_v46 = vshrl.u32 %v7392_v16, 16  ;;  %3536 = vmatprep.mubr.bf16.mxu0 %v7404_v31 }
 0x2b1   : > { %v2900_v57 = vmul.f32 0.01, %v2860_v36  ;;  %vm2880_vm10 = vcmp.ge.f32.partialorder %v2860_v36, 0.0  ;;  %v2861_v59 = vadd.f32 %v7333_v0, %v2834_v38  ;;  %v2980_v47 = vor.u32 %v2978_v42, %v2977_v20  ;;  %3537 = vmatmul.mubr.bf16.vlgmr.msra.gmra.mrb[20].mxu0 %v7374_v58 }
 0x2b2   : > { %v2922_v8 = vsel %vm2882_vm9, %v2862_v33, %v2902_v39  ;;  %v7411_v28 = vsel %vm7360_vm4, %v2977_v20, 0  ;;  %vm2883_vm11 = vcmp.ge.f32.partialorder %v2863_v1, 0.0  ;;  %v2903_v4 = vmul.f32 0.01, %v2863_v1 }
 0x2b3   : > { %v5811_v25 = vpop.f32.mrb[16].mxu0  ;;  %vm2881_vm12 = vcmp.ge.f32.partialorder %v2861_v59, 0.0  ;;  %v2901_v51 = vmul.f32 0.01, %v2861_v59  ;;  %v2920_v45 = vsel %vm2880_vm10, %v2860_v36, %v2900_v57  ;;  %v7417_v41 = vsel %vm7360_vm4, 0, %v2980_v47 }
 0x2b4   : > { %v2839_v29 = vmul.f32 %v5811_v25, %v7328_v63  ;;  %v2759_v32 = vpop.f32.mrb[17].mxu0  ;;  %v3105_v53 = vshll.u32 %v7411_v28, 16  ;;  %v2923_v55 = vsel %vm2883_vm11, %v2863_v1, %v2903_v4  ;;  %v2987_v3 = vor.u32 %v2985_v40, %v2984_v60 }
 0x2b5   : > { %v2921_v30 = vsel %vm2881_vm12, %v2861_v59, %v2901_v51  ;;  %v2837_v50 = vmul.f32 %v7328_v63, %v2759_v32  ;;  %v5812_v52 = vpop.f32.mrb[18].mxu0  ;;  %v7421_v6 = vpack.c.bf16 %v2923_v55, %v2922_v8  ;;  %v2999_v54 = vshll.u32 %v7392_v16, 16 }
 0x2b6   : > { %v7423_v2 = vpack.c.bf16 %v2921_v30, %v2920_v45  ;;  %v2866_v56 = vadd.f32 %v7333_v0, %v2839_v29  ;;  %v2840_v7 = vmul.f32 %v5812_v52, %v7328_v63  ;;  %v2762_v5 = vpop.f32.mrb[19].mxu0  ;;  %v3100_v14 = vshll.u32 %v7417_v41, 16 }
 0x2b7   : > { %v2864_v9 = vadd.f32 %v7333_v0, %v2837_v50  ;;  %v2838_v13 = vmul.f32 %v7328_v63, %v2762_v5  ;;  %v2989_v27 = vshrl.u32 %v7396_v35, 16  ;;  %v2992_v10 = vshll.u32 %v7396_v35, 16 }
 0x2b8   : > { %v3098_v11 = vshrl.u32 %v7417_v41, 16  ;;  %v3107_v15 = vrot.slane %v3105_v53, 1  ;;  %vm2886_vm13 = vcmp.ge.f32.partialorder %v2866_v56, 0.0  ;;  %v2906_v17 = vmul.f32 0.01, %v2866_v56 }
 0x2b9   : > { %vm2884_vm14 = vcmp.ge.f32.partialorder %v2864_v9, 0.0  ;;  %v2904_v18 = vmul.f32 0.01, %v2864_v9  ;;  %v2867_v43 = vadd.f32 %v7333_v0, %v2840_v7  ;;  %v2865_v23 = vadd.f32 %v7333_v0, %v2838_v13 }
 0x2ba   : > { %v3102_v19 = vrot.slane %v3100_v14, 1  ;;  %v7438_v63 = vsel %vm7360_vm4, 0, %v2987_v3  ;;  %v3003_v20 = vshrl.u32 %v7423_v2, 16  ;;  %v7441_v16 = vsel %vm2886_vm13, %v2866_v56, %v2906_v17 }
 0x2bb   : > { %v2924_v22 = vsel %vm2884_vm14, %v2864_v9, %v2904_v18  ;;  %v7445_v33 = vsel %vm7360_vm4, %v2984_v60, 0  ;;  %vm2887_vm15 = vcmp.ge.f32.partialorder %v2867_v43, 0.0  ;;  %v2907_v34 = vmul.f32 0.01, %v2867_v43 }
 0x2bc   : > { %vm2885_vm0 = vcmp.ge.f32.partialorder %v2865_v23, 0.0  ;;  %v2905_v44 = vmul.f32 0.01, %v2865_v23  ;;  %v3103_v0 = vor.u32 %v3102_v19, %v3098_v11  ;;  %v3112_v35 = vshll.u32 %v7438_v63, 16 }
 0x2bd   : > { %v3117_v36 = vshll.u32 %v7445_v33, 16  ;;  %v2998_v37 = vrot.slane %v2996_v46, 7  ;;  %v7449_v38 = vsel %vm2887_vm15, %v2867_v43, %v2907_v34  ;;  %v3110_v21 = vshrl.u32 %v7438_v63, 16  ;;  %v6232_v34 = vld [vmem:[%s8066_s8 + $0x148] sm:$0xff]  }
 0x2be   : > { %v2925_v39 = vsel %vm2885_vm0, %v2865_v23, %v2905_v44  ;;  %v2991_v40 = vrot.slane %v2989_v27, 7  ;;  %v2937_v42 = vpack.c.bf16 %v7449_v38, %v7441_v16  ;;  %v7455_v60 = vsel %vm1310_vm3, %v3103_v0, %v3107_v15 }
 0x2bf   : > { %v2936_v57 = vpack.c.bf16 %v2925_v39, %v2924_v22  ;;  %v3114_v1 = vrot.slane %v3112_v35, 1  ;;  %vm7459_vm1 = vcmp.eq.s32.totalorder %v2940_v49, 1  ;;  %3544 = vmatprep.mubr.bf16.mxu0 %v7455_v60  ;;  %v3001_v46 = vor.u32 %v2999_v54, %v2998_v37 }
 0x2c0   : > { %v7466_v8 = vsel %vm7360_vm4, %v2998_v37, 0  ;;  %v2994_v25 = vor.u32 %v2992_v10, %v2991_v40  ;;  %v3010_v47 = vshrl.u32 %v7421_v6, 16  ;;  %3545 = vmatmul.mubr.bf16.gmra.mrb[24].mxu0 %v7417_v41  ;;  %v3119_v51 = vrot.slane %v3117_v36, 1 }
 0x2c1   : > { %v3115_v4 = vor.u32 %v3114_v1, %v3110_v21  ;;  %v3005_v45 = vrot.slane %v3003_v20, 7  ;;  %v3006_v49 = vshll.u32 %v7423_v2, 16  ;;  %v3017_v29 = vshrl.u32 %v2936_v57, 16 }
 0x2c2   : > { %v7473_v32 = vsel %vm7360_vm4, 0, %v3001_v46  ;;  %v7477_v53 = vsel %vm7360_vm4, 0, %v2994_v25  ;;  %v3141_v50 = vshll.u32 %v7466_v8, 16  ;;  %v7487_v52 = vsel %vm7360_vm4, %v2991_v40, 0 }
 0x2c3   : > { %v7481_v55 = vsel %vm1310_vm3, %v3115_v4, %v3119_v51  ;;  %v3136_v30 = vshll.u32 %v7473_v32, 16  ;;  %v3013_v3 = vshll.u32 %v7421_v6, 16  ;;  %v3134_v2 = vshrl.u32 %v7473_v32, 16 }
 0x2c4   : > { %3552 = vmatprep.mubr.bf16.mxu0 %v7481_v55  ;;  %v3124_v56 = vshll.u32 %v7477_v53, 16  ;;  %v3129_v7 = vshll.u32 %v7487_v52, 16  ;;  %v3008_v54 = vor.u32 %v3006_v49, %v3005_v45  ;;  %v7496_v9 = vsel %vm7360_vm4, %v3005_v45, 0 }
 0x2c5   : > { %v3138_v5 = vrot.slane %v3136_v30, 1  ;;  %v3012_v13 = vrot.slane %v3010_v47, 7  ;;  %v3020_v14 = vshll.u32 %v2936_v57, 16  ;;  %v3122_v27 = vshrl.u32 %v7477_v53, 16 }
 0x2c6   : > { %v3126_v10 = vrot.slane %v3124_v56, 1  ;;  %v3019_v6 = vrot.slane %v3017_v29, 7  ;;  %v3143_v15 = vrot.slane %v3141_v50, 1  ;;  %v7505_v17 = vsel %vm7360_vm4, 0, %v3008_v54  ;;  %v6234_v29 = vld [vmem:[%s8066_s8 + $0x158] sm:$0xff]  }
 0x2c7   : > { %v3139_v11 = vor.u32 %v3138_v5, %v3134_v2  ;;  %v3015_v18 = vor.u32 %v3013_v3, %v3012_v13  ;;  %v3131_v23 = vrot.slane %v3129_v7, 1  ;;  %v3148_v19 = vshll.u32 %v7505_v17, 16  ;;  %v6235_v2 = vld [vmem:[%s8066_s8 + $0x160] sm:$0xff]  }
 0x2c8   : > { %v3127_v43 = vor.u32 %v3126_v10, %v3122_v27  ;;  %v3153_v20 = vshll.u32 %v7496_v9, 16  ;;  %3553 = vmatmul.mubr.bf16.gmra.mrb[28].mxu0 %v7438_v63  ;;  %v7522_v0 = vsel %vm7360_vm4, %v3012_v13, 0  ;;  %v3022_v35 = vor.u32 %v3020_v14, %v3019_v6 }
 0x2c9   : > { %v7510_v22 = vsel %vm1310_vm3, %v3139_v11, %v3143_v15  ;;  %v7518_v44 = vsel %vm7360_vm4, 0, %v3015_v18  ;;  %v3146_v37 = vshrl.u32 %v7505_v17, 16  ;;  %v3150_v39 = vrot.slane %v3148_v19, 1 }
 0x2ca   : > { %3568 = vmatprep.mubr.bf16.mxu1 %v7510_v22  ;;  %v7526_v36 = vsel %vm1310_vm3, %v3127_v43, %v3131_v23  ;;  %v3160_v21 = vshll.u32 %v7518_v44, 16  ;;  %v2950_v40 = vsel %vm7459_vm1, 0, %v2928_v12  ;;  %v2944_v57 = vstv %s7501_s25  ;;  %v6236_v23 = vld [vmem:[%s8066_s8 + $0x168] sm:$0xff]  }
 0x2cb   : > { %3569 = vmatmul.mubr.bf16.vlgmr.msra.gmra.mrb[0].mxu1 %v7473_v32  ;;  %3560 = vmatprep.mubr.bf16.mxu0 %v7526_v36  ;;  %v3151_v1 = vor.u32 %v3150_v39, %v3146_v37  ;;  %v3155_v46 = vrot.slane %v3153_v20, 1  ;;  %v7541_v47 = vsel %vm7360_vm4, 0, %v3022_v35  ;;  %v3158_v26 = vshrl.u32 %v7518_v44, 16 }
 0x2cc   : > { %5814 = vmatpush3.bf16.msra.mxu1 %v7322_v62  ;;  %v3162_v25 = vrot.slane %v3160_v21, 1  ;;  %v3165_v12 = vshll.u32 %v7522_v0, 16  ;;  %vm2945_vm5 = vcmp.eq.s32.totalorder %v2944_v57, 1  ;;  %v3172_v4 = vshll.u32 %v7541_v47, 16 }
 0x2cd   : > { %5815 = vmatprep.subr.bf16.mxu1 %v6232_v34  ;;  %v7549_v59 = vsel %vm1310_vm3, %v3151_v1, %v3155_v46  ;;  %v2961_v51 = vshrl.u32 %v2950_v40, 16  ;;  %v2959_v45 = vsel %vm2945_vm5, 0, %v2937_v42  ;;  %v7562_v30 = vsel %vm7360_vm4, %v3019_v6, 0 }
 0x2ce   : > { %3576 = vmatprep.mubr.bf16.mxu1 %v7549_v59  ;;  %v3163_v62 = vor.u32 %v3162_v25, %v3158_v26  ;;  %v3167_v49 = vrot.slane %v3165_v12, 1  ;;  %v2964_v50 = vshll.u32 %v2950_v40, 16  ;;  %v3174_v16 = vrot.slane %v3172_v4, 1  ;;  %v6237_v25 = vld [vmem:[%s8066_s8 + $0x170] sm:$0xff]  }
 0x2cf   : > { %v2963_v38 = vrot.slane %v2961_v51, 7  ;;  %v3024_v42 = vshrl.u32 %v2959_v45, 16  ;;  %v3170_v56 = vshrl.u32 %v7541_v47, 16  ;;  %v3177_v7 = vshll.u32 %v7562_v30, 16 }
 0x2d0   : > { %5816 = vmatpush3.bf16.msra.mxu1 %v6232_v34  ;;  %3561 = vmatmul.mubr.bf16.gmra.mrb[32].mxu0 %v7477_v53  ;;  %v7566_v3 = vsel %vm1310_vm3, %v3163_v62, %v3167_v49  ;;  %v3027_v14 = vshll.u32 %v2959_v45, 16  ;;  %v3226_v4 = vrot.slane %v7374_v58, 1 }
 0x2d1   : > { %5817 = vmatprep.subr.bf16.mxu1 %v6233_v24  ;;  %v2966_v5 = vor.u32 %v2964_v50, %v2963_v38  ;;  %v3063_v54 = vsel %vm7360_vm4, %v2963_v38, 0  ;;  %v3026_v13 = vrot.slane %v3024_v42, 7  ;;  %v3175_v27 = vor.u32 %v3174_v16, %v3170_v56  ;;  %v6238_v50 = vld [vmem:[%s8066_s8 + $0x178] sm:$0xff]  }
 0x2d2   : > { %v3081_v11 = vshll.u32 %v3063_v54, 16  ;;  %v3224_v18 = vrot.slane %v3063_v54, 1  ;;  %v3179_v43 = vrot.slane %v3177_v7, 1  ;;  %v3229_v42 = vrot.slane %v7417_v41, 1  ;;  %v6240_v7 = vld [vmem:[%s8066_s8] sm:$0xff]   ;;  %v6241_v54 = vld [vmem:[%s8066_s8 + $0x48] sm:$0xff]  }
 0x2d3   : > { %3577 = vmatmul.mubr.bf16.gmra.mrb[4].mxu1 %v7505_v17  ;;  %v7578_v10 = vsel %vm7360_vm4, 0, %v2966_v5  ;;  %v3029_v19 = vor.u32 %v3027_v14, %v3026_v13  ;;  %v3072_v20 = vsel %vm7360_vm4, %v3026_v13, 0  ;;  %v3230_v56 = vrot.slane %v7411_v28, 1  ;;  %v6242_v28 = vld [vmem:[%s8066_s8 + $0x8] sm:$0xff]  }
 0x2d4   : > { %5818 = vmatpush3.bf16.msra.mxu1 %v6233_v24  ;;  %3584 = vmatprep.mubr.bf16.mxu1 %v7566_v3  ;;  %v3076_v6 = vshll.u32 %v7578_v10, 16  ;;  %v3223_v15 = vrot.slane %v7578_v10, 1  ;;  %v3074_v34 = vshrl.u32 %v7578_v10, 16  ;;  %v7593_v39 = vsel %vm1310_vm3, %v3175_v27, %v3179_v43  ;;  %v6245_v43 = vld [vmem:[%s8066_s8 + $0x58] sm:$0xff]  }
 0x2d5   : > { %5819 = vmatprep.subr.bf16.mxu1 %v6234_v29  ;;  %v7597_v21 = vsel %vm7360_vm4, 0, %v3029_v19  ;;  %v3083_v57 = vrot.slane %v3081_v11, 1  ;;  %v3189_v46 = vshll.u32 %v3072_v20, 16  ;;  %v3251_v26 = vrot.slane %v3072_v20, 1 }
 0x2d6   : > { %v3078_v35 = vrot.slane %v3076_v6, 1  ;;  %v7589_v37 = vsel %vm1479_vm2, %v3223_v15, %v3224_v18  ;;  %v3184_v1 = vshll.u32 %v7597_v21, 16  ;;  %v3250_v24 = vrot.slane %v7597_v21, 1  ;;  %v6244_v15 = vld [vmem:[%s8066_s8 + $0x10] sm:$0xff]  }
 0x2d7   : > { %v3182_v12 = vshrl.u32 %v7597_v21, 16  ;;  %v3191_v49 = vrot.slane %v3189_v46, 1  ;;  %v3233_v5 = vrot.slane %v7445_v33, 1  ;;  %v7639_v13 = vsel %vm1479_vm2, %v3229_v42, %v3230_v56  ;;  %v6243_v33 = vld [vmem:[%s8066_s8 + $0x50] sm:$0xff]   ;;  %v6264_v42 = vld [vmem:[%s8066_s8 + $0x180] sm:$0xff]   ;;  %v6266_v56 = vld [vmem:[%s8066_s8 + $0x188] sm:$0xff]  }
 0x2d8   : > { %5820 = vmatpush3.bf16.msra.mxu1 %v6234_v29  ;;  %v3079_v40 = vor.u32 %v3078_v35, %v3074_v34  ;;  %v3186_v62 = vrot.slane %v3184_v1, 1  ;;  %v7611_v51 = vsel %vm1479_vm2, %v3250_v24, %v3251_v26  ;;  %v3227_v29 = vrot.slane %v7378_v61, 1  ;;  %v6239_v61 = vld [vmem:[%s8066_s8 + $0x40] sm:$0xff]   ;;  %v6249_v1 = vld [vmem:[%s8066_s8 + $0x68] sm:$0xff]  }
 0x2d9   : > { %5821 = vmatprep.subr.bf16.mxu1 %v6235_v2  ;;  %v3235_v27 = vrot.slane %v7477_v53, 1  ;;  %v3238_v6 = vrot.slane %v7473_v32, 1  ;;  %v3236_v11 = vrot.slane %v7487_v52, 1  ;;  %v3239_v18 = vrot.slane %v7466_v8, 1  ;;  %v6246_v52 = vld [vmem:[%s8066_s8 + $0x18] sm:$0xff]   ;;  %v6247_v8 = vld [vmem:[%s8066_s8 + $0x60] sm:$0xff]  }
 0x2da   : > { %v7606_v48 = vsel %vm1310_vm3, %v3079_v40, %v3083_v57  ;;  %v3187_v45 = vor.u32 %v3186_v62, %v3182_v12  ;;  %v7622_v38 = vsel %vm1479_vm2, %v3226_v4, %v3227_v29  ;;  %v3241_v20 = vrot.slane %v7505_v17, 1  ;;  %v6248_v40 = vld [vmem:[%s8066_s8 + $0x20] sm:$0xff]   ;;  %v6252_v12 = vld [vmem:[%s8066_s8 + $0x30] sm:$0xff]   ;;  %v6253_v62 = vld [vmem:[%s8066_s8 + $0x78] sm:$0xff]  }
 0x2db   : > { %3585 = vmatmul.mubr.bf16.gmra.mrb[8].mxu1 %v7518_v44  ;;  %v7667_v19 = vsel %vm1479_vm2, %v3238_v6, %v3239_v18  ;;  %v3244_v34 = vrot.slane %v7518_v44, 1  ;;  %v3242_v35 = vrot.slane %v7496_v9, 1  ;;  %v3245_v57 = vrot.slane %v7522_v0, 1  ;;  %v6250_v9 = vld [vmem:[%s8066_s8 + $0x28] sm:$0xff]   ;;  %v6251_v0 = vld [vmem:[%s8066_s8 + $0x70] sm:$0xff]   ;;  %v6258_v29 = vld [vmem:[%s8066_s8 + $0x98] sm:$0xff]  }
 0x2dc   : > { %5822 = vmatpush3.bf16.msra.mxu1 %v6235_v2  ;;  %3592 = vmatprep.mubr.bf16.mxu1 %v7593_v39  ;;  %v7618_v16 = vsel %vm1310_vm3, %v3187_v45, %v3191_v49  ;;  %v3232_v2 = vrot.slane %v7438_v63, 1  ;;  %v3247_v24 = vrot.slane %v7541_v47, 1  ;;  %v3248_v26 = vrot.slane %v7562_v30, 1  ;;  %v6254_v30 = vld [vmem:[%s8066_s8 + $0x38] sm:$0xff]   ;;  %v6255_v45 = vld [vmem:[%s8066_s8 + $0x80] sm:$0xff]   ;;  %v6256_v49 = vld [vmem:[%s8066_s8 + $0x88] sm:$0xff]  }
 0x2dd   : > { %5823 = vmatprep.subr.bf16.mxu1 %v6236_v23  ;;  %v7687_v46 = vsel %vm1479_vm2, %v3241_v20, %v3242_v35  ;;  %v6275_v6 = vld [vmem:[%s8066_s8 + $0x1f0] sm:$0xff]   ;;  %v6278_v18 = vld [vmem:[%s8066_s8 + $0x1b8] sm:$0xff]  }
 0x2de   : > { %v7643_v14 = vsel %vm1479_vm2, %v3232_v2, %v3233_v5  ;;  %v7709_v4 = vsel %vm1479_vm2, %v3247_v24, %v3248_v26  ;;  %v6265_v2 = vld [vmem:[%s8066_s8 + $0x1c8] sm:$0xff]   ;;  %v6270_v5 = vld [vmem:[%s8066_s8 + $0x198] sm:$0xff]  }
 0x2e0   : > { %5824 = vmatpush3.bf16.msra.mxu1 %v6236_v23  ;;  %v7663_v23 = vsel %vm1479_vm2, %v3235_v27, %v3236_v11  ;;  %v6274_v27 = vld [vmem:[%s8066_s8 + $0x1a8] sm:$0xff]   ;;  %v6276_v11 = vld [vmem:[%s8066_s8 + $0x1b0] sm:$0xff]  }
 0x2e1   : > { %5825 = vmatprep.subr.bf16.mxu1 %v6237_v25 }
 0x2e3   : > { %3593 = vmatmul.mubr.bf16.gmra.mrb[12].mxu1 %v7541_v47 }
 0x2e4   : > { %5826 = vmatpush3.bf16.msra.mxu1 %v6237_v25  ;;  %5829 = vmatprep.mubr.bf16.mxu1 %v7622_v38  ;;  %v7691_v25 = vsel %vm1479_vm2, %v3244_v34, %v3245_v57 }
 0x2e5   : > { %5827 = vmatprep.subr.bf16.mxu1 %v6238_v50 }
 0x2e8   : > { %5828 = vmatpush3.bf16.msra.mxu1 %v6238_v50  ;;  %v6262_v50 = vld [vmem:[%s8066_s8 + $0xb8] sm:$0xff]  }
 0x2e9   : > { %5521 = vmatprep.subr.bf16.mxu1 %v6239_v61  ;;  %v6263_v61 = vld [vmem:[%s8066_s8 + $0x1c0] sm:$0xff]  }
 0x2eb   : > { %5830 = vmatmul.mubr.bf16.vlgmr.msra.gmra.mrb[16].mxu1 %v7639_v13 }
 0x2ec   : > { %5522 = vmatpush3.bf16.msra.mxu1 %v6240_v7  ;;  %5833 = vmatprep.mubr.bf16.mxu1 %v7643_v14  ;;  %v6268_v7 = vld [vmem:[%s8066_s8 + $0x190] sm:$0xff]  }
 0x2ed   : > { %5523 = vmatprep.subr.bf16.mxu1 %v6241_v54  ;;  %v6271_v54 = vld [vmem:[%s8066_s8 + $0x1e0] sm:$0xff]  }
 0x2f0   : > { %5524 = vmatpush3.bf16.msra.mxu1 %v6242_v28  ;;  %v6272_v28 = vld [vmem:[%s8066_s8 + $0x1a0] sm:$0xff]  }
 0x2f1   : > { %5525 = vmatprep.subr.bf16.mxu1 %v6243_v33  ;;  %v6273_v33 = vld [vmem:[%s8066_s8 + $0x1e8] sm:$0xff]  }
 0x2f3   : > { %5834 = vmatmul.mubr.bf16.gmra.mrb[20].mxu1 %v7663_v23 }
 0x2f4   : > { %5526 = vmatpush3.bf16.msra.mxu1 %v6244_v15  ;;  %5837 = vmatprep.mubr.bf16.mxu1 %v7667_v19  ;;  %v6277_v15 = vld [vmem:[%s8066_s8 + $0x1f8] sm:$0xff]  }
 0x2f5   : > { %5527 = vmatprep.subr.bf16.mxu1 %v6245_v43  ;;  %v6279_v43 = vld [vmem:[%s8066_s8 + $0x200] sm:$0xff]  }
 0x2f8   : > { %5528 = vmatpush3.bf16.msra.mxu1 %v6246_v52  ;;  %v6280_v52 = vld [vmem:[%s8066_s8 + $0x208] sm:$0xff]  }
 0x2f9   : > { %5529 = vmatprep.subr.bf16.mxu1 %v6247_v8  ;;  %v6282_v8 = vld [vmem:[%s8066_s8 + $0x218] sm:$0xff]  }
 0x2fb   : > { %5838 = vmatmul.mubr.bf16.gmra.mrb[24].mxu1 %v7687_v46 }
 0x2fc   : > { %5530 = vmatpush3.bf16.msra.mxu1 %v6248_v40  ;;  %5841 = vmatprep.mubr.bf16.mxu1 %v7691_v25 }
 0x2fd   : > { %5531 = vmatprep.subr.bf16.mxu1 %v6249_v1 }
 0x300   : > { %5532 = vmatpush3.bf16.msra.mxu1 %v6250_v9 }
 0x301   : > { %5533 = vmatprep.subr.bf16.mxu1 %v6251_v0 }
 0x303   : > { %5842 = vmatmul.mubr.bf16.gmra.mrb[28].mxu1 %v7709_v4 }
 0x304   : > { %5534 = vmatpush3.bf16.msra.mxu1 %v6252_v12  ;;  %3874 = vmatprep.mubr.bf16.mxu1 %v7606_v48  ;;  %v6257_v48 = vld [vmem:[%s8066_s8 + $0x90] sm:$0xff]  }
 0x305   : > { %5535 = vmatprep.subr.bf16.mxu1 %v6253_v62 }
 0x308   : > { %5536 = vmatpush3.bf16.msra.mxu1 %v6254_v30 }
 0x309   : > { %5845 = vmatprep.subr.bf16.mxu1 %v6255_v45 }
 0x30b   : > { %3875 = vmatmul.mubr.bf16.vlgmr.msra.gmra.mrb[32].mxu1 %v7578_v10  ;;  %v6260_v10 = vld [vmem:[%s8066_s8 + $0xa8] sm:$0xff]  }
 0x30c   : > { %5846 = vmatpush3.bf16.msra.mxu1 %v6255_v45  ;;  %3882 = vmatprep.mubr.bf16.mxu1 %v7404_v31  ;;  %v6259_v31 = vld [vmem:[%s8066_s8 + $0xa0] sm:$0xff]  }
 0x30d   : > { %5847 = vmatprep.subr.bf16.mxu1 %v6256_v49 }
 0x310   : > { %5848 = vmatpush3.bf16.msra.mxu1 %v6256_v49 }
 0x311   : > { %5849 = vmatprep.subr.bf16.mxu1 %v6257_v48 }
 0x313   : > { %3883 = vmatmul.mubr.bf16.gmra.mrb[36].mxu1 %v7374_v58  ;;  %v6261_v58 = vld [vmem:[%s8066_s8 + $0xb0] sm:$0xff]  }
 0x314   : > { %3890 = vmatprep.mubr.bf16.mxu1 %v7455_v60  ;;  %5850 = vmatpush3.bf16.msra.mxu1 %v6257_v48 }
 0x315   : > { %5851 = vmatprep.subr.bf16.mxu1 %v6258_v29 }
 0x318   : > { %5852 = vmatpush3.bf16.msra.mxu1 %v6258_v29 }
 0x319   : > { %5853 = vmatprep.subr.bf16.mxu1 %v6259_v31 }
 0x31b   : > { %3891 = vmatmul.mubr.bf16.gmra.mrb[40].mxu1 %v7417_v41 }
 0x31c   : > { %3898 = vmatprep.mubr.bf16.mxu1 %v7481_v55  ;;  %5854 = vmatpush3.bf16.msra.mxu1 %v6259_v31 }
 0x31d   : > { %5855 = vmatprep.subr.bf16.mxu1 %v6260_v10 }
 0x320   : > { %5856 = vmatpush3.bf16.msra.mxu1 %v6260_v10 }
 0x321   : > { %5857 = vmatprep.subr.bf16.mxu1 %v6261_v58 }
 0x323   : > { %3899 = vmatmul.mubr.bf16.gmra.mrb[44].mxu1 %v7438_v63 }
 0x324   : > { %3906 = vmatprep.mubr.bf16.mxu1 %v7526_v36  ;;  %5858 = vmatpush3.bf16.msra.mxu1 %v6261_v58 }
 0x325   : > { %5859 = vmatprep.subr.bf16.mxu1 %v6262_v50 }
 0x328   : > { %5860 = vmatpush3.bf16.msra.mxu1 %v6262_v50 }
 0x329   : > { %5601 = vmatprep.subr.bf16.mxu1 %v6263_v61 }
 0x32b   : > { %3907 = vmatmul.mubr.bf16.gmra.mrb[48].mxu1 %v7477_v53 }
 0x32c   : > { %3914 = vmatprep.mubr.bf16.mxu1 %v7510_v22 }
 0x333   : > { %3915 = vmatmul.mubr.bf16.gmra.mrb[52].mxu1 %v7473_v32 }
 0x334   : > { %3922 = vmatprep.mubr.bf16.mxu1 %v7549_v59 }
 0x33b   : > { %3923 = vmatmul.mubr.bf16.gmra.mrb[56].mxu1 %v7505_v17 }
 0x33c   : > { %3930 = vmatprep.mubr.bf16.mxu1 %v7566_v3 }
 0x343   : > { %3931 = vmatmul.mubr.bf16.gmra.mrb[60].mxu1 %v7518_v44 }
 0x344   : > { %5861 = vmatprep.mubr.bf16.mxu1 %v7589_v37  ;;  %v6267_v37 = vld [vmem:[%s8066_s8 + $0x1d0] sm:$0xff]  }
 0x34b   : > { %5862 = vmatmul.mubr.bf16.vlgmr.msra.gmra.mrb[16].mxu1 %v7622_v38  ;;  %v6269_v38 = vld [vmem:[%s8066_s8 + $0x1d8] sm:$0xff]  }
 0x34c   : > { %5602 = vmatpush3.bf16.msra.mxu1 %v6264_v42  ;;  %5865 = vmatprep.mubr.bf16.mxu1 %v7639_v13 }
 0x34d   : > { %5603 = vmatprep.subr.bf16.mxu1 %v6265_v2 }
 0x350   : > { %5604 = vmatpush3.bf16.msra.mxu1 %v6266_v56 }
 0x351   : > { %5605 = vmatprep.subr.bf16.mxu1 %v6267_v37 }
 0x353   : > { %5866 = vmatmul.mubr.bf16.gmra.mrb[20].mxu1 %v7643_v14 }
 0x354   : > { %5606 = vmatpush3.bf16.msra.mxu1 %v6268_v7  ;;  %5869 = vmatprep.mubr.bf16.mxu1 %v7663_v23 }
 0x355   : > { %5607 = vmatprep.subr.bf16.mxu1 %v6269_v38 }
 0x358   : > { %5608 = vmatpush3.bf16.msra.mxu1 %v6270_v5 }
 0x359   : > { %5609 = vmatprep.subr.bf16.mxu1 %v6271_v54 }
 0x35b   : > { %5870 = vmatmul.mubr.bf16.gmra.mrb[24].mxu1 %v7667_v19 }
 0x35c   : > { %5610 = vmatpush3.bf16.msra.mxu1 %v6272_v28  ;;  %5873 = vmatprep.mubr.bf16.mxu1 %v7687_v46 }
 0x35d   : > { %5611 = vmatprep.subr.bf16.mxu1 %v6273_v33 }
 0x360   : > { %5612 = vmatpush3.bf16.msra.mxu1 %v6274_v27 }
 0x361   : > { %5613 = vmatprep.subr.bf16.mxu1 %v6275_v6 }
 0x363   : > { %5874 = vmatmul.mubr.bf16.gmra.mrb[28].mxu1 %v7691_v25 }
 0x364   : > { %5614 = vmatpush3.bf16.msra.mxu1 %v6276_v11  ;;  %4261 = vmatprep.mubr.bf16.mxu1 %v7455_v60  ;;  %v6281_v60 = vld [vmem:[%s8066_s8 + $0x210] sm:$0xff]  }
 0x365   : > { %5615 = vmatprep.subr.bf16.mxu1 %v6277_v15 }
 0x368   : > { %5616 = vmatpush3.bf16.msra.mxu1 %v6278_v18 }
 0x369   : > { %5877 = vmatprep.subr.bf16.mxu1 %v6279_v43 }
 0x36b   : > { %4262 = vmatmul.mubr.bf16.vlgmr.msra.gmra.mrb[64].mxu1 %v7417_v41  ;;  %v6283_v41 = vld [vmem:[%s8066_s8 + $0x220] sm:$0xff]  }
 0x36c   : > { %5878 = vmatpush3.bf16.msra.mxu1 %v6279_v43  ;;  %4269 = vmatprep.mubr.bf16.mxu1 %v7481_v55  ;;  %v6284_v55 = vld [vmem:[%s8066_s8 + $0x228] sm:$0xff]  }
 0x36d   : > { %5879 = vmatprep.subr.bf16.mxu1 %v6280_v52 }
 0x370   : > { %5880 = vmatpush3.bf16.msra.mxu1 %v6280_v52 }
 0x371   : > { %5881 = vmatprep.subr.bf16.mxu1 %v6281_v60 }
 0x373   : > { %4270 = vmatmul.mubr.bf16.gmra.mrb[68].mxu1 %v7438_v63  ;;  %v6285_v63 = vld [vmem:[%s8066_s8 + $0x230] sm:$0xff]  }
 0x374   : > { %4277 = vmatprep.mubr.bf16.mxu1 %v7526_v36  ;;  %5882 = vmatpush3.bf16.msra.mxu1 %v6281_v60  ;;  %v6286_v36 = vld [vmem:[%s8066_s8 + $0x238] sm:$0xff]  }
 0x375   : > { %5883 = vmatprep.subr.bf16.mxu1 %v6282_v8 }
 0x378   : > { %5884 = vmatpush3.bf16.msra.mxu1 %v6282_v8 }
 0x379   : > { %5885 = vmatprep.subr.bf16.mxu1 %v6283_v41 }
 0x37b   : > { %4278 = vmatmul.mubr.bf16.gmra.mrb[72].mxu1 %v7477_v53 }
 0x37c   : > { %4285 = vmatprep.mubr.bf16.mxu1 %v7510_v22  ;;  %5886 = vmatpush3.bf16.msra.mxu1 %v6283_v41 }
 0x37d   : > { %5887 = vmatprep.subr.bf16.mxu1 %v6284_v55 }
 0x380   : > { %5888 = vmatpush3.bf16.msra.mxu1 %v6284_v55 }
 0x381   : > { %5889 = vmatprep.subr.bf16.mxu1 %v6285_v63 }
 0x383   : > { %4286 = vmatmul.mubr.bf16.gmra.mrb[76].mxu1 %v7473_v32 }
 0x384   : > { %4293 = vmatprep.mubr.bf16.mxu1 %v7549_v59  ;;  %5890 = vmatpush3.bf16.msra.mxu1 %v6285_v63  ;;  %v5457_v53 = vpop.f32.mrb[20].mxu0 }
 0x385   : > { %5891 = vmatprep.subr.bf16.mxu1 %v6286_v36  ;;  %v5458_v22 = vpop.f32.mrb[21].mxu0 }
 0x386   : > { %v7844_v20 = vadd.f32 %v5458_v22, %v5457_v53  ;;  %v5460_v34 = vpop.f32.mrb[22].mxu0 }
 0x387   : > { %v5461_v35 = vpop.f32.mrb[23].mxu0 }
 0x388   : > { %5892 = vmatpush3.bf16.msra.mxu1 %v6286_v36  ;;  %v7846_v40 = vadd.f32 %v5461_v35, %v5460_v34 }
 0x38b   : > { %4294 = vmatmul.mubr.bf16.gmra.mrb[80].mxu1 %v7505_v17 }
 0x38c   : > { %4301 = vmatprep.mubr.bf16.mxu1 %v7566_v3 }
 0x393   : > { %4302 = vmatmul.mubr.bf16.gmra.mrb[84].mxu1 %v7518_v44  ;;  %v5463_v32 = vpop.f32.mrb[24].mxu0 }
 0x394   : > { %4309 = vmatprep.mubr.bf16.mxu1 %v7593_v39  ;;  %v5464_v59 = vpop.f32.mrb[25].mxu0 }
 0x395   : > { %v7852_v57 = vadd.f32 %v5464_v59, %v5463_v32  ;;  %v5466_v1 = vpop.f32.mrb[26].mxu0 }
 0x396   : > { %v5467_v9 = vpop.f32.mrb[27].mxu0 }
 0x397   : > { %v7854_v0 = vadd.f32 %v5467_v9, %v5466_v1 }
 0x39b   : > { %4310 = vmatmul.mubr.bf16.gmra.mrb[88].mxu1 %v7541_v47  ;;  %v5469_v24 = vpop.f32.mrb[28].mxu0 }
 0x39c   : > { %4317 = vmatprep.mubr.bf16.mxu1 %v7618_v16  ;;  %v5470_v17 = vpop.f32.mrb[29].mxu0 }
 0x39d   : > { %v7858_v3 = vadd.f32 %v5470_v17, %v5469_v24  ;;  %v5472_v44 = vpop.f32.mrb[30].mxu0 }
 0x39e   : > { %v5481_v26 = vpop.f32.mrb[0].mxu1  ;;  %v5473_v39 = vpop.f32.mrb[31].mxu0 }
 0x39f   : > { %v5482_v12 = vpop.f32.mrb[1].mxu1  ;;  %v5474_v45 = vadd.f32 %v5473_v39, %v5472_v44 }
 0x3a0   : > { %v7860_v62 = vadd.f32 %v5482_v12, %v5481_v26  ;;  %v5484_v30 = vpop.f32.mrb[2].mxu1 }
 0x3a1   : > { %v5485_v49 = vpop.f32.mrb[3].mxu1 }
 0x3a2   : > { %v7862_v48 = vadd.f32 %v5485_v49, %v5484_v30 }
 0x3a3   : > { %4318 = vmatmul.mubr.bf16.gmra.mrb[92].mxu1 %v7597_v21  ;;  %v5475_v47 = vpop.f32.mrb[32].mxu0 }
 0x3a4   : > { %5893 = vmatprep.mubr.bf16.mxu1 %v7639_v13  ;;  %v5476_v16 = vpop.f32.mrb[33].mxu0 }
 0x3a5   : > { %v5477_v31 = vadd.f32 %v5476_v16, %v5475_v47  ;;  %v5478_v10 = vpop.f32.mrb[34].mxu0 }
 0x3a6   : > { %v5487_v29 = vpop.f32.mrb[4].mxu1  ;;  %v5479_v50 = vpop.f32.mrb[35].mxu0 }
 0x3a7   : > { %v5488_v58 = vpop.f32.mrb[5].mxu1  ;;  %v5480_v2 = vadd.f32 %v5479_v50, %v5478_v10 }
 0x3a8   : > { %v7866_v61 = vadd.f32 %v5488_v58, %v5487_v29  ;;  %v5490_v42 = vpop.f32.mrb[6].mxu1 }
 0x3a9   : > { %v5491_v56 = vpop.f32.mrb[7].mxu1 }
 0x3aa   : > { %v7868_v37 = vadd.f32 %v5491_v56, %v5490_v42 }
 0x3ab   : > { %5894 = vmatmul.mubr.bf16.vlgmr.msra.gmra.mrb[16].mxu1 %v7643_v14 }
 0x3ac   : > { %5897 = vmatprep.mubr.bf16.mxu1 %v7663_v23 }
 0x3ae   : > { %v5493_v21 = vpop.f32.mrb[8].mxu1 }
 0x3af   : > { %v5494_v13 = vpop.f32.mrb[9].mxu1 }
 0x3b0   : > { %v7872_v7 = vadd.f32 %v5494_v13, %v5493_v21  ;;  %v5496_v38 = vpop.f32.mrb[10].mxu1 }
 0x3b1   : > { %v5497_v5 = vpop.f32.mrb[11].mxu1 }
 0x3b2   : > { %v7874_v54 = vadd.f32 %v5497_v5, %v5496_v38 }
 0x3b3   : > { %5898 = vmatmul.mubr.bf16.gmra.mrb[20].mxu1 %v7667_v19 }
 0x3b4   : > { %5901 = vmatprep.mubr.bf16.mxu1 %v7687_v46 }
 0x3b6   : > { %v5499_v28 = vpop.f32.mrb[12].mxu1 }
 0x3b7   : > { %v5500_v33 = vpop.f32.mrb[13].mxu1 }
 0x3b8   : > { %v7878_v27 = vadd.f32 %v5500_v33, %v5499_v28  ;;  %v5502_v6 = vpop.f32.mrb[14].mxu1 }
 0x3b9   : > { %v5503_v14 = vpop.f32.mrb[15].mxu1 }
 0x3ba   : > { %v7880_v11 = vadd.f32 %v5503_v14, %v5502_v6 }
 0x3bb   : > { %5902 = vmatmul.mubr.bf16.gmra.mrb[24].mxu1 %v7691_v25 }
 0x3bc   : > { %5905 = vmatprep.mubr.bf16.mxu1 %v7709_v4 }
 0x3c3   : > { %5906 = vmatmul.mubr.bf16.gmra.mrb[28].mxu1 %v7611_v51 }
 0x3de   : > { %v5537_v23 = vpop.f32.mrb[32].mxu1 }
 0x3df   : > { %v5538_v15 = vpop.f32.mrb[33].mxu1 }
 0x3e0   : > { %v5539_v18 = vadd.f32 %v5538_v15, %v5537_v23  ;;  %v5540_v19 = vpop.f32.mrb[34].mxu1 }
 0x3e1   : > { %v5541_v43 = vpop.f32.mrb[35].mxu1 }
 0x3e2   : > { %v7886_v46 = vadd.f32 %v5539_v18, %v7844_v20  ;;  %v5542_v52 = vadd.f32 %v5541_v43, %v5540_v19 }
 0x3e4   : > { %v7889_v60 = vadd.f32 %v5542_v52, %v7846_v40 }
 0x3e6   : > { %v5543_v8 = vpop.f32.mrb[36].mxu1 }
 0x3e7   : > { %v5544_v41 = vpop.f32.mrb[37].mxu1 }
 0x3e8   : > { %v5545_v55 = vadd.f32 %v5544_v41, %v5543_v8  ;;  %v5546_v25 = vpop.f32.mrb[38].mxu1 }
 0x3e9   : > { %v5547_v63 = vpop.f32.mrb[39].mxu1 }
 0x3ea   : > { %v7892_v4 = vadd.f32 %v5545_v55, %v7852_v57  ;;  %v5548_v51 = vadd.f32 %v5547_v63, %v5546_v25 }
 0x3ec   : > { %v7895_v36 = vadd.f32 %v5548_v51, %v7854_v0 }
 0x3ee   : > { %v5549_v53 = vpop.f32.mrb[40].mxu1 }
 0x3ef   : > { %v5550_v22 = vpop.f32.mrb[41].mxu1 }
 0x3f0   : > { %v5551_v20 = vadd.f32 %v5550_v22, %v5549_v53  ;;  %v5552_v34 = vpop.f32.mrb[42].mxu1 }
 0x3f1   : > { %v5553_v35 = vpop.f32.mrb[43].mxu1 }
 0x3f2   : > { %v7898_v40 = vadd.f32 %v5551_v20, %v7858_v3  ;;  %v5554_v32 = vadd.f32 %v5553_v35, %v5552_v34 }
 0x3f4   : > { %v7900_v59 = vadd.f32 %v5554_v32, %v5474_v45 }
 0x3f6   : > { %v5555_v1 = vpop.f32.mrb[44].mxu1 }
 0x3f7   : > { %v5556_v9 = vpop.f32.mrb[45].mxu1 }
 0x3f8   : > { %v5557_v24 = vadd.f32 %v5556_v9, %v5555_v1  ;;  %v5558_v57 = vpop.f32.mrb[46].mxu1 }
 0x3f9   : > { %v5559_v17 = vpop.f32.mrb[47].mxu1 }
 0x3fa   : > { %v7902_v26 = vadd.f32 %v5557_v24, %v5477_v31  ;;  %v5560_v0 = vadd.f32 %v5559_v17, %v5558_v57 }
 0x3fc   : > { %v7904_v44 = vadd.f32 %v5560_v0, %v5480_v2 }
 0x3fe   : > { %v5561_v12 = vpop.f32.mrb[48].mxu1 }
 0x3ff   : > { %v5562_v39 = vpop.f32.mrb[49].mxu1 }
 0x400   : > { %v5563_v30 = vadd.f32 %v5562_v39, %v5561_v12  ;;  %v5564_v49 = vpop.f32.mrb[50].mxu1 }
 0x401   : > { %v5565_v47 = vpop.f32.mrb[51].mxu1 }
 0x402   : > { %v7907_v3 = vadd.f32 %v5563_v30, %v7860_v62  ;;  %v5566_v45 = vadd.f32 %v5565_v47, %v5564_v49 }
 0x404   : > { %v7910_v16 = vadd.f32 %v5566_v45, %v7862_v48 }
 0x406   : > { %v5567_v29 = vpop.f32.mrb[52].mxu1 }
 0x407   : > { %v5568_v10 = vpop.f32.mrb[53].mxu1 }
 0x408   : > { %v5569_v58 = vadd.f32 %v5568_v10, %v5567_v29  ;;  %v5570_v31 = vpop.f32.mrb[54].mxu1 }
 0x409   : > { %v5571_v50 = vpop.f32.mrb[55].mxu1 }
 0x40a   : > { %v7913_v42 = vadd.f32 %v5569_v58, %v7866_v61  ;;  %v5572_v2 = vadd.f32 %v5571_v50, %v5570_v31 }
 0x40c   : > { %v7916_v56 = vadd.f32 %v5572_v2, %v7868_v37 }
 0x40e   : > { %v5573_v21 = vpop.f32.mrb[56].mxu1 }
 0x40f   : > { %v5574_v13 = vpop.f32.mrb[57].mxu1 }
 0x410   : > { %v5575_v62 = vadd.f32 %v5574_v13, %v5573_v21  ;;  %v5576_v38 = vpop.f32.mrb[58].mxu1 }
 0x411   : > { %v5577_v5 = vpop.f32.mrb[59].mxu1 }
 0x412   : > { %v7919_v48 = vadd.f32 %v5575_v62, %v7872_v7  ;;  %v5578_v28 = vadd.f32 %v5577_v5, %v5576_v38 }
 0x414   : > { %v7922_v33 = vadd.f32 %v5578_v28, %v7874_v54 }
 0x416   : > { %v5579_v6 = vpop.f32.mrb[60].mxu1 }
 0x417   : > { %v5580_v14 = vpop.f32.mrb[61].mxu1 }
 0x418   : > { %v5581_v61 = vadd.f32 %v5580_v14, %v5579_v6  ;;  %v5582_v23 = vpop.f32.mrb[62].mxu1 }
 0x419   : > { %v5583_v15 = vpop.f32.mrb[63].mxu1 }
 0x41a   : > { %v7925_v37 = vadd.f32 %v5581_v61, %v7878_v27  ;;  %v5584_v18 = vadd.f32 %v5583_v15, %v5582_v23 }
 0x41c   : > { %v7928_v19 = vadd.f32 %v5584_v18, %v7880_v11 }
 0x43e   : > { %v5617_v43 = vpop.f32.mrb[64].mxu1 }
 0x43f   : > { %v5618_v52 = vpop.f32.mrb[65].mxu1 }
 0x440   : > { %v5619_v7 = vadd.f32 %v5618_v52, %v5617_v43  ;;  %v5620_v8 = vpop.f32.mrb[66].mxu1 }
 0x441   : > { %v5621_v41 = vpop.f32.mrb[67].mxu1 }
 0x442   : > { %v5622_v55 = vadd.f32 %v5621_v41, %v5620_v8  ;;  %v7931_v54 = vadd.f32 %v7886_v46, %v5619_v7 }
 0x444   : > { %v7934_v25 = vadd.f32 %v7889_v60, %v5622_v55 }
 0x446   : > { %v5623_v63 = vpop.f32.mrb[68].mxu1 }
 0x447   : > { %v5624_v51 = vpop.f32.mrb[69].mxu1 }
 0x448   : > { %v5625_v27 = vadd.f32 %v5624_v51, %v5623_v63  ;;  %v5626_v53 = vpop.f32.mrb[70].mxu1  ;;  %v7982_v63 = vld [vmem:[%s8097_s17] ss:$0 sm:$0xff] }
 0x449   : > { %v5627_v22 = vpop.f32.mrb[71].mxu1 }
 0x44a   : > { %v5628_v20 = vadd.f32 %v5627_v22, %v5626_v53  ;;  %v5926_v11 = vadd.f32 %v7892_v4, %v5625_v27 }
 0x44c   : > { %v5932_v34 = vadd.f32 %v7895_v36, %v5628_v20 }
 0x44e   : > { %v5629_v35 = vpop.f32.mrb[72].mxu1 }
 0x44f   : > { %v5630_v32 = vpop.f32.mrb[73].mxu1 }
 0x450   : > { %v5631_v1 = vadd.f32 %v5630_v32, %v5629_v35  ;;  %v5632_v9 = vpop.f32.mrb[74].mxu1 }
 0x451   : > { %v5633_v24 = vpop.f32.mrb[75].mxu1 }
 0x452   : > { %v5634_v46 = vadd.f32 %v5633_v24, %v5632_v9  ;;  %v7939_v57 = vadd.f32 %v7898_v40, %v5631_v1 }
 0x454   : > { %v7942_v60 = vadd.f32 %v7900_v59, %v5634_v46 }
 0x456   : > { %v5635_v17 = vpop.f32.mrb[76].mxu1 }
 0x457   : > { %v5636_v0 = vpop.f32.mrb[77].mxu1 }
 0x458   : > { %v5637_v12 = vadd.f32 %v5636_v0, %v5635_v17  ;;  %v5638_v39 = vpop.f32.mrb[78].mxu1 }
 0x459   : > { %v5639_v30 = vpop.f32.mrb[79].mxu1 }
 0x45a   : > { %v5640_v4 = vadd.f32 %v5639_v30, %v5638_v39  ;;  %v7945_v36 = vadd.f32 %v7902_v26, %v5637_v12 }
 0x45c   : > { %v7948_v49 = vadd.f32 %v7904_v44, %v5640_v4 }
 0x45e   : > { %v5641_v47 = vpop.f32.mrb[80].mxu1 }
 0x45f   : > { %v5642_v45 = vpop.f32.mrb[81].mxu1 }
 0x460   : > { %v5643_v29 = vadd.f32 %v5642_v45, %v5641_v47  ;;  %v5644_v40 = vpop.f32.mrb[82].mxu1 }
 0x461   : > { %v5645_v10 = vpop.f32.mrb[83].mxu1 }
 0x462   : > { %v5646_v58 = vadd.f32 %v5645_v10, %v5644_v40  ;;  %v7951_v59 = vadd.f32 %v7907_v3, %v5643_v29 }
 0x464   : > { %v7954_v31 = vadd.f32 %v7910_v16, %v5646_v58 }
 0x466   : > { %v5647_v50 = vpop.f32.mrb[84].mxu1 }
 0x467   : > { %v5648_v2 = vpop.f32.mrb[85].mxu1 }
 0x468   : > { %v5649_v21 = vadd.f32 %v5648_v2, %v5647_v50  ;;  %v5650_v26 = vpop.f32.mrb[86].mxu1 }
 0x469   : > { %v5651_v13 = vpop.f32.mrb[87].mxu1 }
 0x46a   : > { %v5652_v62 = vadd.f32 %v5651_v13, %v5650_v26  ;;  %v7957_v44 = vadd.f32 %v7913_v42, %v5649_v21 }
 0x46c   : > { %v7960_v38 = vadd.f32 %v7916_v56, %v5652_v62 }
 0x46e   : > { %v5653_v5 = vpop.f32.mrb[88].mxu1 }
 0x46f   : > { %v5654_v28 = vpop.f32.mrb[89].mxu1 }
 0x470   : > { %v5655_v6 = vadd.f32 %v5654_v28, %v5653_v5  ;;  %v5656_v3 = vpop.f32.mrb[90].mxu1 }
 0x471   : > { %v5657_v14 = vpop.f32.mrb[91].mxu1 }
 0x472   : > { %v5658_v61 = vadd.f32 %v5657_v14, %v5656_v3  ;;  %v7963_v16 = vadd.f32 %v7919_v48, %v5655_v6  ;;  %v7977_v48 = vld [vmem:[%s8096_s26] ss:$0 sm:$0xff] }
 0x474   : > { %v7966_v23 = vadd.f32 %v7922_v33, %v5658_v61 }
 0x476   : > { %v5659_v15 = vpop.f32.mrb[92].mxu1 }
 0x477   : > { %v5660_v42 = vpop.f32.mrb[93].mxu1 }
 0x478   : > { %v5661_v18 = vadd.f32 %v5660_v42, %v5659_v15  ;;  %v5662_v43 = vpop.f32.mrb[94].mxu1 }
 0x479   : > { %v5663_v56 = vpop.f32.mrb[95].mxu1 }
 0x47a   : > { %v5664_v52 = vadd.f32 %v5663_v56, %v5662_v43  ;;  %v7969_v7 = vadd.f32 %v7925_v37, %v5661_v18 }
 0x47c   : > { %v7972_v8 = vadd.f32 %v7928_v19, %v5664_v52 }
 0x47e   : > { %v5895_v41 = vpop.f32.mrb[16].mxu1 }
 0x47f   : > { %v5927_v33 = vadd.f32 %v5926_v11, %v5895_v41  ;;  %v4360_v55 = vpop.f32.mrb[17].mxu1 }
 0x480   : > { %v5930_v51 = vadd.f32 %v7931_v54, %v4360_v55  ;;  %v5896_v37 = vpop.f32.mrb[18].mxu1 }
 0x481   : > { %v4448_v19 = vmul.f32 %v5927_v33, %v7977_v48  ;;  %v5933_v27 = vadd.f32 %v5932_v34, %v5896_v37  ;;  %v4363_v53 = vpop.f32.mrb[19].mxu1 }
 0x482   : > { %v4446_v22 = vmul.f32 %v5930_v51, %v7977_v48  ;;  %v5936_v20 = vadd.f32 %v7934_v25, %v4363_v53 }
 0x483   : > { %v4471_v11 = vadd.f32 %v7982_v63, %v4448_v19  ;;  %v4449_v35 = vmul.f32 %v5933_v27, %v7977_v48 }
 0x484   : > { %v4469_v32 = vadd.f32 %v7982_v63, %v4446_v22  ;;  %v4447_v54 = vmul.f32 %v5936_v20, %v7977_v48 }
 0x485   : > { %vm4487_vm2 = vcmp.ge.f32.partialorder %v4471_v11, 0.0  ;;  %v4503_v1 = vmul.f32 0.01, %v4471_v11  ;;  %v4472_v9 = vadd.f32 %v7982_v63, %v4449_v35 }
 0x486   : > { %vm4485_vm3 = vcmp.ge.f32.partialorder %v4469_v32, 0.0  ;;  %v4501_v34 = vmul.f32 0.01, %v4469_v32  ;;  %v4470_v24 = vadd.f32 %v7982_v63, %v4447_v54  ;;  %v5899_v46 = vpop.f32.mrb[20].mxu1 }
 0x487   : > { %vm4488_vm4 = vcmp.ge.f32.partialorder %v4472_v9, 0.0  ;;  %v4504_v25 = vmul.f32 0.01, %v4472_v9  ;;  %v5939_v17 = vadd.f32 %v7945_v36, %v5899_v46  ;;  %v4376_v0 = vpop.f32.mrb[21].mxu1  ;;  %v4519_v12 = vsel %vm4487_vm2, %v4471_v11, %v4503_v1 }
 0x488   : > { %vm4486_vm6 = vcmp.ge.f32.partialorder %v4470_v24, 0.0  ;;  %v4502_v39 = vmul.f32 0.01, %v4470_v24  ;;  %v5942_v30 = vadd.f32 %v7939_v57, %v4376_v0  ;;  %v5900_v4 = vpop.f32.mrb[22].mxu1  ;;  %v4517_v47 = vsel %vm4485_vm3, %v4469_v32, %v4501_v34 }
 0x489   : > { %v4520_v45 = vsel %vm4488_vm4, %v4472_v9, %v4504_v25  ;;  %v4452_v29 = vmul.f32 %v5939_v17, %v7977_v48  ;;  %v5945_v36 = vadd.f32 %v7948_v49, %v5900_v4  ;;  %v4379_v40 = vpop.f32.mrb[23].mxu1 }
 0x48a   : > { %v5336_v10 = vpack.c.bf16 %v4520_v45, %v4519_v12  ;;  %v4518_v58 = vsel %vm4486_vm6, %v4470_v24, %v4502_v39  ;;  %v4450_v50 = vmul.f32 %v5942_v30, %v7977_v48  ;;  %v5948_v57 = vadd.f32 %v7942_v60, %v4379_v40 }
 0x48b   : > { %v5331_v2 = vpack.c.bf16 %v4518_v58, %v4517_v47  ;;  %v4475_v21 = vadd.f32 %v7982_v63, %v4452_v29  ;;  %v4453_v26 = vmul.f32 %v5945_v36, %v7977_v48 }
 0x48c   : > { %5368 = vst [vmem:[%s8001_s14 + $0x8] sm:$0xff] %v5336_v10   ;;  %v4473_v13 = vadd.f32 %v7982_v63, %v4450_v50  ;;  %v4451_v62 = vmul.f32 %v5948_v57, %v7977_v48 }
 0x48d   : > { %5332 = vst [vmem:[%s8001_s14] sm:$0xff] %v5331_v2   ;;  %vm4491_vm7 = vcmp.ge.f32.partialorder %v4475_v21, 0.0  ;;  %v4507_v49 = vmul.f32 0.01, %v4475_v21  ;;  %v4476_v5 = vadd.f32 %v7982_v63, %v4453_v26 }
 0x48e   : > { %vm4489_vm8 = vcmp.ge.f32.partialorder %v4473_v13, 0.0  ;;  %v4505_v28 = vmul.f32 0.01, %v4473_v13  ;;  %v4474_v6 = vadd.f32 %v7982_v63, %v4451_v62  ;;  %v5903_v60 = vpop.f32.mrb[24].mxu1 }
 0x48f   : > { %vm4492_vm9 = vcmp.ge.f32.partialorder %v4476_v5, 0.0  ;;  %v4508_v3 = vmul.f32 0.01, %v4476_v5  ;;  %v5951_v14 = vadd.f32 %v7957_v44, %v5903_v60  ;;  %v4392_v61 = vpop.f32.mrb[25].mxu1  ;;  %v4523_v15 = vsel %vm4491_vm7, %v4475_v21, %v4507_v49 }
 0x490   : > { %vm4490_vm10 = vcmp.ge.f32.partialorder %v4474_v6, 0.0  ;;  %v4506_v42 = vmul.f32 0.01, %v4474_v6  ;;  %v5954_v18 = vadd.f32 %v7951_v59, %v4392_v61  ;;  %v5904_v43 = vpop.f32.mrb[26].mxu1  ;;  %v4521_v56 = vsel %vm4489_vm8, %v4473_v13, %v4505_v28 }
 0x491   : > { %v4524_v52 = vsel %vm4492_vm9, %v4476_v5, %v4508_v3  ;;  %v4456_v41 = vmul.f32 %v5951_v14, %v7977_v48  ;;  %v5957_v33 = vadd.f32 %v7960_v38, %v5904_v43  ;;  %v4395_v55 = vpop.f32.mrb[27].mxu1 }
 0x492   : > { %v5346_v51 = vpack.c.bf16 %v4524_v52, %v4523_v15  ;;  %v4522_v37 = vsel %vm4490_vm10, %v4474_v6, %v4506_v42  ;;  %v4454_v44 = vmul.f32 %v5954_v18, %v7977_v48  ;;  %v5960_v19 = vadd.f32 %v7954_v31, %v4395_v55 }
 0x493   : > { %v5341_v27 = vpack.c.bf16 %v4522_v37, %v4521_v56  ;;  %v4479_v53 = vadd.f32 %v7982_v63, %v4456_v41  ;;  %v4457_v59 = vmul.f32 %v5957_v33, %v7977_v48 }
 0x494   : > { %5370 = vst [vmem:[%s8001_s14 + $0x18] sm:$0xff] %v5346_v51   ;;  %v4477_v22 = vadd.f32 %v7982_v63, %v4454_v44  ;;  %v4455_v20 = vmul.f32 %v5960_v19, %v7977_v48 }
 0x495   : > { %5369 = vst [vmem:[%s8001_s14 + $0x10] sm:$0xff] %v5341_v27   ;;  %vm4495_vm11 = vcmp.ge.f32.partialorder %v4479_v53, 0.0  ;;  %v4511_v38 = vmul.f32 0.01, %v4479_v53  ;;  %v4480_v11 = vadd.f32 %v7982_v63, %v4457_v59 }
 0x496   : > { %vm4493_vm12 = vcmp.ge.f32.partialorder %v4477_v22, 0.0  ;;  %v4509_v35 = vmul.f32 0.01, %v4477_v22  ;;  %v4478_v32 = vadd.f32 %v7982_v63, %v4455_v20  ;;  %v5907_v31 = vpop.f32.mrb[28].mxu1 }
 0x497   : > { %vm4496_vm13 = vcmp.ge.f32.partialorder %v4480_v11, 0.0  ;;  %v4512_v54 = vmul.f32 0.01, %v4480_v11  ;;  %v5963_v1 = vadd.f32 %v7969_v7, %v5907_v31  ;;  %v4408_v9 = vpop.f32.mrb[29].mxu1  ;;  %v4527_v34 = vsel %vm4495_vm11, %v4479_v53, %v4511_v38 }
 0x498   : > { %vm4494_vm14 = vcmp.ge.f32.partialorder %v4478_v32, 0.0  ;;  %v4510_v24 = vmul.f32 0.01, %v4478_v32  ;;  %v5966_v46 = vadd.f32 %v7963_v16, %v4408_v9  ;;  %v5908_v25 = vpop.f32.mrb[30].mxu1  ;;  %v4525_v17 = vsel %vm4493_vm12, %v4477_v22, %v4509_v35 }
 0x499   : > { %v4528_v0 = vsel %vm4496_vm13, %v4480_v11, %v4512_v54  ;;  %v4460_v12 = vmul.f32 %v5963_v1, %v7977_v48  ;;  %v5969_v39 = vadd.f32 %v7972_v8, %v5908_v25  ;;  %v4411_v30 = vpop.f32.mrb[31].mxu1 }
 0x49a   : > { %v5356_v4 = vpack.c.bf16 %v4528_v0, %v4527_v34  ;;  %v4526_v47 = vsel %vm4494_vm14, %v4478_v32, %v4510_v24  ;;  %v4458_v7 = vmul.f32 %v5966_v46, %v7977_v48  ;;  %v5972_v45 = vadd.f32 %v7966_v23, %v4411_v30 }
 0x49b   : > { %v5351_v29 = vpack.c.bf16 %v4526_v47, %v4525_v17  ;;  %v4483_v36 = vadd.f32 %v7982_v63, %v4460_v12  ;;  %v4461_v16 = vmul.f32 %v5969_v39, %v7977_v48 }
 0x49c   : > { %5372 = vst [vmem:[%s8001_s14 + $0x28] sm:$0xff] %v5356_v4   ;;  %v4481_v40 = vadd.f32 %v7982_v63, %v4458_v7  ;;  %v4459_v10 = vmul.f32 %v5972_v45, %v7977_v48 }
 0x49d   : > { %5371 = vst [vmem:[%s8001_s14 + $0x20] sm:$0xff] %v5351_v29   ;;  %v4515_v58 = vmul.f32 0.01, %v4483_v36  ;;  %v4484_v8 = vadd.f32 %v7982_v63, %v4461_v16  ;;  %vm4499_vm15 = vcmp.ge.f32.partialorder %v4483_v36, 0.0 }
 0x49e   : > { %v4513_v50 = vmul.f32 0.01, %v4481_v40  ;;  %v4482_v23 = vadd.f32 %v7982_v63, %v4459_v10  ;;  %vm4497_vm0 = vcmp.ge.f32.partialorder %v4481_v40, 0.0 }
 0x49f   : > { %vm4500_vm1 = vcmp.ge.f32.partialorder %v4484_v8, 0.0  ;;  %v4516_v57 = vmul.f32 0.01, %v4484_v8  ;;  %v4531_v21 = vsel %vm4499_vm15, %v4483_v36, %v4515_v58 }
 0x4a0   : > { %vm4498_vm5 = vcmp.ge.f32.partialorder %v4482_v23, 0.0  ;;  %v4514_v2 = vmul.f32 0.01, %v4482_v23  ;;  %v4529_v13 = vsel %vm4497_vm0, %v4481_v40, %v4513_v50 }
 0x4a1   : > { %v4532_v26 = vsel %vm4500_vm1, %v4484_v8, %v4516_v57 }
 0x4a2   : > { %v5366_v62 = vpack.c.bf16 %v4532_v26, %v4531_v21  ;;  %v4530_v48 = vsel %vm4498_vm5, %v4482_v23, %v4514_v2 }
 0x4a3   : > { %v5361_v49 = vpack.c.bf16 %v4530_v48, %v4529_v13 }
 0x4a4   : > { %5374 = vst [vmem:[%s8001_s14 + $0x38] sm:$0xff] %v5366_v62  }
 0x4a5   : > { %5373 = vst [vmem:[%s8001_s14 + $0x30] sm:$0xff] %v5361_v49  }
 0x4a6 PF: > { %s8099_s2 = sld [smem:[#allocation10_spill]]  ;;  %s8100_s21 = sld [smem:[#allocation8_spill]] }
 0x4a7   : > { %s8101_s22 = sld [smem:[#allocation9_spill]]  ;;  %s8102_s23 = sld [smem:[#allocation11_spill]] }
 0x4ac   : > { %s37_s24 = sadd.s32 1, %s8099_s2   ;;  %s8103_s2 = sld [smem:[#allocation12_spill]] }
 0x4ad   : > { %p34_p11 = scmp.ge.s32.totalorder %s37_s24, 6  }
 0x4af   :  { %36 = sbr.rel (!%p34_p11) target bundleno = 40 (0x28), region = 137 }

</bundles_post_ra>
